<compile_context>
chip_gen: v7x
topology: tpu7x:2x2x1
jax: 0.10.0
libtpu: 0.0.40
codegen_flags: <defaults>
</compile_context>

<pallas_src>
import functools
import math

import jax
import jax.numpy as jnp
from jax.experimental import pallas as pl
from jax.experimental.pallas import tpu as pltpu

EPS = 1e-5  # PyTorch LayerNorm default


def _round_up(x, m):
    return ((x + m - 1) // m) * m


# ---------------------------------------------------------------------------
# in-kernel helpers (traced inside the Pallas kernels)
# ---------------------------------------------------------------------------
def _layernorm(x, g, b, d_real):
    """LayerNorm over the last dim with `d_real` real features.

    Pad columns of x are zero and g/b are zero-padded, so the single-pass sums
    are exact over the real features and pad columns of the result stay 0."""
    s1 = jnp.sum(x, axis=-1, keepdims=True)
    s2 = jnp.sum(x * x, axis=-1, keepdims=True)
    mu = s1 / d_real
    var = jnp.maximum(s2 / d_real - mu * mu, 0.0)   # clamp: single-pass variance
    return (x - mu) * jax.lax.rsqrt(var + EPS) * g + b


# ---------------------------------------------------------------------------
# fused decoder kernel: all layers of one DecoderTransformer (+ ln_f),
# optionally with gl_projection + embedding-add fused in front and the
# lm_head (last position only) fused at the end.
# ---------------------------------------------------------------------------
def fused_decoder_kernel(*refs, n_layer, n_head, seq, d_real,
                         fuse_in_proj, fuse_head):
    i = 0
    if fuse_in_proj:
        gin_ref, emb_ref, glw_ref, glb_ref = refs[:4]
        i = 4
    else:
        x_in_ref = refs[0]
        i = 1
    (ln1g, ln1b, wqkv, bqkv, wo, bo,
     ln2g, ln2b, wfc, bfc, wpr, bpr, lnfg, lnfb) = refs[i:i + 14]
    i += 14
    if fuse_head:
        hw_ref, hb_ref = refs[i:i + 2]
        i += 2
    out_ref = refs[i]

    T = seq
    H = n_head
    if fuse_in_proj:
        M, Dp = emb_ref.shape
    else:
        M, Dp = x_in_ref.shape
    Bb = M // T
    hdp = Dp // H                      # padded per-head width
    hd = d_real // H                   # real per-head width (softmax scale)
    scale = 1.0 / math.sqrt(hd)

    # --- residual stream start (fp32, lives in vregs/VMEM for all layers) ---
    if fuse_in_proj:
        proj = (jnp.dot(gin_ref[...].astype(jnp.bfloat16), glw_ref[...],
                        preferred_element_type=jnp.float32) + glb_ref[...])
        xm = emb_ref[...] + proj                               # (M, Dp)
    else:
        xm = x_in_ref[...].astype(jnp.float32)                 # (M, Dp)

    # causal mask, hoisted out of the layer loop
    row = jax.lax.broadcasted_iota(jnp.int32, (T, T), 0)
    col = jax.lax.broadcasted_iota(jnp.int32, (T, T), 1)
    causal = (col <= row)[None]                                # (1, T, T)

    def split_heads(z):                # (M, Dp) -> (Bb*H, T, hdp)
        z = z.reshape(Bb, T, H, hdp)
        return jnp.swapaxes(z, 1, 2).reshape(Bb * H, T, hdp)

    for l in range(n_layer):           # static unroll; weights VMEM-resident
        # --- attention (pre-LN) ---
        h1 = _layernorm(xm, ln1g[l], ln1b[l], d_real)
        qkv = (jnp.dot(h1.astype(jnp.bfloat16), wqkv[l],
                       preferred_element_type=jnp.float32) + bqkv[l])
        q = split_heads(qkv[:, :Dp]).astype(jnp.bfloat16)
        k = split_heads(qkv[:, Dp:2 * Dp]).astype(jnp.bfloat16)
        v = split_heads(qkv[:, 2 * Dp:]).astype(jnp.bfloat16)
        # merged-head batched einsums: one MXU stream over the Bb*H batch
        s = jnp.einsum('bqd,bkd->bqk', q, k,
                       preferred_element_type=jnp.float32) * scale
        s = jnp.where(causal, s, -1e30)
        mx = jnp.max(s, axis=-1, keepdims=True)
        ex = jnp.exp(s - mx)
        # NOTE: approx reciprocal (EUP) — not bit-exact vs fp32 torch softmax.
        pr = ex * pl.reciprocal(jnp.sum(ex, axis=-1, keepdims=True), approx=True)
        ctx = jnp.einsum('bqk,bkd->bqd', pr.astype(jnp.bfloat16), v,
                         preferred_element_type=jnp.float32)   # (Bb*H, T, hdp)
        ctx = jnp.swapaxes(ctx.reshape(Bb, H, T, hdp), 1, 2).reshape(M, Dp)
        attn = (jnp.dot(ctx.astype(jnp.bfloat16), wo[l],
                        preferred_element_type=jnp.float32) + bo[l])
        xm = xm + attn

        # --- MLP (pre-LN, 4x ReLU) ---
        h2 = _layernorm(xm, ln2g[l], ln2b[l], d_real)
        ff = jnp.maximum(jnp.dot(h2.astype(jnp.bfloat16), wfc[l],
                                 preferred_element_type=jnp.float32) + bfc[l],
                         0.0)
        ff = (jnp.dot(ff.astype(jnp.bfloat16), wpr[l],
                      preferred_element_type=jnp.float32) + bpr[l])
        xm = xm + ff

    # --- final LayerNorm (+ optional fused lm_head on the last position) ---
    y = _layernorm(xm, lnfg[...], lnfb[...], d_real)
    if fuse_head:
        last = y.reshape(Bb, T, Dp)[:, T - 1, :]               # (Bb, Dp)
        out_ref[...] = (jnp.dot(last.astype(jnp.bfloat16), hw_ref[...],
                                preferred_element_type=jnp.float32)
                        + hb_ref[...])                          # (Bb, Vp) f32
    else:
        out_ref[...] = y.astype(out_ref.dtype)                  # (M, Dp) bf16


# ---------------------------------------------------------------------------
# pallas_call wrapper
# ---------------------------------------------------------------------------
_LAYER_WNAMES = ["ln1g", "ln1b", "wqkv", "bqkv", "wo", "bo",
                 "ln2g", "ln2b", "wfc", "bfc", "wpr", "bpr"]


def _rows_per_tile(R, T, cap=512, mult=16):
    """Largest divisor Bb of R with Bb*T <= cap and Bb*T a multiple of `mult`
    (sublane-dense tiles incl. bf16 outputs); falls back to the full extent
    (always a legal block).  cap=512 amortizes per-step overhead on v6e/v7x;
    v5e is also well served at <=512 here."""
    best = R
    for cand in range(1, R + 1):
        if R % cand == 0 and cand * T <= cap and (cand * T) % mult == 0:
            best = cand
    return best


def run_fused_decoder(dec, n_head, *, seq, d_real, x=None,
                      g_in=None, emb=None, glw=None, glb=None,
                      head_w=None, head_b=None):
    """All layers (+ ln_f) of one DecoderTransformer in a single pallas_call.

    If `x is None`, fuses `gl_projection(g_in) + emb` as the layer-0 input.
    If `head_w is not None`, fuses the lm_head on the last position of each
    sequence and returns (rows, V_pad) logits; otherwise returns the bf16
    (rows*seq, Dp) ln_f output."""
    fuse_in = x is None
    fuse_head = head_w is not None
    ref_x = emb if fuse_in else x                 # (R*seq, Dp)
    M_total, Dp = ref_x.shape
    R = M_total // seq
    L = dec["wqkv"].shape[0]
    # fused-head output rows are per-sequence, so keep a single full-extent
    # row tile there (inference-time R = batch is tiny anyway).
    Bb = R if fuse_head else _rows_per_tile(R, seq)
    n_tiles = R // Bb
    Mb = Bb * seq

    rowmap2 = lambda r: (r, 0)
    const2 = lambda r: (0, 0)
    const3 = lambda r: (0, 0, 0)

    inputs, in_specs = [], []
    if fuse_in:
        dg = g_in.shape[-1]
        inputs += [g_in, emb, glw, glb]
        in_specs += [pl.BlockSpec((Mb, dg), rowmap2),
                     pl.BlockSpec((Mb, Dp), rowmap2),
                     pl.BlockSpec(glw.shape, const2),
                     pl.BlockSpec(glb.shape, const2)]
    else:
        inputs.append(x)
        in_specs.append(pl.BlockSpec((Mb, Dp), rowmap2))

    # stacked per-layer weights: fully VMEM-resident (constant index maps)
    for name in _LAYER_WNAMES:
        w = dec[name]
        inputs.append(w)
        in_specs.append(pl.BlockSpec(w.shape, const3))

    inputs += [dec["lnf_g"], dec["lnf_b"]]
    in_specs += [pl.BlockSpec(dec["lnf_g"].shape, const2),
                 pl.BlockSpec(dec["lnf_b"].shape, const2)]

    if fuse_head:
        Vp = head_w.shape[1]
        inputs += [head_w, head_b]
        in_specs += [pl.BlockSpec(head_w.shape, const2),
                     pl.BlockSpec(head_b.shape, const2)]
        out_shape = jax.ShapeDtypeStruct((R, Vp), jnp.float32)
        out_spec = pl.BlockSpec((Bb, Vp), rowmap2)
    else:
        out_shape = jax.ShapeDtypeStruct((M_total, Dp), jnp.bfloat16)
        out_spec = pl.BlockSpec((Mb, Dp), rowmap2)

    kernel = functools.partial(fused_decoder_kernel,
                               n_layer=L, n_head=n_head, seq=seq,
                               d_real=d_real, fuse_in_proj=fuse_in,
                               fuse_head=fuse_head)
    return pl.pallas_call(
        kernel,
        out_shape=out_shape,
        grid=(n_tiles,),
        in_specs=in_specs,
        out_specs=out_spec,
        compiler_params=pltpu.CompilerParams(
            dimension_semantics=("parallel",),
            # well under the 64 MiB physical VMEM of a v7x TensorCore; tiny
            # fraction of v5e/v6e's 128 MiB.
            vmem_limit_bytes=48 * 1024 * 1024),
    )(*inputs)


# ---------------------------------------------------------------------------
# DecoderTransformer embedding (JAX glue: gather + add)
# ---------------------------------------------------------------------------
def embed(tokens, tok_table, pos_table):
    T = tokens.shape[-1]
    tok = jnp.take(tok_table, tokens, axis=0)          # (B, T, E)
    return tok + pos_table[:T][None, :, :]


# ---------------------------------------------------------------------------
# MultiscaleDecoder.forward (targets=None path)
# ---------------------------------------------------------------------------
def multiscale_forward(x_tokens, params, cfg):
    B, Ttot = x_tokens.shape
    P = cfg["patch_size"]
    T = Ttot // P
    dg, dl, V = cfg["d_global"], cfg["d_local"], cfg["vocab_size"]
    Dg = dg * P

    # ---- global branch ----
    pad = jnp.zeros((B, P), x_tokens.dtype)                           # self.pad = 0
    bytes_global = jnp.concatenate([pad, x_tokens[:, :-P]], axis=-1)  # (B, Ttot)
    g_emb = embed(bytes_global, params["g_tok"], params["g_pos"])     # (B, Ttot, dg)
    # torch: unfold(1,P,P) -> (B,T,dg,P); reshape -> (B,T,dg*P), d-major
    global_in = (g_emb.reshape(B, T, P, dg)
                      .transpose(0, 1, 3, 2)
                      .reshape(B * T, Dg))                            # 2D rows*T
    global_out = run_fused_decoder(params["global_packed"], cfg["n_head_global"],
                                   seq=T, d_real=Dg, x=global_in)     # (B*T, Dg) bf16

    # ---- local branch: targets=None only needs the last position's logits,
    #      so only the LAST patch per batch element is decoded locally. ----
    # torch: global_output.view(b*t, p, e) is a p-major split of each row.
    last_global = global_out.reshape(B, T, Dg)[:, -1]                 # (B, Dg) bf16
    gin = last_global.reshape(B * P, dg)                              # (B*P, dg)

    bytes_last = x_tokens[:, -P:]                                     # (B, P)
    l_emb = embed(bytes_last, params["l_tok_pad"], params["l_pos_pad"])
    l_emb = l_emb.reshape(B * P, -1)                                  # (B*P, Dl_pad)

    logits_pad = run_fused_decoder(params["local_packed"], cfg["n_head_local"],
                                   seq=P, d_real=dl,
                                   g_in=gin, emb=l_emb,
                                   glw=params["gl_w_pad"], glb=params["gl_b_pad"],
                                   head_w=params["head_w_pad"],
                                   head_b=params["head_b_pad"])       # (B, V_pad)
    logits = logits_pad[:, :V][:, None, :]                            # (B, 1, V)
    return logits, None


# ---------------------------------------------------------------------------
# parameter init (synthetic, real torch-module shapes) and lane-dense packing
# ---------------------------------------------------------------------------
def _nrm(key, shape, scale=0.02):
    return scale * jax.random.normal(key, shape, jnp.float32)


def _init_decoder(key, D, n_layer):
    ks = jax.random.split(key, 4)
    L = n_layer
    return dict(
        ln1g=jnp.ones((L, 1, D), jnp.float32),
        ln1b=jnp.zeros((L, 1, D), jnp.float32),
        wqkv=_nrm(ks[0], (L, D, 3 * D)),
        bqkv=jnp.zeros((L, 1, 3 * D), jnp.float32),
        wo=_nrm(ks[1], (L, D, D)),
        bo=jnp.zeros((L, 1, D), jnp.float32),
        ln2g=jnp.ones((L, 1, D), jnp.float32),
        ln2b=jnp.zeros((L, 1, D), jnp.float32),
        wfc=_nrm(ks[2], (L, D, 4 * D)),
        bfc=jnp.zeros((L, 1, 4 * D), jnp.float32),
        wpr=_nrm(ks[3], (L, 4 * D, D)),
        bpr=jnp.zeros((L, 1, D), jnp.float32),
        lnf_g=jnp.ones((1, D), jnp.float32),
        lnf_b=jnp.zeros((1, D), jnp.float32),
    )


def _pad_axis(x, axis, new):
    if x.shape[axis] == new:
        return x
    pad = [(0, 0)] * x.ndim
    pad[axis] = (0, new - x.shape[axis])
    return jnp.pad(x, pad)


def _pad_heads(x, axis, n_head, hdp):
    """Zero-pad each of the n_head contiguous head blocks along `axis` to hdp."""
    parts = jnp.split(x, n_head, axis=axis)
    return jnp.concatenate([_pad_axis(p, axis, hdp) for p in parts], axis=axis)


def pack_decoder(dec, n_head, d_pad):
    """Zero-pad one decoder's params to lane-dense shapes (feature dim -> d_pad,
    MLP hidden -> multiple of 128).  Per-head q/k/v columns and wo rows are
    padded head-by-head so the kernel's merged-head reshape stays correct.
    Matmul weights are stored bf16; LN params / biases stay fp32."""
    L, D, _ = dec["wqkv"].shape
    hid_pad = _round_up(4 * D, 128)
    hdp = d_pad // n_head

    q, k, v = jnp.split(dec["wqkv"], 3, axis=2)
    wqkv = jnp.concatenate([_pad_heads(q, 2, n_head, hdp),
                            _pad_heads(k, 2, n_head, hdp),
                            _pad_heads(v, 2, n_head, hdp)], axis=2)
    wqkv = _pad_axis(wqkv, 1, d_pad)
    bq, bk, bv = jnp.split(dec["bqkv"], 3, axis=2)
    bqkv = jnp.concatenate([_pad_heads(bq, 2, n_head, hdp),
                            _pad_heads(bk, 2, n_head, hdp),
                            _pad_heads(bv, 2, n_head, hdp)], axis=2)
    wo = _pad_axis(_pad_heads(dec["wo"], 1, n_head, hdp), 2, d_pad)

    return dict(
        ln1g=_pad_axis(dec["ln1g"], 2, d_pad),
        ln1b=_pad_axis(dec["ln1b"], 2, d_pad),
        wqkv=wqkv.astype(jnp.bfloat16),
        bqkv=bqkv,
        wo=wo.astype(jnp.bfloat16),
        bo=_pad_axis(dec["bo"], 2, d_pad),
        ln2g=_pad_axis(dec["ln2g"], 2, d_pad),
        ln2b=_pad_axis(dec["ln2b"], 2, d_pad),
        wfc=_pad_axis(_pad_axis(dec["wfc"], 1, d_pad), 2, hid_pad).astype(jnp.bfloat16),
        bfc=_pad_axis(dec["bfc"], 2, hid_pad),
        wpr=_pad_axis(_pad_axis(dec["wpr"], 1, hid_pad), 2, d_pad).astype(jnp.bfloat16),
        bpr=_pad_axis(dec["bpr"], 2, d_pad),
        lnf_g=_pad_axis(dec["lnf_g"], 1, d_pad),
        lnf_b=_pad_axis(dec["lnf_b"], 1, d_pad),
    )


def init_params(key, cfg):
    V = cfg["vocab_size"]
    P = cfg["patch_size"]
    dg, dl = cfg["d_global"], cfg["d_local"]
    ks = jax.random.split(key, 8)
    return dict(
        g_tok=_nrm(ks[0], (V, dg)),
        g_pos=_nrm(ks[1], (cfg["block_size"], dg)),
        l_tok=_nrm(ks[2], (V, dl)),
        l_pos=_nrm(ks[3], (P, dl)),
        global_dec=_init_decoder(ks[4], dg * P, cfg["n_layer_global"]),
        local_dec=_init_decoder(ks[5], dl, cfg["n_layer_local"]),
        gl_w=_nrm(ks[6], (dg, dl)),                  # gl_projection (dg != dl)
        gl_b=jnp.zeros((1, dl), jnp.float32),
        head_w=_nrm(ks[7], (dl, V)),                 # lm_head
        head_b=jnp.zeros((1, V), jnp.float32),
    )


def pack_params(params, cfg):
    P = cfg["patch_size"]
    dg, dl, V = cfg["d_global"], cfg["d_local"], cfg["vocab_size"]
    Dg_pad = _round_up(dg * P, 128)
    Dl_pad = _round_up(dl, 128)
    V_pad = _round_up(V, 128)
    out = dict(params)
    out["global_packed"] = pack_decoder(params["global_dec"],
                                        cfg["n_head_global"], Dg_pad)
    out["local_packed"] = pack_decoder(params["local_dec"],
                                       cfg["n_head_local"], Dl_pad)
    out["gl_w_pad"] = _pad_axis(params["gl_w"], 1, Dl_pad).astype(jnp.bfloat16)
    out["gl_b_pad"] = _pad_axis(params["gl_b"], 1, Dl_pad)
    out["head_w_pad"] = _pad_axis(_pad_axis(params["head_w"], 0, Dl_pad),
                                  1, V_pad).astype(jnp.bfloat16)
    out["head_b_pad"] = _pad_axis(params["head_b"], 1, V_pad)
    out["l_tok_pad"] = _pad_axis(params["l_tok"], 1, Dl_pad)
    out["l_pos_pad"] = _pad_axis(params["l_pos"], 1, Dl_pad)
    return out


# ---------------------------------------------------------------------------
if __name__ == "__main__":
    cfg = dict(vocab_size=32, block_size=16, patch_size=4,
               d_global=32, n_head_global=4, n_layer_global=2,
               d_local=16, n_head_local=2, n_layer_local=2,
               dropout=0.0)
    key = jax.random.PRNGKey(0)
    kparam, kx = jax.random.split(key)
    params = pack_params(init_params(kparam, cfg), cfg)

    B = 2
    x = jax.random.randint(kx, (B, cfg["block_size"]), 0, cfg["vocab_size"],
                           dtype=jnp.int32)

    logits, loss = multiscale_forward(x, params, cfg)
    logits = jax.block_until_ready(logits)
    assert logits.shape == (B, 1, cfg["vocab_size"]), logits.shape
    assert loss is None
    print("KERNEL_OK")
</pallas_src>

<mosaic_0001>
module attributes {stable_mosaic.version = 11 : i64} {
  func.func @fused_decoder_kernel(%arg0: i32, %arg1: memref<8x128xf32, #tpu.memory_space<vmem>>, %arg2: memref<2x1x128xf32, #tpu.memory_space<vmem>>, %arg3: memref<2x1x128xf32, #tpu.memory_space<vmem>>, %arg4: memref<2x128x384xbf16, #tpu.memory_space<vmem>>, %arg5: memref<2x1x384xf32, #tpu.memory_space<vmem>>, %arg6: memref<2x128x128xbf16, #tpu.memory_space<vmem>>, %arg7: memref<2x1x128xf32, #tpu.memory_space<vmem>>, %arg8: memref<2x1x128xf32, #tpu.memory_space<vmem>>, %arg9: memref<2x1x128xf32, #tpu.memory_space<vmem>>, %arg10: memref<2x128x512xbf16, #tpu.memory_space<vmem>>, %arg11: memref<2x1x512xf32, #tpu.memory_space<vmem>>, %arg12: memref<2x512x128xbf16, #tpu.memory_space<vmem>>, %arg13: memref<2x1x128xf32, #tpu.memory_space<vmem>>, %arg14: memref<1x128xf32, #tpu.memory_space<vmem>>, %arg15: memref<1x128xf32, #tpu.memory_space<vmem>>, %arg16: memref<8x128xbf16, #tpu.memory_space<vmem>>) attributes {dimension_semantics = [#tpu.dimension_semantics<parallel>], iteration_bounds = array<i64: 1>, scalar_prefetch = 0 : i64, scratch_operands = 0 : i64, tpu.core_type = #tpu.core_type<tc>, window_params = [{transform_indices = @transform_0, window_bounds = array<i64: 8, 128>}, {pipeline_mode = #tpu.pipeline_mode<synchronous>, transform_indices = @transform_1, window_bounds = array<i64: 2, 1, 128>}, {pipeline_mode = #tpu.pipeline_mode<synchronous>, transform_indices = @transform_2, window_bounds = array<i64: 2, 1, 128>}, {pipeline_mode = #tpu.pipeline_mode<synchronous>, transform_indices = @transform_3, window_bounds = array<i64: 2, 128, 384>}, {pipeline_mode = #tpu.pipeline_mode<synchronous>, transform_indices = @transform_4, window_bounds = array<i64: 2, 1, 384>}, {pipeline_mode = #tpu.pipeline_mode<synchronous>, transform_indices = @transform_5, window_bounds = array<i64: 2, 128, 128>}, {pipeline_mode = #tpu.pipeline_mode<synchronous>, transform_indices = @transform_6, window_bounds = array<i64: 2, 1, 128>}, {pipeline_mode = #tpu.pipeline_mode<synchronous>, transform_indices = @transform_7, window_bounds = array<i64: 2, 1, 128>}, {pipeline_mode = #tpu.pipeline_mode<synchronous>, transform_indices = @transform_8, window_bounds = array<i64: 2, 1, 128>}, {pipeline_mode = #tpu.pipeline_mode<synchronous>, transform_indices = @transform_9, window_bounds = array<i64: 2, 128, 512>}, {pipeline_mode = #tpu.pipeline_mode<synchronous>, transform_indices = @transform_10, window_bounds = array<i64: 2, 1, 512>}, {pipeline_mode = #tpu.pipeline_mode<synchronous>, transform_indices = @transform_11, window_bounds = array<i64: 2, 512, 128>}, {pipeline_mode = #tpu.pipeline_mode<synchronous>, transform_indices = @transform_12, window_bounds = array<i64: 2, 1, 128>}, {pipeline_mode = #tpu.pipeline_mode<synchronous>, transform_indices = @transform_13, window_bounds = array<i64: 1, 128>}, {pipeline_mode = #tpu.pipeline_mode<synchronous>, transform_indices = @transform_14, window_bounds = array<i64: 1, 128>}, {transform_indices = @transform_15, window_bounds = array<i64: 8, 128>}]} {
    %c0 = arith.constant 0 : index
    %c0_0 = arith.constant 0 : index
    %0 = vector.load %arg1[%c0, %c0_0] : memref<8x128xf32, #tpu.memory_space<vmem>>, vector<8x128xf32>
    %1 = tpu.iota {dimensions = array<i32: 0>} : vector<4x4xi32>
    %2 = tpu.iota {dimensions = array<i32: 1>} : vector<4x4xi32>
    %3 = arith.cmpi sle, %2, %1 : vector<4x4xi32>
    %4 = vector.shape_cast %3 : vector<4x4xi1> to vector<1x4x4xi1>
    %c0_1 = arith.constant 0 : index
    %c0_2 = arith.constant 0 : index
    %c0_3 = arith.constant 0 : index
    %5 = vector.load %arg2[%c0_1, %c0_2, %c0_3] : memref<2x1x128xf32, #tpu.memory_space<vmem>>, vector<1x1x128xf32>
    %6 = vector.shape_cast %5 : vector<1x1x128xf32> to vector<1x128xf32>
    %c0_4 = arith.constant 0 : index
    %c0_5 = arith.constant 0 : index
    %c0_6 = arith.constant 0 : index
    %7 = vector.load %arg3[%c0_4, %c0_5, %c0_6] : memref<2x1x128xf32, #tpu.memory_space<vmem>>, vector<1x1x128xf32>
    %8 = vector.shape_cast %7 : vector<1x1x128xf32> to vector<1x128xf32>
    %cst = arith.constant dense<0.000000e+00> : vector<8xf32>
    %9 = vector.multi_reduction <add>, %0, %cst [1] : vector<8x128xf32> to vector<8xf32>
    %10 = vector.shape_cast %9 : vector<8xf32> to vector<8x1xf32>
    %11 = arith.mulf %0, %0 : vector<8x128xf32>
    %cst_7 = arith.constant dense<0.000000e+00> : vector<8xf32>
    %12 = vector.multi_reduction <add>, %11, %cst_7 [1] : vector<8x128xf32> to vector<8xf32>
    %13 = vector.shape_cast %12 : vector<8xf32> to vector<8x1xf32>
    %cst_8 = arith.constant 1.280000e+02 : f32
    %14 = vector.broadcast %cst_8 : f32 to vector<8x1xf32>
    %15 = arith.divf %10, %14 : vector<8x1xf32>
    %cst_9 = arith.constant 1.280000e+02 : f32
    %16 = vector.broadcast %cst_9 : f32 to vector<8x1xf32>
    %17 = arith.divf %13, %16 : vector<8x1xf32>
    %18 = arith.mulf %15, %15 : vector<8x1xf32>
    %19 = arith.subf %17, %18 : vector<8x1xf32>
    %cst_10 = arith.constant 0.000000e+00 : f32
    %20 = vector.broadcast %cst_10 : f32 to vector<8x1xf32>
    %21 = arith.maximumf %19, %20 : vector<8x1xf32>
    %22 = vector.broadcast %15 : vector<8x1xf32> to vector<8x128xf32>
    %23 = arith.subf %0, %22 : vector<8x128xf32>
    %cst_11 = arith.constant 9.99999974E-6 : f32
    %24 = vector.broadcast %cst_11 : f32 to vector<8x1xf32>
    %25 = arith.addf %21, %24 : vector<8x1xf32>
    %26 = math.rsqrt %25 : vector<8x1xf32>
    %27 = vector.broadcast %26 : vector<8x1xf32> to vector<8x128xf32>
    %28 = arith.mulf %23, %27 : vector<8x128xf32>
    %29 = vector.broadcast %6 : vector<1x128xf32> to vector<8x128xf32>
    %30 = arith.mulf %28, %29 : vector<8x128xf32>
    %31 = vector.broadcast %8 : vector<1x128xf32> to vector<8x128xf32>
    %32 = arith.addf %30, %31 : vector<8x128xf32>
    %33 = arith.truncf %32 : vector<8x128xf32> to vector<8x128xbf16>
    %c0_12 = arith.constant 0 : index
    %c0_13 = arith.constant 0 : index
    %c0_14 = arith.constant 0 : index
    %34 = vector.load %arg4[%c0_12, %c0_13, %c0_14] : memref<2x128x384xbf16, #tpu.memory_space<vmem>>, vector<1x128x384xbf16>
    %35 = vector.shape_cast %34 : vector<1x128x384xbf16> to vector<128x384xbf16>
    %cst_15 = arith.constant dense<0.000000e+00> : vector<8x384xf32>
    %36 = tpu.matmul %33, %35, %cst_15 {dimension_numbers = #tpu.dot_dimension_numbers<[1], [0], [0], [1], [0, 0, 1, 1], [], []>} : vector<8x128xbf16>, vector<128x384xbf16>, vector<8x384xf32> -> vector<8x384xf32>
    %c0_16 = arith.constant 0 : index
    %c0_17 = arith.constant 0 : index
    %c0_18 = arith.constant 0 : index
    %37 = vector.load %arg5[%c0_16, %c0_17, %c0_18] : memref<2x1x384xf32, #tpu.memory_space<vmem>>, vector<1x1x384xf32>
    %38 = vector.shape_cast %37 : vector<1x1x384xf32> to vector<1x384xf32>
    %39 = vector.broadcast %38 : vector<1x384xf32> to vector<8x384xf32>
    %40 = arith.addf %36, %39 : vector<8x384xf32>
    %41 = vector.extract_strided_slice %40 {offsets = [0, 0], sizes = [8, 128], strides = [1, 1]} : vector<8x384xf32> to vector<8x128xf32>
    %42 = vector.shape_cast %41 : vector<8x128xf32> to vector<2x4x4x32xf32>
    %43 = tpu.transpose %42, [0, 2, 1, 3] : vector<2x4x4x32xf32> -> vector<2x4x4x32xf32>
    %44 = vector.shape_cast %43 : vector<2x4x4x32xf32> to vector<8x4x32xf32>
    %45 = arith.truncf %44 : vector<8x4x32xf32> to vector<8x4x32xbf16>
    %46 = vector.extract_strided_slice %40 {offsets = [0, 128], sizes = [8, 128], strides = [1, 1]} : vector<8x384xf32> to vector<8x128xf32>
    %47 = vector.shape_cast %46 : vector<8x128xf32> to vector<2x4x4x32xf32>
    %48 = tpu.transpose %47, [0, 2, 1, 3] : vector<2x4x4x32xf32> -> vector<2x4x4x32xf32>
    %49 = vector.shape_cast %48 : vector<2x4x4x32xf32> to vector<8x4x32xf32>
    %50 = arith.truncf %49 : vector<8x4x32xf32> to vector<8x4x32xbf16>
    %51 = vector.extract_strided_slice %40 {offsets = [0, 256], sizes = [8, 128], strides = [1, 1]} : vector<8x384xf32> to vector<8x128xf32>
    %52 = vector.shape_cast %51 : vector<8x128xf32> to vector<2x4x4x32xf32>
    %53 = tpu.transpose %52, [0, 2, 1, 3] : vector<2x4x4x32xf32> -> vector<2x4x4x32xf32>
    %54 = vector.shape_cast %53 : vector<2x4x4x32xf32> to vector<8x4x32xf32>
    %55 = arith.truncf %54 : vector<8x4x32xf32> to vector<8x4x32xbf16>
    "tpu.trace_start"() <{level = 10 : i32, message = "bqd,bkd->bqk"}> : () -> ()
    %cst_19 = arith.constant dense<0.000000e+00> : vector<8x4x4xf32>
    %56 = tpu.matmul %45, %50, %cst_19 {dimension_numbers = #tpu.dot_dimension_numbers<[2], [2], [1], [1], [0, 0, 0, 1, 1, 1], [0], [0]>} : vector<8x4x32xbf16>, vector<8x4x32xbf16>, vector<8x4x4xf32> -> vector<8x4x4xf32>
    "tpu.trace_stop"() : () -> ()
    %cst_20 = arith.constant 0.176776692 : f32
    %57 = vector.broadcast %cst_20 : f32 to vector<8x4x4xf32>
    %58 = arith.mulf %56, %57 : vector<8x4x4xf32>
    %cst_21 = arith.constant -1.000000e+30 : f32
    %59 = vector.shape_cast %4 : vector<1x4x4xi1> to vector<1x4x4xi1>
    %60 = vector.broadcast %59 : vector<1x4x4xi1> to vector<8x4x4xi1>
    %61 = vector.broadcast %cst_21 : f32 to vector<8x4x4xf32>
    %62 = arith.select %60, %58, %61 : vector<8x4x4xi1>, vector<8x4x4xf32>
    %cst_22 = arith.constant dense<0xFF800000> : vector<8x4xf32>
    %63 = vector.multi_reduction <maximumf>, %62, %cst_22 [2] : vector<8x4x4xf32> to vector<8x4xf32>
    %64 = vector.shape_cast %63 : vector<8x4xf32> to vector<8x4x1xf32>
    %65 = vector.broadcast %64 : vector<8x4x1xf32> to vector<8x4x4xf32>
    %66 = arith.subf %62, %65 : vector<8x4x4xf32>
    %67 = math.exp %66 : vector<8x4x4xf32>
    %cst_23 = arith.constant dense<0.000000e+00> : vector<8x4xf32>
    %68 = vector.multi_reduction <add>, %67, %cst_23 [2] : vector<8x4x4xf32> to vector<8x4xf32>
    %69 = vector.shape_cast %68 : vector<8x4xf32> to vector<8x4x1xf32>
    %70 = tpu.reciprocal %69 {approx = true} : vector<8x4x1xf32> -> vector<8x4x1xf32>
    %71 = vector.broadcast %70 : vector<8x4x1xf32> to vector<8x4x4xf32>
    %72 = arith.mulf %67, %71 : vector<8x4x4xf32>
    %73 = arith.truncf %72 : vector<8x4x4xf32> to vector<8x4x4xbf16>
    "tpu.trace_start"() <{level = 10 : i32, message = "bqk,bkd->bqd"}> : () -> ()
    %cst_24 = arith.constant dense<0.000000e+00> : vector<8x4x32xf32>
    %74 = tpu.matmul %73, %55, %cst_24 {dimension_numbers = #tpu.dot_dimension_numbers<[2], [1], [1], [2], [0, 0, 0, 1, 1, 2], [0], [0]>} : vector<8x4x4xbf16>, vector<8x4x32xbf16>, vector<8x4x32xf32> -> vector<8x4x32xf32>
    "tpu.trace_stop"() : () -> ()
    %75 = vector.shape_cast %74 : vector<8x4x32xf32> to vector<2x4x4x32xf32>
    %76 = tpu.transpose %75, [0, 2, 1, 3] : vector<2x4x4x32xf32> -> vector<2x4x4x32xf32>
    %77 = vector.shape_cast %76 : vector<2x4x4x32xf32> to vector<8x128xf32>
    %78 = arith.truncf %77 : vector<8x128xf32> to vector<8x128xbf16>
    %c0_25 = arith.constant 0 : index
    %c0_26 = arith.constant 0 : index
    %c0_27 = arith.constant 0 : index
    %79 = vector.load %arg6[%c0_25, %c0_26, %c0_27] : memref<2x128x128xbf16, #tpu.memory_space<vmem>>, vector<1x128x128xbf16>
    %80 = vector.shape_cast %79 : vector<1x128x128xbf16> to vector<128x128xbf16>
    %cst_28 = arith.constant dense<0.000000e+00> : vector<8x128xf32>
    %81 = tpu.matmul %78, %80, %cst_28 {dimension_numbers = #tpu.dot_dimension_numbers<[1], [0], [0], [1], [0, 0, 1, 1], [], []>} : vector<8x128xbf16>, vector<128x128xbf16>, vector<8x128xf32> -> vector<8x128xf32>
    %c0_29 = arith.constant 0 : index
    %c0_30 = arith.constant 0 : index
    %c0_31 = arith.constant 0 : index
    %82 = vector.load %arg7[%c0_29, %c0_30, %c0_31] : memref<2x1x128xf32, #tpu.memory_space<vmem>>, vector<1x1x128xf32>
    %83 = vector.shape_cast %82 : vector<1x1x128xf32> to vector<1x128xf32>
    %84 = vector.broadcast %83 : vector<1x128xf32> to vector<8x128xf32>
    %85 = arith.addf %81, %84 : vector<8x128xf32>
    %86 = arith.addf %0, %85 : vector<8x128xf32>
    %c0_32 = arith.constant 0 : index
    %c0_33 = arith.constant 0 : index
    %c0_34 = arith.constant 0 : index
    %87 = vector.load %arg8[%c0_32, %c0_33, %c0_34] : memref<2x1x128xf32, #tpu.memory_space<vmem>>, vector<1x1x128xf32>
    %88 = vector.shape_cast %87 : vector<1x1x128xf32> to vector<1x128xf32>
    %c0_35 = arith.constant 0 : index
    %c0_36 = arith.constant 0 : index
    %c0_37 = arith.constant 0 : index
    %89 = vector.load %arg9[%c0_35, %c0_36, %c0_37] : memref<2x1x128xf32, #tpu.memory_space<vmem>>, vector<1x1x128xf32>
    %90 = vector.shape_cast %89 : vector<1x1x128xf32> to vector<1x128xf32>
    %cst_38 = arith.constant dense<0.000000e+00> : vector<8xf32>
    %91 = vector.multi_reduction <add>, %86, %cst_38 [1] : vector<8x128xf32> to vector<8xf32>
    %92 = vector.shape_cast %91 : vector<8xf32> to vector<8x1xf32>
    %93 = arith.mulf %86, %86 : vector<8x128xf32>
    %cst_39 = arith.constant dense<0.000000e+00> : vector<8xf32>
    %94 = vector.multi_reduction <add>, %93, %cst_39 [1] : vector<8x128xf32> to vector<8xf32>
    %95 = vector.shape_cast %94 : vector<8xf32> to vector<8x1xf32>
    %cst_40 = arith.constant 1.280000e+02 : f32
    %96 = vector.broadcast %cst_40 : f32 to vector<8x1xf32>
    %97 = arith.divf %92, %96 : vector<8x1xf32>
    %cst_41 = arith.constant 1.280000e+02 : f32
    %98 = vector.broadcast %cst_41 : f32 to vector<8x1xf32>
    %99 = arith.divf %95, %98 : vector<8x1xf32>
    %100 = arith.mulf %97, %97 : vector<8x1xf32>
    %101 = arith.subf %99, %100 : vector<8x1xf32>
    %cst_42 = arith.constant 0.000000e+00 : f32
    %102 = vector.broadcast %cst_42 : f32 to vector<8x1xf32>
    %103 = arith.maximumf %101, %102 : vector<8x1xf32>
    %104 = vector.broadcast %97 : vector<8x1xf32> to vector<8x128xf32>
    %105 = arith.subf %86, %104 : vector<8x128xf32>
    %cst_43 = arith.constant 9.99999974E-6 : f32
    %106 = vector.broadcast %cst_43 : f32 to vector<8x1xf32>
    %107 = arith.addf %103, %106 : vector<8x1xf32>
    %108 = math.rsqrt %107 : vector<8x1xf32>
    %109 = vector.broadcast %108 : vector<8x1xf32> to vector<8x128xf32>
    %110 = arith.mulf %105, %109 : vector<8x128xf32>
    %111 = vector.broadcast %88 : vector<1x128xf32> to vector<8x128xf32>
    %112 = arith.mulf %110, %111 : vector<8x128xf32>
    %113 = vector.broadcast %90 : vector<1x128xf32> to vector<8x128xf32>
    %114 = arith.addf %112, %113 : vector<8x128xf32>
    %115 = arith.truncf %114 : vector<8x128xf32> to vector<8x128xbf16>
    %c0_44 = arith.constant 0 : index
    %c0_45 = arith.constant 0 : index
    %c0_46 = arith.constant 0 : index
    %116 = vector.load %arg10[%c0_44, %c0_45, %c0_46] : memref<2x128x512xbf16, #tpu.memory_space<vmem>>, vector<1x128x512xbf16>
    %117 = vector.shape_cast %116 : vector<1x128x512xbf16> to vector<128x512xbf16>
    %cst_47 = arith.constant dense<0.000000e+00> : vector<8x512xf32>
    %118 = tpu.matmul %115, %117, %cst_47 {dimension_numbers = #tpu.dot_dimension_numbers<[1], [0], [0], [1], [0, 0, 1, 1], [], []>} : vector<8x128xbf16>, vector<128x512xbf16>, vector<8x512xf32> -> vector<8x512xf32>
    %c0_48 = arith.constant 0 : index
    %c0_49 = arith.constant 0 : index
    %c0_50 = arith.constant 0 : index
    %119 = vector.load %arg11[%c0_48, %c0_49, %c0_50] : memref<2x1x512xf32, #tpu.memory_space<vmem>>, vector<1x1x512xf32>
    %120 = vector.shape_cast %119 : vector<1x1x512xf32> to vector<1x512xf32>
    %121 = vector.broadcast %120 : vector<1x512xf32> to vector<8x512xf32>
    %122 = arith.addf %118, %121 : vector<8x512xf32>
    %cst_51 = arith.constant 0.000000e+00 : f32
    %123 = vector.broadcast %cst_51 : f32 to vector<8x512xf32>
    %124 = arith.maximumf %122, %123 : vector<8x512xf32>
    %125 = arith.truncf %124 : vector<8x512xf32> to vector<8x512xbf16>
    %c0_52 = arith.constant 0 : index
    %c0_53 = arith.constant 0 : index
    %c0_54 = arith.constant 0 : index
    %126 = vector.load %arg12[%c0_52, %c0_53, %c0_54] : memref<2x512x128xbf16, #tpu.memory_space<vmem>>, vector<1x512x128xbf16>
    %127 = vector.shape_cast %126 : vector<1x512x128xbf16> to vector<512x128xbf16>
    %cst_55 = arith.constant dense<0.000000e+00> : vector<8x128xf32>
    %128 = tpu.matmul %125, %127, %cst_55 {dimension_numbers = #tpu.dot_dimension_numbers<[1], [0], [0], [1], [0, 0, 1, 1], [], []>} : vector<8x512xbf16>, vector<512x128xbf16>, vector<8x128xf32> -> vector<8x128xf32>
    %c0_56 = arith.constant 0 : index
    %c0_57 = arith.constant 0 : index
    %c0_58 = arith.constant 0 : index
    %129 = vector.load %arg13[%c0_56, %c0_57, %c0_58] : memref<2x1x128xf32, #tpu.memory_space<vmem>>, vector<1x1x128xf32>
    %130 = vector.shape_cast %129 : vector<1x1x128xf32> to vector<1x128xf32>
    %131 = vector.broadcast %130 : vector<1x128xf32> to vector<8x128xf32>
    %132 = arith.addf %128, %131 : vector<8x128xf32>
    %133 = arith.addf %86, %132 : vector<8x128xf32>
    %c1 = arith.constant 1 : index
    %c0_59 = arith.constant 0 : index
    %c0_60 = arith.constant 0 : index
    %134 = vector.load %arg2[%c1, %c0_59, %c0_60] : memref<2x1x128xf32, #tpu.memory_space<vmem>>, vector<1x1x128xf32>
    %135 = vector.shape_cast %134 : vector<1x1x128xf32> to vector<1x128xf32>
    %c1_61 = arith.constant 1 : index
    %c0_62 = arith.constant 0 : index
    %c0_63 = arith.constant 0 : index
    %136 = vector.load %arg3[%c1_61, %c0_62, %c0_63] : memref<2x1x128xf32, #tpu.memory_space<vmem>>, vector<1x1x128xf32>
    %137 = vector.shape_cast %136 : vector<1x1x128xf32> to vector<1x128xf32>
    %cst_64 = arith.constant dense<0.000000e+00> : vector<8xf32>
    %138 = vector.multi_reduction <add>, %133, %cst_64 [1] : vector<8x128xf32> to vector<8xf32>
    %139 = vector.shape_cast %138 : vector<8xf32> to vector<8x1xf32>
    %140 = arith.mulf %133, %133 : vector<8x128xf32>
    %cst_65 = arith.constant dense<0.000000e+00> : vector<8xf32>
    %141 = vector.multi_reduction <add>, %140, %cst_65 [1] : vector<8x128xf32> to vector<8xf32>
    %142 = vector.shape_cast %141 : vector<8xf32> to vector<8x1xf32>
    %cst_66 = arith.constant 1.280000e+02 : f32
    %143 = vector.broadcast %cst_66 : f32 to vector<8x1xf32>
    %144 = arith.divf %139, %143 : vector<8x1xf32>
    %cst_67 = arith.constant 1.280000e+02 : f32
    %145 = vector.broadcast %cst_67 : f32 to vector<8x1xf32>
    %146 = arith.divf %142, %145 : vector<8x1xf32>
    %147 = arith.mulf %144, %144 : vector<8x1xf32>
    %148 = arith.subf %146, %147 : vector<8x1xf32>
    %cst_68 = arith.constant 0.000000e+00 : f32
    %149 = vector.broadcast %cst_68 : f32 to vector<8x1xf32>
    %150 = arith.maximumf %148, %149 : vector<8x1xf32>
    %151 = vector.broadcast %144 : vector<8x1xf32> to vector<8x128xf32>
    %152 = arith.subf %133, %151 : vector<8x128xf32>
    %cst_69 = arith.constant 9.99999974E-6 : f32
    %153 = vector.broadcast %cst_69 : f32 to vector<8x1xf32>
    %154 = arith.addf %150, %153 : vector<8x1xf32>
    %155 = math.rsqrt %154 : vector<8x1xf32>
    %156 = vector.broadcast %155 : vector<8x1xf32> to vector<8x128xf32>
    %157 = arith.mulf %152, %156 : vector<8x128xf32>
    %158 = vector.broadcast %135 : vector<1x128xf32> to vector<8x128xf32>
    %159 = arith.mulf %157, %158 : vector<8x128xf32>
    %160 = vector.broadcast %137 : vector<1x128xf32> to vector<8x128xf32>
    %161 = arith.addf %159, %160 : vector<8x128xf32>
    %162 = arith.truncf %161 : vector<8x128xf32> to vector<8x128xbf16>
    %c1_70 = arith.constant 1 : index
    %c0_71 = arith.constant 0 : index
    %c0_72 = arith.constant 0 : index
    %163 = vector.load %arg4[%c1_70, %c0_71, %c0_72] : memref<2x128x384xbf16, #tpu.memory_space<vmem>>, vector<1x128x384xbf16>
    %164 = vector.shape_cast %163 : vector<1x128x384xbf16> to vector<128x384xbf16>
    %cst_73 = arith.constant dense<0.000000e+00> : vector<8x384xf32>
    %165 = tpu.matmul %162, %164, %cst_73 {dimension_numbers = #tpu.dot_dimension_numbers<[1], [0], [0], [1], [0, 0, 1, 1], [], []>} : vector<8x128xbf16>, vector<128x384xbf16>, vector<8x384xf32> -> vector<8x384xf32>
    %c1_74 = arith.constant 1 : index
    %c0_75 = arith.constant 0 : index
    %c0_76 = arith.constant 0 : index
    %166 = vector.load %arg5[%c1_74, %c0_75, %c0_76] : memref<2x1x384xf32, #tpu.memory_space<vmem>>, vector<1x1x384xf32>
    %167 = vector.shape_cast %166 : vector<1x1x384xf32> to vector<1x384xf32>
    %168 = vector.broadcast %167 : vector<1x384xf32> to vector<8x384xf32>
    %169 = arith.addf %165, %168 : vector<8x384xf32>
    %170 = vector.extract_strided_slice %169 {offsets = [0, 0], sizes = [8, 128], strides = [1, 1]} : vector<8x384xf32> to vector<8x128xf32>
    %171 = vector.shape_cast %170 : vector<8x128xf32> to vector<2x4x4x32xf32>
    %172 = tpu.transpose %171, [0, 2, 1, 3] : vector<2x4x4x32xf32> -> vector<2x4x4x32xf32>
    %173 = vector.shape_cast %172 : vector<2x4x4x32xf32> to vector<8x4x32xf32>
    %174 = arith.truncf %173 : vector<8x4x32xf32> to vector<8x4x32xbf16>
    %175 = vector.extract_strided_slice %169 {offsets = [0, 128], sizes = [8, 128], strides = [1, 1]} : vector<8x384xf32> to vector<8x128xf32>
    %176 = vector.shape_cast %175 : vector<8x128xf32> to vector<2x4x4x32xf32>
    %177 = tpu.transpose %176, [0, 2, 1, 3] : vector<2x4x4x32xf32> -> vector<2x4x4x32xf32>
    %178 = vector.shape_cast %177 : vector<2x4x4x32xf32> to vector<8x4x32xf32>
    %179 = arith.truncf %178 : vector<8x4x32xf32> to vector<8x4x32xbf16>
    %180 = vector.extract_strided_slice %169 {offsets = [0, 256], sizes = [8, 128], strides = [1, 1]} : vector<8x384xf32> to vector<8x128xf32>
    %181 = vector.shape_cast %180 : vector<8x128xf32> to vector<2x4x4x32xf32>
    %182 = tpu.transpose %181, [0, 2, 1, 3] : vector<2x4x4x32xf32> -> vector<2x4x4x32xf32>
    %183 = vector.shape_cast %182 : vector<2x4x4x32xf32> to vector<8x4x32xf32>
    %184 = arith.truncf %183 : vector<8x4x32xf32> to vector<8x4x32xbf16>
    "tpu.trace_start"() <{level = 10 : i32, message = "bqd,bkd->bqk"}> : () -> ()
    %cst_77 = arith.constant dense<0.000000e+00> : vector<8x4x4xf32>
    %185 = tpu.matmul %174, %179, %cst_77 {dimension_numbers = #tpu.dot_dimension_numbers<[2], [2], [1], [1], [0, 0, 0, 1, 1, 1], [0], [0]>} : vector<8x4x32xbf16>, vector<8x4x32xbf16>, vector<8x4x4xf32> -> vector<8x4x4xf32>
    "tpu.trace_stop"() : () -> ()
    %cst_78 = arith.constant 0.176776692 : f32
    %186 = vector.broadcast %cst_78 : f32 to vector<8x4x4xf32>
    %187 = arith.mulf %185, %186 : vector<8x4x4xf32>
    %cst_79 = arith.constant -1.000000e+30 : f32
    %188 = vector.shape_cast %4 : vector<1x4x4xi1> to vector<1x4x4xi1>
    %189 = vector.broadcast %188 : vector<1x4x4xi1> to vector<8x4x4xi1>
    %190 = vector.broadcast %cst_79 : f32 to vector<8x4x4xf32>
    %191 = arith.select %189, %187, %190 : vector<8x4x4xi1>, vector<8x4x4xf32>
    %cst_80 = arith.constant dense<0xFF800000> : vector<8x4xf32>
    %192 = vector.multi_reduction <maximumf>, %191, %cst_80 [2] : vector<8x4x4xf32> to vector<8x4xf32>
    %193 = vector.shape_cast %192 : vector<8x4xf32> to vector<8x4x1xf32>
    %194 = vector.broadcast %193 : vector<8x4x1xf32> to vector<8x4x4xf32>
    %195 = arith.subf %191, %194 : vector<8x4x4xf32>
    %196 = math.exp %195 : vector<8x4x4xf32>
    %cst_81 = arith.constant dense<0.000000e+00> : vector<8x4xf32>
    %197 = vector.multi_reduction <add>, %196, %cst_81 [2] : vector<8x4x4xf32> to vector<8x4xf32>
    %198 = vector.shape_cast %197 : vector<8x4xf32> to vector<8x4x1xf32>
    %199 = tpu.reciprocal %198 {approx = true} : vector<8x4x1xf32> -> vector<8x4x1xf32>
    %200 = vector.broadcast %199 : vector<8x4x1xf32> to vector<8x4x4xf32>
    %201 = arith.mulf %196, %200 : vector<8x4x4xf32>
    %202 = arith.truncf %201 : vector<8x4x4xf32> to vector<8x4x4xbf16>
    "tpu.trace_start"() <{level = 10 : i32, message = "bqk,bkd->bqd"}> : () -> ()
    %cst_82 = arith.constant dense<0.000000e+00> : vector<8x4x32xf32>
    %203 = tpu.matmul %202, %184, %cst_82 {dimension_numbers = #tpu.dot_dimension_numbers<[2], [1], [1], [2], [0, 0, 0, 1, 1, 2], [0], [0]>} : vector<8x4x4xbf16>, vector<8x4x32xbf16>, vector<8x4x32xf32> -> vector<8x4x32xf32>
    "tpu.trace_stop"() : () -> ()
    %204 = vector.shape_cast %203 : vector<8x4x32xf32> to vector<2x4x4x32xf32>
    %205 = tpu.transpose %204, [0, 2, 1, 3] : vector<2x4x4x32xf32> -> vector<2x4x4x32xf32>
    %206 = vector.shape_cast %205 : vector<2x4x4x32xf32> to vector<8x128xf32>
    %207 = arith.truncf %206 : vector<8x128xf32> to vector<8x128xbf16>
    %c1_83 = arith.constant 1 : index
    %c0_84 = arith.constant 0 : index
    %c0_85 = arith.constant 0 : index
    %208 = vector.load %arg6[%c1_83, %c0_84, %c0_85] : memref<2x128x128xbf16, #tpu.memory_space<vmem>>, vector<1x128x128xbf16>
    %209 = vector.shape_cast %208 : vector<1x128x128xbf16> to vector<128x128xbf16>
    %cst_86 = arith.constant dense<0.000000e+00> : vector<8x128xf32>
    %210 = tpu.matmul %207, %209, %cst_86 {dimension_numbers = #tpu.dot_dimension_numbers<[1], [0], [0], [1], [0, 0, 1, 1], [], []>} : vector<8x128xbf16>, vector<128x128xbf16>, vector<8x128xf32> -> vector<8x128xf32>
    %c1_87 = arith.constant 1 : index
    %c0_88 = arith.constant 0 : index
    %c0_89 = arith.constant 0 : index
    %211 = vector.load %arg7[%c1_87, %c0_88, %c0_89] : memref<2x1x128xf32, #tpu.memory_space<vmem>>, vector<1x1x128xf32>
    %212 = vector.shape_cast %211 : vector<1x1x128xf32> to vector<1x128xf32>
    %213 = vector.broadcast %212 : vector<1x128xf32> to vector<8x128xf32>
    %214 = arith.addf %210, %213 : vector<8x128xf32>
    %215 = arith.addf %133, %214 : vector<8x128xf32>
    %c1_90 = arith.constant 1 : index
    %c0_91 = arith.constant 0 : index
    %c0_92 = arith.constant 0 : index
    %216 = vector.load %arg8[%c1_90, %c0_91, %c0_92] : memref<2x1x128xf32, #tpu.memory_space<vmem>>, vector<1x1x128xf32>
    %217 = vector.shape_cast %216 : vector<1x1x128xf32> to vector<1x128xf32>
    %c1_93 = arith.constant 1 : index
    %c0_94 = arith.constant 0 : index
    %c0_95 = arith.constant 0 : index
    %218 = vector.load %arg9[%c1_93, %c0_94, %c0_95] : memref<2x1x128xf32, #tpu.memory_space<vmem>>, vector<1x1x128xf32>
    %219 = vector.shape_cast %218 : vector<1x1x128xf32> to vector<1x128xf32>
    %cst_96 = arith.constant dense<0.000000e+00> : vector<8xf32>
    %220 = vector.multi_reduction <add>, %215, %cst_96 [1] : vector<8x128xf32> to vector<8xf32>
    %221 = vector.shape_cast %220 : vector<8xf32> to vector<8x1xf32>
    %222 = arith.mulf %215, %215 : vector<8x128xf32>
    %cst_97 = arith.constant dense<0.000000e+00> : vector<8xf32>
    %223 = vector.multi_reduction <add>, %222, %cst_97 [1] : vector<8x128xf32> to vector<8xf32>
    %224 = vector.shape_cast %223 : vector<8xf32> to vector<8x1xf32>
    %cst_98 = arith.constant 1.280000e+02 : f32
    %225 = vector.broadcast %cst_98 : f32 to vector<8x1xf32>
    %226 = arith.divf %221, %225 : vector<8x1xf32>
    %cst_99 = arith.constant 1.280000e+02 : f32
    %227 = vector.broadcast %cst_99 : f32 to vector<8x1xf32>
    %228 = arith.divf %224, %227 : vector<8x1xf32>
    %229 = arith.mulf %226, %226 : vector<8x1xf32>
    %230 = arith.subf %228, %229 : vector<8x1xf32>
    %cst_100 = arith.constant 0.000000e+00 : f32
    %231 = vector.broadcast %cst_100 : f32 to vector<8x1xf32>
    %232 = arith.maximumf %230, %231 : vector<8x1xf32>
    %233 = vector.broadcast %226 : vector<8x1xf32> to vector<8x128xf32>
    %234 = arith.subf %215, %233 : vector<8x128xf32>
    %cst_101 = arith.constant 9.99999974E-6 : f32
    %235 = vector.broadcast %cst_101 : f32 to vector<8x1xf32>
    %236 = arith.addf %232, %235 : vector<8x1xf32>
    %237 = math.rsqrt %236 : vector<8x1xf32>
    %238 = vector.broadcast %237 : vector<8x1xf32> to vector<8x128xf32>
    %239 = arith.mulf %234, %238 : vector<8x128xf32>
    %240 = vector.broadcast %217 : vector<1x128xf32> to vector<8x128xf32>
    %241 = arith.mulf %239, %240 : vector<8x128xf32>
    %242 = vector.broadcast %219 : vector<1x128xf32> to vector<8x128xf32>
    %243 = arith.addf %241, %242 : vector<8x128xf32>
    %244 = arith.truncf %243 : vector<8x128xf32> to vector<8x128xbf16>
    %c1_102 = arith.constant 1 : index
    %c0_103 = arith.constant 0 : index
    %c0_104 = arith.constant 0 : index
    %245 = vector.load %arg10[%c1_102, %c0_103, %c0_104] : memref<2x128x512xbf16, #tpu.memory_space<vmem>>, vector<1x128x512xbf16>
    %246 = vector.shape_cast %245 : vector<1x128x512xbf16> to vector<128x512xbf16>
    %cst_105 = arith.constant dense<0.000000e+00> : vector<8x512xf32>
    %247 = tpu.matmul %244, %246, %cst_105 {dimension_numbers = #tpu.dot_dimension_numbers<[1], [0], [0], [1], [0, 0, 1, 1], [], []>} : vector<8x128xbf16>, vector<128x512xbf16>, vector<8x512xf32> -> vector<8x512xf32>
    %c1_106 = arith.constant 1 : index
    %c0_107 = arith.constant 0 : index
    %c0_108 = arith.constant 0 : index
    %248 = vector.load %arg11[%c1_106, %c0_107, %c0_108] : memref<2x1x512xf32, #tpu.memory_space<vmem>>, vector<1x1x512xf32>
    %249 = vector.shape_cast %248 : vector<1x1x512xf32> to vector<1x512xf32>
    %250 = vector.broadcast %249 : vector<1x512xf32> to vector<8x512xf32>
    %251 = arith.addf %247, %250 : vector<8x512xf32>
    %cst_109 = arith.constant 0.000000e+00 : f32
    %252 = vector.broadcast %cst_109 : f32 to vector<8x512xf32>
    %253 = arith.maximumf %251, %252 : vector<8x512xf32>
    %254 = arith.truncf %253 : vector<8x512xf32> to vector<8x512xbf16>
    %c1_110 = arith.constant 1 : index
    %c0_111 = arith.constant 0 : index
    %c0_112 = arith.constant 0 : index
    %255 = vector.load %arg12[%c1_110, %c0_111, %c0_112] : memref<2x512x128xbf16, #tpu.memory_space<vmem>>, vector<1x512x128xbf16>
    %256 = vector.shape_cast %255 : vector<1x512x128xbf16> to vector<512x128xbf16>
    %cst_113 = arith.constant dense<0.000000e+00> : vector<8x128xf32>
    %257 = tpu.matmul %254, %256, %cst_113 {dimension_numbers = #tpu.dot_dimension_numbers<[1], [0], [0], [1], [0, 0, 1, 1], [], []>} : vector<8x512xbf16>, vector<512x128xbf16>, vector<8x128xf32> -> vector<8x128xf32>
    %c1_114 = arith.constant 1 : index
    %c0_115 = arith.constant 0 : index
    %c0_116 = arith.constant 0 : index
    %258 = vector.load %arg13[%c1_114, %c0_115, %c0_116] : memref<2x1x128xf32, #tpu.memory_space<vmem>>, vector<1x1x128xf32>
    %259 = vector.shape_cast %258 : vector<1x1x128xf32> to vector<1x128xf32>
    %260 = vector.broadcast %259 : vector<1x128xf32> to vector<8x128xf32>
    %261 = arith.addf %257, %260 : vector<8x128xf32>
    %262 = arith.addf %215, %261 : vector<8x128xf32>
    %c0_117 = arith.constant 0 : index
    %c0_118 = arith.constant 0 : index
    %263 = vector.load %arg14[%c0_117, %c0_118] : memref<1x128xf32, #tpu.memory_space<vmem>>, vector<1x128xf32>
    %c0_119 = arith.constant 0 : index
    %c0_120 = arith.constant 0 : index
    %264 = vector.load %arg15[%c0_119, %c0_120] : memref<1x128xf32, #tpu.memory_space<vmem>>, vector<1x128xf32>
    %cst_121 = arith.constant dense<0.000000e+00> : vector<8xf32>
    %265 = vector.multi_reduction <add>, %262, %cst_121 [1] : vector<8x128xf32> to vector<8xf32>
    %266 = vector.shape_cast %265 : vector<8xf32> to vector<8x1xf32>
    %267 = arith.mulf %262, %262 : vector<8x128xf32>
    %cst_122 = arith.constant dense<0.000000e+00> : vector<8xf32>
    %268 = vector.multi_reduction <add>, %267, %cst_122 [1] : vector<8x128xf32> to vector<8xf32>
    %269 = vector.shape_cast %268 : vector<8xf32> to vector<8x1xf32>
    %cst_123 = arith.constant 1.280000e+02 : f32
    %270 = vector.broadcast %cst_123 : f32 to vector<8x1xf32>
    %271 = arith.divf %266, %270 : vector<8x1xf32>
    %cst_124 = arith.constant 1.280000e+02 : f32
    %272 = vector.broadcast %cst_124 : f32 to vector<8x1xf32>
    %273 = arith.divf %269, %272 : vector<8x1xf32>
    %274 = arith.mulf %271, %271 : vector<8x1xf32>
    %275 = arith.subf %273, %274 : vector<8x1xf32>
    %cst_125 = arith.constant 0.000000e+00 : f32
    %276 = vector.broadcast %cst_125 : f32 to vector<8x1xf32>
    %277 = arith.maximumf %275, %276 : vector<8x1xf32>
    %278 = vector.broadcast %271 : vector<8x1xf32> to vector<8x128xf32>
    %279 = arith.subf %262, %278 : vector<8x128xf32>
    %cst_126 = arith.constant 9.99999974E-6 : f32
    %280 = vector.broadcast %cst_126 : f32 to vector<8x1xf32>
    %281 = arith.addf %277, %280 : vector<8x1xf32>
    %282 = math.rsqrt %281 : vector<8x1xf32>
    %283 = vector.broadcast %282 : vector<8x1xf32> to vector<8x128xf32>
    %284 = arith.mulf %279, %283 : vector<8x128xf32>
    %285 = vector.broadcast %263 : vector<1x128xf32> to vector<8x128xf32>
    %286 = arith.mulf %284, %285 : vector<8x128xf32>
    %287 = vector.broadcast %264 : vector<1x128xf32> to vector<8x128xf32>
    %288 = arith.addf %286, %287 : vector<8x128xf32>
    %289 = arith.truncf %288 : vector<8x128xf32> to vector<8x128xbf16>
    %c0_127 = arith.constant 0 : index
    %c0_128 = arith.constant 0 : index
    %290 = vector.load %arg16[%c0_127, %c0_128] : memref<8x128xbf16, #tpu.memory_space<vmem>>, vector<8x128xbf16>
    tpu.vector_store %arg16[%c0_127, %c0_128], %289 {strides = array<i32>} : memref<8x128xbf16, #tpu.memory_space<vmem>>, vector<8x128xbf16>,
    return
  }
  func.func @transform_0(%arg0: i32) -> (i32, i32) {
    %c0_i32 = arith.constant 0 : i32
    %c0_i32_0 = arith.constant 0 : i32
    return %arg0, %c0_i32 : i32, i32
  }
  func.func @transform_1(%arg0: i32) -> (i32, i32, i32) {
    %c0_i32 = arith.constant 0 : i32
    %c0_i32_0 = arith.constant 0 : i32
    %c0_i32_1 = arith.constant 0 : i32
    %c0_i32_2 = arith.constant 0 : i32
    return %c0_i32, %c0_i32_0, %c0_i32_1 : i32, i32, i32
  }
  func.func @transform_2(%arg0: i32) -> (i32, i32, i32) {
    %c0_i32 = arith.constant 0 : i32
    %c0_i32_0 = arith.constant 0 : i32
    %c0_i32_1 = arith.constant 0 : i32
    %c0_i32_2 = arith.constant 0 : i32
    return %c0_i32, %c0_i32_0, %c0_i32_1 : i32, i32, i32
  }
  func.func @transform_3(%arg0: i32) -> (i32, i32, i32) {
    %c0_i32 = arith.constant 0 : i32
    %c0_i32_0 = arith.constant 0 : i32
    %c0_i32_1 = arith.constant 0 : i32
    %c0_i32_2 = arith.constant 0 : i32
    return %c0_i32, %c0_i32_0, %c0_i32_1 : i32, i32, i32
  }
  func.func @transform_4(%arg0: i32) -> (i32, i32, i32) {
    %c0_i32 = arith.constant 0 : i32
    %c0_i32_0 = arith.constant 0 : i32
    %c0_i32_1 = arith.constant 0 : i32
    %c0_i32_2 = arith.constant 0 : i32
    return %c0_i32, %c0_i32_0, %c0_i32_1 : i32, i32, i32
  }
  func.func @transform_5(%arg0: i32) -> (i32, i32, i32) {
    %c0_i32 = arith.constant 0 : i32
    %c0_i32_0 = arith.constant 0 : i32
    %c0_i32_1 = arith.constant 0 : i32
    %c0_i32_2 = arith.constant 0 : i32
    return %c0_i32, %c0_i32_0, %c0_i32_1 : i32, i32, i32
  }
  func.func @transform_6(%arg0: i32) -> (i32, i32, i32) {
    %c0_i32 = arith.constant 0 : i32
    %c0_i32_0 = arith.constant 0 : i32
    %c0_i32_1 = arith.constant 0 : i32
    %c0_i32_2 = arith.constant 0 : i32
    return %c0_i32, %c0_i32_0, %c0_i32_1 : i32, i32, i32
  }
  func.func @transform_7(%arg0: i32) -> (i32, i32, i32) {
    %c0_i32 = arith.constant 0 : i32
    %c0_i32_0 = arith.constant 0 : i32
    %c0_i32_1 = arith.constant 0 : i32
    %c0_i32_2 = arith.constant 0 : i32
    return %c0_i32, %c0_i32_0, %c0_i32_1 : i32, i32, i32
  }
  func.func @transform_8(%arg0: i32) -> (i32, i32, i32) {
    %c0_i32 = arith.constant 0 : i32
    %c0_i32_0 = arith.constant 0 : i32
    %c0_i32_1 = arith.constant 0 : i32
    %c0_i32_2 = arith.constant 0 : i32
    return %c0_i32, %c0_i32_0, %c0_i32_1 : i32, i32, i32
  }
  func.func @transform_9(%arg0: i32) -> (i32, i32, i32) {
    %c0_i32 = arith.constant 0 : i32
    %c0_i32_0 = arith.constant 0 : i32
    %c0_i32_1 = arith.constant 0 : i32
    %c0_i32_2 = arith.constant 0 : i32
    return %c0_i32, %c0_i32_0, %c0_i32_1 : i32, i32, i32
  }
  func.func @transform_10(%arg0: i32) -> (i32, i32, i32) {
    %c0_i32 = arith.constant 0 : i32
    %c0_i32_0 = arith.constant 0 : i32
    %c0_i32_1 = arith.constant 0 : i32
    %c0_i32_2 = arith.constant 0 : i32
    return %c0_i32, %c0_i32_0, %c0_i32_1 : i32, i32, i32
  }
  func.func @transform_11(%arg0: i32) -> (i32, i32, i32) {
    %c0_i32 = arith.constant 0 : i32
    %c0_i32_0 = arith.constant 0 : i32
    %c0_i32_1 = arith.constant 0 : i32
    %c0_i32_2 = arith.constant 0 : i32
    return %c0_i32, %c0_i32_0, %c0_i32_1 : i32, i32, i32
  }
  func.func @transform_12(%arg0: i32) -> (i32, i32, i32) {
    %c0_i32 = arith.constant 0 : i32
    %c0_i32_0 = arith.constant 0 : i32
    %c0_i32_1 = arith.constant 0 : i32
    %c0_i32_2 = arith.constant 0 : i32
    return %c0_i32, %c0_i32_0, %c0_i32_1 : i32, i32, i32
  }
  func.func @transform_13(%arg0: i32) -> (i32, i32) {
    %c0_i32 = arith.constant 0 : i32
    %c0_i32_0 = arith.constant 0 : i32
    %c0_i32_1 = arith.constant 0 : i32
    return %c0_i32, %c0_i32_0 : i32, i32
  }
  func.func @transform_14(%arg0: i32) -> (i32, i32) {
    %c0_i32 = arith.constant 0 : i32
    %c0_i32_0 = arith.constant 0 : i32
    %c0_i32_1 = arith.constant 0 : i32
    return %c0_i32, %c0_i32_0 : i32, i32
  }
  func.func @transform_15(%arg0: i32) -> (i32, i32) {
    %c0_i32 = arith.constant 0 : i32
    %c0_i32_0 = arith.constant 0 : i32
    return %arg0, %c0_i32 : i32, i32
  }
}

</mosaic_0001>

<bundles_post_ra>
// kernel: tpu_custom_call.1
= control target key start
LH: loop header
LB: loop body
LE: loop exit
PB: predicated region body
PF: predicated region fallthrough
CT: control target
= control target key end

     0   :  { %20 = vsyncpa [#allocation3], 0  ;;  %s7427_s0 = inlined_call_operand.hbm [shape: f32[8,128], index: 0, kind: input, shape index: {}]   ;;  %s7428_s1 = inlined_call_operand.hbm [shape: f32[2,1,128], index: 1, kind: input, shape index: {}]   ;;  %s7429_s2 = inlined_call_operand.hbm [shape: f32[2,1,128], index: 2, kind: input, shape index: {}]   ;;  %s7430_s3 = inlined_call_operand.hbm [shape: bf16[2,128,384], index: 3, kind: input, shape index: {}]   ;;  %s7431_s4 = inlined_call_operand.vmem [shape: f32[2,1,384], index: 4, kind: input, shape index: {}]   ;;  %s7432_s5 = inlined_call_operand.hbm [shape: bf16[2,128,128], index: 5, kind: input, shape index: {}]   ;;  %s7433_s6 = inlined_call_operand.vmem [shape: f32[2,1,128], index: 6, kind: input, shape index: {}]   ;;  %s7434_s7 = inlined_call_operand.vmem [shape: f32[2,1,128], index: 7, kind: input, shape index: {}]   ;;  %s7435_s8 = inlined_call_operand.vmem [shape: f32[2,1,128], index: 8, kind: input, shape index: {}]   ;;  %s7436_s9 = inlined_call_operand.hbm [shape: bf16[2,128,512], index: 9, kind: input, shape index: {}]   ;;  %s7437_s10 = inlined_call_operand.vmem [shape: f32[2,1,512], index: 10, kind: input, shape index: {}]   ;;  %s7438_s11 = inlined_call_operand.hbm [shape: bf16[2,512,128], index: 11, kind: input, shape index: {}]   ;;  %s7439_s12 = inlined_call_operand.vmem [shape: f32[2,1,128], index: 12, kind: input, shape index: {}]   ;;  %s7440_s13 = inlined_call_operand.vmem [shape: f32[1,128], index: 13, kind: input, shape index: {}]   ;;  %s7441_s14 = inlined_call_operand.vmem [shape: f32[1,128], index: 14, kind: input, shape index: {}]   ;;  %s7442_s15 = inlined_call_operand.hbm [shape: bf16[8,128], index: 15, kind: output, shape index: {}]  }
   0x1   :  { %21 = vsyncpa [#allocation6], 0 }
   0x2   :  { %22 = vsyncpa [#allocation9], 0 }
   0x3   :  { %23 = vsyncpa [#allocation12], 0 }
   0x4   :  { %24 = vsyncpa [#allocation4], 0  ;;  %s6549_s18 = smov [#allocation5]   ;;  %s6363_s22 = scalar_lea.hbm %s7428_s1, 32 }
   0x5   :  { %s40_s19 = sshll.u32 %s6549_s18, 4  ;;  %p6364_p0 = scmp.ne.s32.totalorder %s7428_s1, %s6363_s22  ;;  %s41_s19 = int_to_ptr.vmem [resolvable:$true] %s40_s19 }
   0x6   :  { %p6367_p1 = scmp.lt.u32.totalorder %s6363_s22, %s7428_s1 }
   0x8   :  { %p6369_p2 = pnand %p6367_p1, %p6364_p0 }
   0xa   :  { %6372 = shalt.err (!%p6369_p2)
}
   0xb   :  { %s6373_s27 = scalar_lea.vmem %s41_s19, 32  ;;  %p6378_p4 = scmp.lt.s32.totalorder %s41_s19, %s41_s19 }
   0xc   :  { %p6374_p3 = scmp.ne.s32.totalorder %s41_s19, %s6373_s27  ;;  %p6379_p5 = scmp.lt.s32.totalorder %s6373_s27, %s6373_s27 }
   0xe   :  { %p6380_p6 = por %p6379_p5, %p6378_p4 }
  0x10   :  { %p6381_p7 = pnand %p6380_p6, %p6374_p3 }
  0x12   :  { %6384 = shalt.err (!%p6381_p7)
}
  0x13   :  { %s7444_s28 = smov 16   ;;  %s7443_s29 = smov 1  }
  0x14   :  { %46 = dma.hbm_to_vmem [thread:$0]  %s7428_s1, 32, %s41_s19, [#allocation6], %s7444_s28, %s7444_s28, %s7443_s29  }
  0x15   :  { %s6552_s17 = smov [#allocation8]   ;;  %s6385_s22 = scalar_lea.hbm %s7430_s3, 6144 }
  0x16   :  { %s64_s18 = sshll.u32 %s6552_s17, 4  ;;  %p6386_p8 = scmp.ne.s32.totalorder %s7430_s3, %s6385_s22  ;;  %s65_s18 = int_to_ptr.vmem [resolvable:$true] %s64_s18 }
  0x17   :  { %p6389_p9 = scmp.lt.u32.totalorder %s6385_s22, %s7430_s3 }
  0x19   :  { %p6391_p10 = pnand %p6389_p9, %p6386_p8 }
  0x1b   :  { %6394 = shalt.err (!%p6391_p10)
}
  0x1c   :  { %s6395_s27 = scalar_lea.vmem %s65_s18, 6144  ;;  %p6400_p12 = scmp.lt.s32.totalorder %s65_s18, %s65_s18 }
  0x1d   :  { %p6396_p11 = scmp.ne.s32.totalorder %s65_s18, %s6395_s27  ;;  %p6401_p13 = scmp.lt.s32.totalorder %s6395_s27, %s6395_s27 }
  0x1f   :  { %p6402_p0 = por %p6401_p13, %p6400_p12 }
  0x21   :  { %p6403_p1 = pnand %p6402_p0, %p6396_p11 }
  0x23   :  { %6406 = shalt.err (!%p6403_p1)
}
  0x24   :  { %s6553_s1 = smov 192   ;;  %s6554_s19 = smov 12  }
  0x25   :  { %70 = dma.hbm_to_vmem [thread:$0]  %s7430_s3, 6144, %s65_s18, [#allocation9], %s6553_s1, %s6553_s1, %s6554_s19  }
  0x26   :  { %s6555_s17 = smov [#allocation11]   ;;  %s6556_s21 = smov [#allocation2]  }
  0x27   :  { %s96_s20 = sshll.u32 %s6555_s17, 4  ;;  %s31_s22 = sshll.u32 %s6556_s21, 4  ;;  %s97_s20 = int_to_ptr.vmem [resolvable:$true] %s96_s20  ;;  %s32_s22 = int_to_ptr.vmem [resolvable:$true] %s31_s22 }
  0x28   :  { %s6407_s25 = scalar_lea.hbm %s7436_s9, 8192 }
  0x29   :  { %p6408_p2 = scmp.ne.s32.totalorder %s7436_s9, %s6407_s25  ;;  %p6411_p3 = scmp.lt.u32.totalorder %s6407_s25, %s7436_s9 }
  0x2b   :  { %p6413_p4 = pnand %p6411_p3, %p6408_p2 }
  0x2d   :  { %6416 = shalt.err (!%p6413_p4)
}
  0x2e   :  { %s6417_s3 = scalar_lea.vmem %s97_s20, 8192  ;;  %p6422_p6 = scmp.lt.s32.totalorder %s97_s20, %s97_s20 }
  0x2f   :  { %p6418_p5 = scmp.ne.s32.totalorder %s97_s20, %s6417_s3  ;;  %p6423_p7 = scmp.lt.s32.totalorder %s6417_s3, %s6417_s3 }
  0x31   :  { %p6424_p8 = por %p6423_p7, %p6422_p6 }
  0x33   :  { %p6425_p9 = pnand %p6424_p8, %p6418_p5 }
  0x35   :  { %6428 = shalt.err (!%p6425_p9)
}
  0x36   :  { %s6557_s18 = smov 256   ;;  %s7446_s1 = smov 16  }
  0x37   :  { %102 = dma.hbm_to_vmem [thread:$0]  %s7436_s9, 8192, %s97_s20, [#allocation12], %s6557_s18, %s6557_s18, %s7446_s1  }
  0x38   :  { %s6429_s28 = scalar_lea.hbm %s7427_s0, 128 }
  0x39   :  { %p6430_p10 = scmp.ne.s32.totalorder %s7427_s0, %s6429_s28  ;;  %p6433_p11 = scmp.lt.u32.totalorder %s6429_s28, %s7427_s0 }
  0x3b   :  { %p6435_p12 = pnand %p6433_p11, %p6430_p10 }
  0x3d   :  { %6438 = shalt.err (!%p6435_p12)
}
  0x3e   :  { %s6439_s25 = scalar_lea.vmem %s32_s22, 128  ;;  %p6444_p0 = scmp.lt.s32.totalorder %s32_s22, %s32_s22 }
  0x3f   :  { %p6440_p13 = scmp.ne.s32.totalorder %s32_s22, %s6439_s25  ;;  %p6445_p1 = scmp.lt.s32.totalorder %s6439_s25, %s6439_s25 }
  0x41   :  { %p6446_p2 = por %p6445_p1, %p6444_p0 }
  0x43   :  { %p6447_p3 = pnand %p6446_p2, %p6440_p13 }
  0x45   :  { %6450 = shalt.err (!%p6447_p3)
}
  0x46   :  { %34 = dma.hbm_to_vmem [thread:$0]  %s7427_s0, 128, %s32_s22, [#allocation3]  }
  0x47   :  { %s6558_s26 = smov [#allocation7]   ;;  %s6559_s3 = smov [#allocation10]  }
  0x48   :  { %s52_s27 = sshll.u32 %s6558_s26, 4  ;;  %s78_s18 = sshll.u32 %s6559_s3, 4  ;;  %s53_s27 = int_to_ptr.vmem [resolvable:$true] %s52_s27  ;;  %s79_s18 = int_to_ptr.vmem [resolvable:$true] %s78_s18 }
  0x49   :  { %s6451_s16 = scalar_lea.hbm %s7429_s2, 32 }
  0x4a   :  { %p6452_p4 = scmp.ne.s32.totalorder %s7429_s2, %s6451_s16  ;;  %p6455_p5 = scmp.lt.u32.totalorder %s6451_s16, %s7429_s2 }
  0x4c   :  { %p6457_p6 = pnand %p6455_p5, %p6452_p4 }
  0x4e   :  { %6460 = shalt.err (!%p6457_p6)
}
  0x4f   :  { %s6461_s0 = scalar_lea.vmem %s53_s27, 32  ;;  %p6466_p8 = scmp.lt.s32.totalorder %s53_s27, %s53_s27 }
  0x50   :  { %p6462_p7 = scmp.ne.s32.totalorder %s53_s27, %s6461_s0  ;;  %p6467_p9 = scmp.lt.s32.totalorder %s6461_s0, %s6461_s0 }
  0x52   :  { %p6468_p10 = por %p6467_p9, %p6466_p8 }
  0x54   :  { %p6469_p11 = pnand %p6468_p10, %p6462_p7 }
  0x56   :  { %6472 = shalt.err (!%p6469_p11)
}
  0x57   :  { %s7447_s22 = smov 1   ;;  %s6473_s20 = scalar_lea.hbm %s7432_s5, 2048 }
  0x58   :  { %58 = dma.hbm_to_vmem [thread:$0]  %s7429_s2, 32, %s53_s27, [#allocation6], %s7446_s1, %s7446_s1, %s7447_s22  }
  0x59   :  { %p6474_p12 = scmp.ne.s32.totalorder %s7432_s5, %s6473_s20  ;;  %p6477_p13 = scmp.lt.u32.totalorder %s6473_s20, %s7432_s5 }
  0x5b   :  { %p6479_p0 = pnand %p6477_p13, %p6474_p12 }
  0x5d   :  { %6482 = shalt.err (!%p6479_p0)
}
  0x5e   :  { %s6483_s16 = scalar_lea.vmem %s79_s18, 2048  ;;  %p6488_p2 = scmp.lt.s32.totalorder %s79_s18, %s79_s18 }
  0x5f   :  { %p6484_p1 = scmp.ne.s32.totalorder %s79_s18, %s6483_s16  ;;  %p6489_p3 = scmp.lt.s32.totalorder %s6483_s16, %s6483_s16 }
  0x61   :  { %p6490_p4 = por %p6489_p3, %p6488_p2 }
  0x63   :  { %p6491_p5 = pnand %p6490_p4, %p6484_p1 }
  0x65   :  { %6494 = shalt.err (!%p6491_p5)
}
  0x66   :  { %s6560_s2 = smov 64   ;;  %s6561_s1 = smov 4  }
  0x67   :  { %84 = dma.hbm_to_vmem [thread:$0]  %s7432_s5, 2048, %s79_s18, [#allocation9], %s6560_s2, %s6560_s2, %s6561_s1  }
  0x68   :  { %s6562_s28 = smov [#allocation13]   ;;  %s6495_s22 = scalar_lea.hbm %s7438_s11, 8192 }
  0x69   :  { %s110_s29 = sshll.u32 %s6562_s28, 4  ;;  %p6496_p6 = scmp.ne.s32.totalorder %s7438_s11, %s6495_s22  ;;  %s111_s29 = int_to_ptr.vmem [resolvable:$true] %s110_s29 }
  0x6a   :  { %p6499_p7 = scmp.lt.u32.totalorder %s6495_s22, %s7438_s11 }
  0x6c   :  { %p6501_p8 = pnand %p6499_p7, %p6496_p6 }
  0x6e   :  { %6504 = shalt.err (!%p6501_p8)
}
  0x6f   :  { %s6505_s20 = scalar_lea.vmem %s111_s29, 8192  ;;  %p6510_p10 = scmp.lt.s32.totalorder %s111_s29, %s111_s29 }
  0x70   :  { %p6506_p9 = scmp.ne.s32.totalorder %s111_s29, %s6505_s20  ;;  %p6511_p11 = scmp.lt.s32.totalorder %s6505_s20, %s6505_s20 }
  0x72   :  { %p6512_p12 = por %p6511_p11, %p6510_p10 }
  0x74   :  { %p6513_p13 = pnand %p6512_p12, %p6506_p9 }
  0x76   :  { %6516 = shalt.err (!%p6513_p13)
}
  0x77   :  { %116 = dma.hbm_to_vmem [thread:$0]  %s7438_s11, 8192, %s111_s29, [#allocation12], %s6560_s2, %s6560_s2, %s6561_s1  }
  0x78   :  { %6539 = dma.done.wait [#allocation3], 128  }
  0x79   :  { %6540 = vsyncadd [#allocation3], 4294967168 }
  0x7a   :  { %6541 = dma.done.wait [#allocation6], 64  }
  0x7b   :  { %6542 = vsyncadd [#allocation6], 4294967232 }
  0x7c   :  { %6543 = dma.done.wait [#allocation9], 8192  }
  0x7d   :  { %6544 = vsyncadd [#allocation9], 4294959104 }
  0x7e   :  { %6545 = dma.done.wait [#allocation12], 16384  }
  0x7f   :  { %6546 = vsyncadd [#allocation12], 4294950912  ;;  %v6563_v0 = vmov 0.0   ;;  %v6747_v1 = vld [vmem:[#allocation2] sm:$0xff]  ;;  %v6048_v3 = vld [vmem:[#allocation8 + $0x4] ss:$12 sps:$4 sm:$0xff]   ;;  %v146_v44 = vlaneseq }
  0x80   :  { %5754 = vmatprep.subr.bf16.mxu1 %v6563_v0  ;;  %153 = vadd.xlane.f32.xlu0 %v6747_v1  ;;  %v155_v2 = vmul.f32 %v6747_v1, %v6747_v1  ;;  %v6050_v4 = vld [vmem:[#allocation8] ss:$12 sps:$4 sm:$0xff]   ;;  %v6051_v5 = vld [vmem:[#allocation8 + $0x8] ss:$12 sps:$4 sm:$0xff]   ;;  %v6054_v7 = vld [vmem:[#allocation8 + $0x18] ss:$12 sps:$4 sm:$0xff]  }
  0x81   :  { %360 = vmatprep.subr.bf16.mxu0 %v6048_v3  ;;  %5755 = vmatpush3.bf16.msra.mxu1 %v6051_v5  ;;  %v6052_v6 = vld [vmem:[#allocation8 + $0x1c] ss:$12 sps:$4 sm:$0xff]   ;;  %v6055_v8 = vld [vmem:[#allocation8 + $0x20] ss:$12 sps:$4 sm:$0xff]   ;;  %v6059_v11 = vld [vmem:[#allocation8 + $0x38] ss:$12 sps:$4 sm:$0xff]  }
  0x82   :  { %361 = vmatpush1.bf16.msra.mxu0 %v6050_v4  ;;  %5756 = vmatprep.subr.bf16.mxu1 %v6563_v0  ;;  %v6056_v9 = vld [vmem:[#allocation8 + $0x34] ss:$12 sps:$4 sm:$0xff]   ;;  %v6058_v10 = vld [vmem:[#allocation8 + $0x30] ss:$12 sps:$4 sm:$0xff]   ;;  %v6060_v12 = vld [vmem:[#allocation8 + $0x4c] ss:$12 sps:$4 sm:$0xff]  }
  0x83   :  { %362 = vmatprep.subr.bf16.mxu0 %v6052_v6  ;;  %v6062_v13 = vld [vmem:[#allocation8 + $0x48] ss:$12 sps:$4 sm:$0xff]   ;;  %v6063_v14 = vld [vmem:[#allocation8 + $0x50] ss:$12 sps:$4 sm:$0xff]   ;;  %v6066_v16 = vld [vmem:[#allocation8 + $0x60] ss:$12 sps:$4 sm:$0xff]  }
  0x84   :  { %156 = vadd.xlane.f32.xlu0 %v155_v2  ;;  %v6064_v15 = vld [vmem:[#allocation8 + $0x64] ss:$12 sps:$4 sm:$0xff]   ;;  %v6067_v17 = vld [vmem:[#allocation8 + $0x68] ss:$12 sps:$4 sm:$0xff]   ;;  %v6071_v20 = vld [vmem:[#allocation8 + $0x80] ss:$12 sps:$4 sm:$0xff]  }
  0x85   :  { %5757 = vmatpush3.bf16.msra.mxu1 %v6055_v8  ;;  %v6068_v18 = vld [vmem:[#allocation8 + $0x7c] ss:$12 sps:$4 sm:$0xff]   ;;  %v6070_v19 = vld [vmem:[#allocation8 + $0x78] ss:$12 sps:$4 sm:$0xff]   ;;  %v6072_v21 = vld [vmem:[#allocation8 + $0x94] ss:$12 sps:$4 sm:$0xff]  }
  0x86   :  { %363 = vmatpush1.bf16.msra.mxu0 %v6054_v7  ;;  %5758 = vmatprep.subr.bf16.mxu1 %v6563_v0  ;;  %v6074_v22 = vld [vmem:[#allocation8 + $0x90] ss:$12 sps:$4 sm:$0xff]   ;;  %v6075_v23 = vld [vmem:[#allocation8 + $0x98] ss:$12 sps:$4 sm:$0xff]   ;;  %v6564_v24 = vmov 0   ;;  %vm6565_vm0 = vmmov 0  }
  0x87   :  { %364 = vmatprep.subr.bf16.mxu0 %v6056_v9  ;;  %392 = vmatprep.mubr.bf16.mxu0 %v6564_v24  ;;  %v6076_v25 = vld [vmem:[#allocation8 + $0xac] ss:$12 sps:$4 sm:$0xff]   ;;  %v6078_v26 = vld [vmem:[#allocation8 + $0xa8] ss:$12 sps:$4 sm:$0xff]   ;;  %v6079_v27 = vld [vmem:[#allocation8 + $0xb0] ss:$12 sps:$4 sm:$0xff]  }
  0x88   :  { %5770 = vmatprep.mubr.msk.bf16.mxu1 %vm6565_vm0, %v6563_v0  ;;  %v5306_v38 = vld [vmem:[#allocation5] ss:$0 sm:$0xff]  ;;  %v5307_v40 = vld [vmem:[#allocation7] ss:$0 sm:$0xff]  ;;  %v6770_v45 = vshrl.u32 %v146_v44, 7  ;;  %s6566_s3 = smov 32  }
  0x89   :  { %5759 = vmatpush3.bf16.msra.mxu1 %v6059_v11  ;;  %v6778_v47 = vld [vmem:[%s7431_s4] sm:$0x7]  ;;  %s6567_s19 = smov 96   ;;  %v6568_v61 = vmov 1983009808   ;;  %vm903_vm1 = vcmask 261120  }
  0x8a   :  { %365 = vmatpush1.bf16.msra.mxu0 %v6058_v10  ;;  %5760 = vmatprep.subr.bf16.mxu1 %v6563_v0  ;;  %v6773_v46 = vsub.s32 1, %v6770_v45  ;;  %v6785_v53 = vsub.s32 0, %v6770_v45  ;;  %v454_v62 = vunpack.c.l.s4 %v6568_v61  ;;  %v6569_v63 = vmov 1934713408  }
  0x8b   :  { %366 = vmatprep.subr.bf16.mxu0 %v6060_v12  ;;  %vm1290_vm3 = vcmask 27648   ;;  %vm1391_vm4 = vcmask 1041408   ;;  %vm1387_vm5 = vcmask 31744   ;;  %vm1906_vm6 = vcmask 523264  }
  0x8c   :  { %v224_v48 = vrot.slane %v6778_v47, %v6773_v46  ;;  %v220_v59 = vrot.slane %v6778_v47, %v6785_v53  ;;  %v455_v2 = vunpack.c.0.s8 %v454_v62  ;;  %vm1908_vm7 = vcmask 785408  }
  0x8d   :  { %5761 = vmatpush3.bf16.msra.mxu1 %v6063_v14 }
  0x8e   :  { %367 = vmatpush1.bf16.msra.mxu0 %v6062_v13  ;;  %5762 = vmatprep.subr.bf16.mxu1 %v6563_v0  ;;  %v6796_v6 = vsub.s32 %v455_v2, %v6770_v45 }
  0x8f   :  { %368 = vmatprep.subr.bf16.mxu0 %v6064_v15 }
  0x91   :  { %5763 = vmatpush3.bf16.msra.mxu1 %v6067_v17 }
  0x92   :  { %369 = vmatpush1.bf16.msra.mxu0 %v6066_v16  ;;  %5764 = vmatprep.subr.bf16.mxu1 %v6563_v0 }
  0x93   :  { %370 = vmatprep.subr.bf16.mxu0 %v6068_v18 }
  0x95   :  { %5765 = vmatpush3.bf16.msra.mxu1 %v6071_v20 }
  0x96   :  { %371 = vmatpush1.bf16.msra.mxu0 %v6070_v19  ;;  %5766 = vmatprep.subr.bf16.mxu1 %v6563_v0 }
  0x97   :  { %372 = vmatprep.subr.bf16.mxu0 %v6072_v21 }
  0x99   :  { %5767 = vmatpush3.bf16.msra.mxu1 %v6075_v23 }
  0x9a   :  { %373 = vmatpush1.bf16.msra.mxu0 %v6074_v22  ;;  %5768 = vmatprep.subr.bf16.mxu1 %v6563_v0 }
  0x9b   :  { %374 = vmatprep.subr.bf16.mxu0 %v6076_v25 }
  0x9d   :  { %5769 = vmatpush3.bf16.msra.mxu1 %v6079_v27 }
  0x9e   :  { %375 = vmatpush1.bf16.msra.mxu0 %v6078_v26  ;;  %5774 = vmatprep.subr.bf16.mxu1 %v6563_v0 }
  0x9f   :  { %5798 = vmatprep.subr.bf16.mxu0 %v6563_v0 }
 0x10d   :  { %v154_v28 = vpop.xlane.xlu0 %153 }
 0x10e   :  { %v159_v29 = vmul.f32 0.0078125, %v154_v28 }
 0x110   :  { %v161_v31 = vmul.f32 %v159_v29, %v159_v29  ;;  %v164_v36 = vsub.f32 %v6747_v1, %v159_v29  ;;  %v486_v1 = vunpack.c.l.s4 %v6569_v63 }
 0x111   :  { %v157_v30 = vpop.xlane.xlu0 %156 }
 0x112   :  { %v160_v32 = vmul.f32 0.0078125, %v157_v30  ;;  %v487_v5 = vunpack.c.0.s8 %v486_v1 }
 0x114   :  { %v162_v33 = vsub.f32 %v160_v32, %v161_v31  ;;  %v6799_v12 = vsub.s32 %v487_v5, %v6770_v45 }
 0x116   :  { %v163_v34 = vmax.f32 %v162_v33, 0.0 }
 0x118   :  { %v165_v35 = vadd.f32 1e-05, %v163_v34 }
 0x11a   :  { %6288 = vrsqrt.f32 %v165_v35 }
 0x124   :  { %v6289_v37 = vpop.eup %6288 }
 0x125   :  { %v167_v39 = vmul.f32 %v6289_v37, %v164_v36 }
 0x127   :  { %v174_v41 = vmul.f32 %v5306_v38, %v167_v39 }
 0x129   :  { %v181_v42 = vadd.f32 %v5307_v40, %v174_v41 }
 0x12b   :  { %v182_v43 = vpack.c.bf16 %v181_v42, %v181_v42 }
 0x12d   :  { %393 = vmatmul.mubr.bf16.vlgmr.msra.gmra.mrb[0].mxu0 %v182_v43  ;;  %5771 = vmatmul.mubr.bf16.vlgmr.msra.gmra.mrb[0].mxu1 %v182_v43 }
 0x12e   :  { %5776 = vmatprep.mubr.msk.bf16.mxu1 %vm6565_vm0, %v6563_v0  ;;  %5800 = vmatprep.mubr.msk.bf16.mxu0 %vm6565_vm0, %v6563_v0 }
 0x200   :  { %v394_v49 = vpop.f32.mrb[0].mxu0  ;;  %v6782_v50 = vpop.f32.mrb[0].mxu1 }
 0x201   :  { %v396_v51 = vpop.f32.mrb[1].mxu0  ;;  %v5772_v52 = vpop.f32.mrb[1].mxu1  ;;  %v395_v60 = vadd.f32 %v394_v49, %v220_v59 }
 0x202   :  { %v397_v54 = vadd.f32 %v396_v51, %v224_v48  ;;  %v398_v55 = vpop.f32.mrb[2].mxu0  ;;  %v438_v56 = vpop.f32.mrb[2].mxu1 }
 0x203   :  { %v399_v57 = vpop.f32.mrb[3].mxu0  ;;  %v5773_v58 = vpop.f32.mrb[3].mxu1 }
 0x204   :  { %602 = vrot.lane.b32.xlu0 %v397_v54, %s6566_s3  ;;  %596 = vrot.lane.b32.xlu1 %v397_v54, %s6567_s19 }
 0x208   :  { %599 = vrot.lane.b32.xlu1 %v397_v54, %s6560_s2 }
 0x20c   :  { %442 = vrot.lane.b32.xlu1 %v395_v60, %s6567_s19 }
 0x210   :  { %445 = vrot.lane.b32.xlu1 %v395_v60, %s6560_s2 }
 0x214   :  { %448 = vrot.lane.b32.xlu1 %v395_v60, %s6566_s3 }
 0x276   :  { %v603_v3 = vpop.permute.xlu0 %602  ;;  %v597_v4 = vpop.permute.xlu1 %596 }
 0x277   :  { %v621_v7 = vcombine.low %v597_v4, %v603_v3  ;;  %v622_v8 = vcombine.high %v597_v4, %v603_v3 }
 0x279   :  { %v629_v13 = vrot.slane %v621_v7, %v6796_v6  ;;  %v636_v14 = vrot.slane %v622_v8, %v6796_v6 }
 0x27a   :  { %v600_v9 = vpop.permute.xlu1 %599 }
 0x27b   :  { %v605_v10 = vcombine.low %v397_v54, %v600_v9  ;;  %v606_v11 = vcombine.high %v397_v54, %v600_v9 }
 0x27d   :  { %v613_v15 = vrot.slane %v605_v10, %v6796_v6  ;;  %v620_v16 = vrot.slane %v606_v11, %v6796_v6 }
 0x27e   :  { %v443_v17 = vpop.permute.xlu1 %442 }
 0x27f   :  { %v637_v18 = vcombine.low %v613_v15, %v629_v13  ;;  %v638_v19 = vcombine.high %v613_v15, %v629_v13  ;;  %v653_v20 = vcombine.low %v620_v16, %v636_v14  ;;  %v654_v21 = vcombine.high %v620_v16, %v636_v14 }
 0x281   :  { %v645_v22 = vrot.slane %v637_v18, %v6799_v12  ;;  %v652_v23 = vrot.slane %v638_v19, %v6799_v12  ;;  %v661_v25 = vrot.slane %v653_v20, %v6799_v12  ;;  %v668_v26 = vrot.slane %v654_v21, %v6799_v12 }
 0x282   :  { %v446_v27 = vpop.permute.xlu1 %445 }
 0x283   :  { %v673_v28 = vcombine.low %v645_v22, %v652_v23  ;;  %v5334_v29 = vcombine.high %v645_v22, %v652_v23  ;;  %v707_v30 = vcombine.low %v661_v25, %v668_v26  ;;  %v5335_v31 = vcombine.high %v661_v25, %v668_v26 }
 0x284   :  { %v451_v32 = vcombine.low %v395_v60, %v446_v27  ;;  %v452_v33 = vcombine.high %v395_v60, %v446_v27 }
 0x285   :  { %v680_v34 = vrot.slane %v673_v28, %v6796_v6  ;;  %v688_v35 = vrot.slane %v5334_v29, %v6796_v6  ;;  %v714_v36 = vrot.slane %v707_v30, %v6796_v6  ;;  %v722_v37 = vrot.slane %v5335_v31, %v6796_v6 }
 0x286   :  { %v449_v38 = vpop.permute.xlu1 %448  ;;  %v459_v43 = vrot.slane %v451_v32, %v6796_v6  ;;  %v466_v48 = vrot.slane %v452_v33, %v6796_v6 }
 0x287   :  { %v467_v39 = vcombine.low %v443_v17, %v449_v38  ;;  %v468_v40 = vcombine.high %v443_v17, %v449_v38  ;;  %v689_v41 = vcombine.low %v680_v34, %v688_v35  ;;  %v723_v42 = vcombine.low %v714_v36, %v722_v37 }
 0x288   :  { %v724_v61 = vcombine.high %v714_v36, %v722_v37  ;;  %v690_v19 = vcombine.high %v680_v34, %v688_v35 }
 0x289   :  { %v475_v49 = vrot.slane %v467_v39, %v6796_v6  ;;  %v482_v51 = vrot.slane %v468_v40, %v6796_v6  ;;  %v697_v52 = vrot.slane %v689_v41, %v6799_v12  ;;  %v6819_v54 = vrot.slane %v723_v42, %v6799_v12 }
 0x28a   :  { %v738_v11 = vrot.slane %v724_v61, %v6799_v12  ;;  %v704_v30 = vrot.slane %v690_v19, %v6799_v12  ;;  %v149_v61 = vand.u32 127, %v146_v44 }
 0x28b   :  { %v483_v55 = vcombine.low %v459_v43, %v475_v49  ;;  %v484_v56 = vcombine.high %v459_v43, %v475_v49  ;;  %v499_v57 = vcombine.low %v466_v48, %v482_v51  ;;  %v500_v58 = vcombine.high %v466_v48, %v482_v51 }
 0x28c   :  { %v741_v59 = vpack.c.bf16 %v697_v52, %v697_v52  ;;  %v745_v60 = vpack.c.bf16 %v6819_v54, %v6819_v54  ;;  %v705_v10 = vcombine.high %v697_v52, %v6563_v0  ;;  %v747_v23 = vpack.c.bf16 %v738_v11, %v738_v11 }
 0x28d   :  { %v491_v62 = vrot.slane %v483_v55, %v6799_v12  ;;  %v498_v63 = vrot.slane %v484_v56, %v6799_v12  ;;  %v507_v1 = vrot.slane %v499_v57, %v6799_v12  ;;  %v514_v2 = vrot.slane %v500_v58, %v6799_v12 }
 0x28e   :  { %v908_v3 = vsel %vm903_vm1, %v741_v59, 0  ;;  %v1092_v4 = vsel %vm903_vm1, %v745_v60, 0  ;;  %v742_v21 = vpack.c.bf16 %v705_v10, %v705_v10  ;;  %v1184_v29 = vsel %vm903_vm1, %v747_v23, 0 }
 0x28f   :  { %v519_v5 = vcombine.low %v491_v62, %v498_v63  ;;  %v5332_v7 = vcombine.high %v491_v62, %v498_v63  ;;  %v553_v8 = vcombine.low %v507_v1, %v514_v2  ;;  %v5333_v9 = vcombine.high %v507_v1, %v514_v2  ;;  %5775 = vmatpush3.bf16.xpose.msra.mxu1 %v908_v3 }
 0x290   :  { %5799 = vmatpush3.bf16.xpose.msra.mxu0 %v1092_v4  ;;  %5780 = vmatprep.subr.bf16.mxu1 %v6563_v0  ;;  %v954_v28 = vsel %vm903_vm1, %v742_v21, 0  ;;  %v743_v33 = vpack.c.bf16 %v704_v30, %v704_v30  ;;  %v706_v38 = vcombine.high %v704_v30, %v6563_v0  ;;  %v739_v43 = vcombine.high %v6819_v54, %v6563_v0 }
 0x291   :  { %v526_v13 = vrot.slane %v519_v5, %v6796_v6  ;;  %v534_v14 = vrot.slane %v5332_v7, %v6796_v6  ;;  %v560_v15 = vrot.slane %v553_v8, %v6796_v6  ;;  %v568_v16 = vrot.slane %v5333_v9, %v6796_v6  ;;  %5810 = vmatprep.subr.bf16.mxu0 %v6563_v0 }
 0x292   :  { %v1000_v37 = vsel %vm903_vm1, %v743_v33, 0  ;;  %v744_v40 = vpack.c.bf16 %v706_v38, %v706_v38  ;;  %v746_v49 = vpack.c.bf16 %v739_v43, %v739_v43  ;;  %v740_v55 = vcombine.high %v738_v11, %v6563_v0 }
 0x293   :  { %v535_v17 = vcombine.low %v526_v13, %v534_v14  ;;  %v569_v18 = vcombine.low %v560_v15, %v568_v16  ;;  %v570_v25 = vcombine.high %v560_v15, %v568_v16  ;;  %v536_v34 = vcombine.high %v526_v13, %v534_v14 }
 0x294   :  { %v1046_v42 = vsel %vm903_vm1, %v744_v40, 0  ;;  %v1138_v52 = vsel %vm903_vm1, %v746_v49, 0  ;;  %v748_v56 = vpack.c.bf16 %v740_v55, %v740_v55  ;;  %vm6888_vm2 = vcmp.le.s32.totalorder %v149_v61, %v6770_v45 }
 0x295   :  { %v543_v20 = vrot.slane %v535_v17, %v6799_v12  ;;  %v577_v22 = vrot.slane %v569_v18, %v6799_v12  ;;  %v584_v32 = vrot.slane %v570_v25, %v6799_v12  ;;  %v550_v39 = vrot.slane %v536_v34, %v6799_v12 }
 0x296   :  { %v1230_v58 = vsel %vm903_vm1, %v748_v56, 0 }
 0x297   :  { %v587_v26 = vpack.c.bf16 %v543_v20, %v543_v20  ;;  %v591_v27 = vpack.c.bf16 %v577_v22, %v577_v22  ;;  %v551_v31 = vcombine.high %v543_v20, %v6563_v0  ;;  %v593_v36 = vpack.c.bf16 %v584_v32, %v584_v32 }
 0x298   :  { %v589_v41 = vpack.c.bf16 %v550_v39, %v550_v39  ;;  %v552_v48 = vcombine.high %v550_v39, %v6563_v0  ;;  %v585_v54 = vcombine.high %v577_v22, %v6563_v0  ;;  %v586_v59 = vcombine.high %v584_v32, %v6563_v0 }
 0x299   :  { %5777 = vmatmul.mubr.msk.bf16.vlgmr.msra.gmra.mrb[4].mxu1 %vm903_vm1, %v587_v26  ;;  %5801 = vmatmul.mubr.msk.bf16.vlgmr.msra.gmra.mrb[4].mxu0 %vm903_vm1, %v591_v27  ;;  %v588_v35 = vpack.c.bf16 %v551_v31, %v551_v31 }
 0x29a   :  { %5781 = vmatpush3.bf16.xpose.msra.mxu1 %v954_v28  ;;  %5811 = vmatpush3.bf16.xpose.msra.mxu0 %v1184_v29  ;;  %v590_v51 = vpack.c.bf16 %v552_v48, %v552_v48  ;;  %v592_v57 = vpack.c.bf16 %v585_v54, %v585_v54  ;;  %v594_v60 = vpack.c.bf16 %v586_v59, %v586_v59 }
 0x29b   :  { %5782 = vmatprep.mubr.msk.bf16.mxu1 %vm6565_vm0, %v6563_v0  ;;  %5786 = vmatprep.subr.bf16.mxu1 %v6563_v0 }
 0x29c   :  { %5812 = vmatprep.mubr.msk.bf16.mxu0 %vm6565_vm0, %v6563_v0  ;;  %5822 = vmatprep.subr.bf16.mxu0 %v6563_v0 }
 0x2a1   :  { %5783 = vmatmul.mubr.msk.bf16.vlgmr.msra.gmra.mrb[8].mxu1 %vm903_vm1, %v588_v35  ;;  %5813 = vmatmul.mubr.msk.bf16.vlgmr.msra.gmra.mrb[8].mxu0 %vm903_vm1, %v593_v36 }
 0x2a2   :  { %5787 = vmatpush3.bf16.xpose.msra.mxu1 %v1000_v37  ;;  %5788 = vmatprep.mubr.msk.bf16.mxu1 %vm6565_vm0, %v6563_v0 }
 0x2a3   :  { %5792 = vmatprep.subr.bf16.mxu1 %v6563_v0  ;;  %5824 = vmatprep.mubr.msk.bf16.mxu0 %vm6565_vm0, %v6563_v0 }
 0x2a9   :  { %5789 = vmatmul.mubr.msk.bf16.vlgmr.msra.gmra.mrb[12].mxu1 %vm903_vm1, %v589_v41 }
 0x2aa   :  { %5793 = vmatpush3.bf16.xpose.msra.mxu1 %v1046_v42  ;;  %5794 = vmatprep.mubr.msk.bf16.mxu1 %vm6565_vm0, %v6563_v0 }
 0x2ab   :  { %5804 = vmatprep.subr.bf16.mxu1 %v6563_v0 }
 0x2b1   :  { %5795 = vmatmul.mubr.msk.bf16.vlgmr.msra.gmra.mrb[16].mxu1 %vm903_vm1, %v590_v51 }
 0x2b2   :  { %5805 = vmatpush3.bf16.xpose.msra.mxu1 %v1138_v52  ;;  %5806 = vmatprep.mubr.msk.bf16.mxu1 %vm6565_vm0, %v6563_v0 }
 0x2b3   :  { %5816 = vmatprep.subr.bf16.mxu1 %v6563_v0 }
 0x2b9   :  { %5807 = vmatmul.mubr.msk.bf16.vlgmr.msra.gmra.mrb[20].mxu1 %vm903_vm1, %v592_v57 }
 0x2ba   :  { %5817 = vmatpush3.bf16.xpose.msra.mxu1 %v1230_v58  ;;  %5818 = vmatprep.mubr.msk.bf16.mxu1 %vm6565_vm0, %v6563_v0 }
 0x2bb   :  { %5828 = vmatprep.subr.bf16.mxu1 %v6563_v0 }
 0x2c1   :  { %5819 = vmatmul.mubr.msk.bf16.vlgmr.msra.gmra.mrb[24].mxu1 %vm903_vm1, %v594_v60 }
 0x2c2   :  { %5830 = vmatprep.mubr.msk.bf16.mxu1 %vm6565_vm0, %v6563_v0 }
 0x36c   :  { %v944_v63 = vpop.f32.mrb[4].mxu1  ;;  %v1128_v1 = vpop.f32.mrb[4].mxu0 }
 0x36d   :  { %v1272_v2 = vmul.f32 0.17677669, %v944_v63  ;;  %v5778_v3 = vpop.f32.mrb[5].mxu1  ;;  %v5802_v4 = vpop.f32.mrb[5].mxu0  ;;  %v1276_v14 = vmul.f32 0.17677669, %v1128_v1 }
 0x36e   :  { %v947_v5 = vpop.f32.mrb[6].mxu1  ;;  %v1131_v7 = vpop.f32.mrb[6].mxu0 }
 0x36f   :  { %v5779_v8 = vpop.f32.mrb[7].mxu1  ;;  %v5803_v9 = vpop.f32.mrb[7].mxu0  ;;  %v1282_v10 = vsel %vm6888_vm2, %v1272_v2, -1e+30  ;;  %v6900_v26 = vsel %vm6888_vm2, %v1276_v14, -1e+30 }
 0x370   :  { %v1291_v44 = vsel %vm1290_vm3, %v1282_v10, -inf  ;;  %v1303_v28 = vsel %vm1290_vm3, %v6900_v26, -inf  ;;  %v6923_v2 = vsub.s32 2, %v6770_v45 }
 0x371   :  { %1292 = vmax.xlane.f32.xlu1 %v1291_v44 }
 0x372   :  { %v228_v3 = vrot.slane %v6778_v47, %v6923_v2 }
 0x374   :  { %v990_v11 = vpop.f32.mrb[8].mxu1  ;;  %v1220_v13 = vpop.f32.mrb[8].mxu0  ;;  %v6928_v4 = vadd.f32 %v6782_v50, %v228_v3 }
 0x375   :  { %v1273_v15 = vmul.f32 0.17677669, %v990_v11  ;;  %v5784_v16 = vpop.f32.mrb[9].mxu1  ;;  %v5814_v17 = vpop.f32.mrb[9].mxu0  ;;  %v1278_v25 = vmul.f32 0.17677669, %v1220_v13 }
 0x376   :  { %v993_v18 = vpop.f32.mrb[10].mxu1  ;;  %v1223_v19 = vpop.f32.mrb[10].mxu0 }
 0x377   :  { %v5785_v20 = vpop.f32.mrb[11].mxu1  ;;  %v5815_v21 = vpop.f32.mrb[11].mxu0  ;;  %v1283_v22 = vsel %vm6888_vm2, %v1273_v15, -1e+30  ;;  %v6906_v31 = vsel %vm6888_vm2, %v1278_v25, -1e+30 }
 0x378   :  { %v1294_v23 = vsel %vm1290_vm3, %v1283_v22, -inf  ;;  %v1309_v35 = vsel %vm1290_vm3, %v6906_v31, -inf }
 0x379   :  { %1295 = vmax.xlane.f32.xlu0 %v1294_v23 }
 0x37c   :  { %v1036_v27 = vpop.f32.mrb[12].mxu1 }
 0x37d   :  { %v1274_v29 = vmul.f32 0.17677669, %v1036_v27  ;;  %1304 = vmax.xlane.f32.xlu0 %v1303_v28  ;;  %v5790_v30 = vpop.f32.mrb[13].mxu1 }
 0x37e   :  { %v1039_v32 = vpop.f32.mrb[14].mxu1 }
 0x37f   :  { %v5791_v33 = vpop.f32.mrb[15].mxu1  ;;  %v1284_v34 = vsel %vm6888_vm2, %v1274_v29, -1e+30 }
 0x380   :  { %v1297_v36 = vsel %vm1290_vm3, %v1284_v34, -inf }
 0x381   :  { %1310 = vmax.xlane.f32.xlu0 %v1309_v35  ;;  %1298 = vmax.xlane.f32.xlu1 %v1297_v36 }
 0x384   :  { %v1082_v37 = vpop.f32.mrb[16].mxu1 }
 0x385   :  { %v1275_v38 = vmul.f32 0.17677669, %v1082_v37  ;;  %v5796_v39 = vpop.f32.mrb[17].mxu1 }
 0x386   :  { %v1085_v40 = vpop.f32.mrb[18].mxu1 }
 0x387   :  { %v5797_v41 = vpop.f32.mrb[19].mxu1  ;;  %v1285_v42 = vsel %vm6888_vm2, %v1275_v38, -1e+30 }
 0x388   :  { %v1300_v43 = vsel %vm1290_vm3, %v1285_v42, -inf }
 0x389   :  { %1301 = vmax.xlane.f32.xlu1 %v1300_v43 }
 0x38c   :  { %v1174_v48 = vpop.f32.mrb[20].mxu1 }
 0x38d   :  { %v1277_v49 = vmul.f32 0.17677669, %v1174_v48  ;;  %v5808_v51 = vpop.f32.mrb[21].mxu1 }
 0x38e   :  { %v1177_v52 = vpop.f32.mrb[22].mxu1 }
 0x38f   :  { %v5809_v55 = vpop.f32.mrb[23].mxu1  ;;  %v1287_v54 = vsel %vm6888_vm2, %v1277_v49, -1e+30 }
 0x390   :  { %v1306_v56 = vsel %vm1290_vm3, %v1287_v54, -inf }
 0x391   :  { %1307 = vmax.xlane.f32.xlu1 %v1306_v56 }
 0x394   :  { %v1266_v57 = vpop.f32.mrb[24].mxu1 }
 0x395   :  { %v1279_v58 = vmul.f32 0.17677669, %v1266_v57  ;;  %v5820_v59 = vpop.f32.mrb[25].mxu1 }
 0x396   :  { %v1269_v60 = vpop.f32.mrb[26].mxu1 }
 0x397   :  { %v5821_v61 = vpop.f32.mrb[27].mxu1  ;;  %v1289_v63 = vsel %vm6888_vm2, %v1279_v58, -1e+30 }
 0x398   :  { %v1312_v1 = vsel %vm1290_vm3, %v1289_v63, -inf }
 0x399   :  { %1313 = vmax.xlane.f32.xlu1 %v1312_v1 }
 0x3aa   :  { %753 = vrot.lane.b32.xlu1 %v6928_v4, %s6560_s2 }
 0x3fe   :  { %v1293_v5 = vpop.xlane.xlu1 %1292 }
 0x3ff   :  { %v1315_v7 = vsub.f32 %v1282_v10, %v1293_v5 }
 0x401   :  { %v1323_v8 = vmul.f32 1.442695, %v1315_v7 }
 0x403   :  { %6290 = vpow2.f32 %v1323_v8 }
 0x406   :  { %v1296_v9 = vpop.xlane.xlu0 %1295 }
 0x407   :  { %v1316_v44 = vsub.f32 %v1283_v22, %v1296_v9 }
 0x409   :  { %v1325_v11 = vmul.f32 1.442695, %v1316_v44 }
 0x40a   :  { %v1305_v16 = vpop.xlane.xlu0 %1304 }
 0x40b   :  { %6292 = vpow2.f32 %v1325_v11  ;;  %v1319_v18 = vsub.f32 %v6900_v26, %v1305_v16 }
 0x40d   :  { %v6932_v13 = vpop.eup %6290  ;;  %v1331_v22 = vmul.f32 1.442695, %v1319_v18 }
 0x40e   :  { %v1339_v14 = vsel %vm1290_vm3, %v6932_v13, 0.0  ;;  %v1299_v10 = vpop.xlane.xlu1 %1298  ;;  %v1311_v23 = vpop.xlane.xlu0 %1310 }
 0x40f   :  { %1340 = vadd.xlane.f32.xlu0 %v1339_v14  ;;  %v1317_v15 = vsub.f32 %v1284_v34, %v1299_v10  ;;  %v1321_v28 = vsub.f32 %v6906_v31, %v1311_v23 }
 0x411   :  { %v1327_v19 = vmul.f32 1.442695, %v1317_v15  ;;  %v1335_v33 = vmul.f32 1.442695, %v1321_v28 }
 0x413   :  { %6294 = vpow2.f32 %v1327_v19 }
 0x414   :  { %6296 = vpow2.f32 %v1331_v22 }
 0x415   :  { %v6936_v47 = vpop.eup %6292 }
 0x416   :  { %v1342_v50 = vsel %vm1290_vm3, %v6936_v47, 0.0  ;;  %v1302_v17 = vpop.xlane.xlu1 %1301 }
 0x417   :  { %1343 = vadd.xlane.f32.xlu1 %v1342_v50  ;;  %v1318_v21 = vsub.f32 %v1285_v42, %v1302_v17 }
 0x419   :  { %v1329_v29 = vmul.f32 1.442695, %v1318_v21 }
 0x41b   :  { %6298 = vpow2.f32 %v1329_v29 }
 0x41d   :  { %v6946_v35 = vpop.eup %6294 }
 0x41e   :  { %v1308_v20 = vpop.xlane.xlu1 %1307  ;;  %v1345_v26 = vsel %vm1290_vm3, %v6946_v35, 0.0  ;;  %v6950_v36 = vpop.eup %6296 }
 0x41f   :  { %v1320_v25 = vsub.f32 %v1287_v54, %v1308_v20  ;;  %v1351_v31 = vsel %vm1290_vm3, %v6950_v36, 0.0 }
 0x421   :  { %v1333_v30 = vmul.f32 1.442695, %v1320_v25 }
 0x423   :  { %6300 = vpow2.f32 %v1333_v30 }
 0x424   :  { %6302 = vpow2.f32 %v1335_v33 }
 0x425   :  { %750 = vrot.lane.b32.xlu0 %v6928_v4, %s6567_s19  ;;  %v6952_v37 = vpop.eup %6298 }
 0x426   :  { %v1314_v27 = vpop.xlane.xlu1 %1313  ;;  %v1348_v41 = vsel %vm1290_vm3, %v6952_v37, 0.0 }
 0x427   :  { %v1322_v32 = vsub.f32 %v1289_v63, %v1314_v27 }
 0x428   :  { %756 = vrot.lane.b32.xlu1 %v6928_v4, %s6566_s3 }
 0x429   :  { %v1337_v34 = vmul.f32 1.442695, %v1322_v32 }
 0x42a   :  { %v754_v49 = vpop.permute.xlu1 %753 }
 0x42b   :  { %6304 = vpow2.f32 %v1337_v34  ;;  %v759_v55 = vcombine.low %v6928_v4, %v754_v49  ;;  %v760_v28 = vcombine.high %v6928_v4, %v754_v49 }
 0x42d   :  { %v6956_v38 = vpop.eup %6300  ;;  %v767_v58 = vrot.slane %v759_v55, %v6796_v6  ;;  %v774_v4 = vrot.slane %v760_v28, %v6796_v6  ;;  %v6082_v28 = vld [vmem:[#allocation10 + $0x10] sm:$0xff]  }
 0x42e   :  { %v6958_v39 = vpop.eup %6302  ;;  %v1354_v40 = vsel %vm1290_vm3, %v6956_v38, 0.0 }
 0x42f   :  { %v1357_v43 = vsel %vm1290_vm3, %v6958_v39, 0.0 }
 0x435   :  { %v6964_v42 = vpop.eup %6304 }
 0x436   :  { %v1360_v48 = vsel %vm1290_vm3, %v6964_v42, 0.0 }
 0x444   :  { %1346 = vadd.xlane.f32.xlu0 %v1345_v26 }
 0x448   :  { %1352 = vadd.xlane.f32.xlu0 %v1351_v31 }
 0x44c   :  { %1355 = vadd.xlane.f32.xlu0 %v1354_v40  ;;  %1349 = vadd.xlane.f32.xlu1 %v1348_v41 }
 0x450   :  { %1358 = vadd.xlane.f32.xlu1 %v1357_v43  ;;  %1361 = vadd.xlane.f32.xlu0 %v1360_v48 }
 0x49c   :  { %v1341_v51 = vpop.xlane.xlu0 %1340 }
 0x49d   :  { %6306 = vrcp.f32 %v1341_v51 }
 0x4a0   :  { %v751_v54 = vpop.permute.xlu0 %750 }
 0x4a4   :  { %v1344_v52 = vpop.xlane.xlu1 %1343 }
 0x4a5   :  { %6308 = vrcp.f32 %v1344_v52 }
 0x4a7   :  { %v6307_v11 = vpop.eup %6306 }
 0x4a8   :  { %v757_v56 = vpop.permute.xlu1 %756  ;;  %v1371_v15 = vmul.f32 %v6307_v11, %v6932_v13 }
 0x4a9   :  { %v775_v57 = vcombine.low %v751_v54, %v757_v56  ;;  %v776_v23 = vcombine.high %v751_v54, %v757_v56 }
 0x4aa   :  { %v1379_v27 = vpack.c.bf16 %v1371_v15, %v1371_v15 }
 0x4ab   :  { %v783_v59 = vrot.slane %v775_v57, %v6796_v6  ;;  %v790_v30 = vrot.slane %v776_v23, %v6796_v6 }
 0x4ad   :  { %v791_v60 = vcombine.low %v767_v58, %v783_v59  ;;  %v792_v61 = vcombine.high %v767_v58, %v783_v59  ;;  %v807_v33 = vcombine.low %v774_v4, %v790_v30  ;;  %v808_v34 = vcombine.high %v774_v4, %v790_v30 }
 0x4af   :  { %v799_v63 = vrot.slane %v791_v60, %v6799_v12  ;;  %v806_v1 = vrot.slane %v792_v61, %v6799_v12  ;;  %v6309_v10 = vpop.eup %6308  ;;  %v815_v26 = vrot.slane %v807_v33, %v6799_v12  ;;  %v822_v31 = vrot.slane %v808_v34, %v6799_v12 }
 0x4b0   :  { %v1372_v19 = vmul.f32 %v6309_v10, %v6936_v47 }
 0x4b1   :  { %v827_v3 = vcombine.low %v799_v63, %v806_v1  ;;  %v5336_v5 = vcombine.high %v799_v63, %v806_v1  ;;  %v861_v40 = vcombine.low %v815_v26, %v822_v31  ;;  %v5337_v41 = vcombine.high %v815_v26, %v822_v31 }
 0x4b2   :  { %v1380_v29 = vpack.c.bf16 %v1372_v19, %v1372_v19 }
 0x4b3   :  { %v834_v7 = vrot.slane %v827_v3, %v6796_v6  ;;  %v842_v8 = vrot.slane %v5336_v5, %v6796_v6  ;;  %v868_v48 = vrot.slane %v861_v40, %v6796_v6  ;;  %v876_v49 = vrot.slane %v5337_v41, %v6796_v6 }
 0x4b5   :  { %v843_v9 = vcombine.low %v834_v7, %v842_v8  ;;  %v844_v44 = vcombine.high %v834_v7, %v842_v8  ;;  %v877_v52 = vcombine.low %v868_v48, %v876_v49  ;;  %v878_v61 = vcombine.high %v868_v48, %v876_v49 }
 0x4b7   :  { %v851_v14 = vrot.slane %v843_v9, %v6799_v12  ;;  %v858_v50 = vrot.slane %v844_v44, %v6799_v12  ;;  %v885_v54 = vrot.slane %v877_v52, %v6799_v12  ;;  %v892_v5 = vrot.slane %v878_v61, %v6799_v12 }
 0x4b9   :  { %v895_v16 = vpack.c.bf16 %v851_v14, %v851_v14  ;;  %v859_v17 = vcombine.high %v851_v14, %v6563_v0  ;;  %v860_v18 = vcombine.high %v858_v50, %v6563_v0  ;;  %v897_v22 = vpack.c.bf16 %v858_v50, %v858_v50 }
 0x4ba   :  { %v899_v60 = vpack.c.bf16 %v885_v54, %v885_v54  ;;  %v893_v7 = vcombine.high %v885_v54, %v6563_v0  ;;  %v901_v44 = vpack.c.bf16 %v892_v5, %v892_v5 }
 0x4bb   :  { %v1393_v20 = vsel %vm1391_vm4, %v895_v16, 0  ;;  %v896_v21 = vpack.c.bf16 %v859_v17, %v859_v17  ;;  %v898_v13 = vpack.c.bf16 %v860_v18, %v860_v18  ;;  %v1485_v47 = vsel %vm1391_vm4, %v897_v22, 0 }
 0x4bc   :  { %5823 = vmatpush3.bf16.msra.mxu0 %v1393_v20  ;;  %v1577_v3 = vsel %vm1391_vm4, %v899_v60, 0  ;;  %v900_v14 = vpack.c.bf16 %v893_v7, %v893_v7  ;;  %v1669_v17 = vsel %vm1391_vm4, %v901_v44, 0  ;;  %v894_v18 = vcombine.high %v892_v5, %v6563_v0 }
 0x4bd   :  { %v1439_v25 = vsel %vm1391_vm4, %v896_v21, 0  ;;  %5834 = vmatprep.subr.bf16.mxu0 %v6563_v0  ;;  %v1531_v32 = vsel %vm1391_vm4, %v898_v13, 0  ;;  %v6081_v13 = vld [vmem:[#allocation10 + $0x8] sm:$0xff]  }
 0x4be   :  { %5829 = vmatpush3.bf16.msra.mxu1 %v1439_v25  ;;  %v902_v20 = vpack.c.bf16 %v894_v18, %v894_v18 }
 0x4bf   :  { %5825 = vmatmul.mubr.msk.bf16.vlgmr.msra.gmra.mrb[12].mxu0 %vm1387_vm5, %v1379_v27  ;;  %5840 = vmatprep.subr.bf16.mxu1 %v6563_v0  ;;  %v6080_v27 = vld [vmem:[#allocation10] sm:$0xff]  }
 0x4c0   :  { %5835 = vmatpush3.bf16.msra.mxu0 %v1485_v47  ;;  %5836 = vmatprep.mubr.msk.bf16.mxu0 %vm6565_vm0, %v6563_v0  ;;  %v6083_v47 = vld [vmem:[#allocation10 + $0x18] sm:$0xff]  }
 0x4c1   :  { %5831 = vmatmul.mubr.msk.bf16.vlgmr.msra.gmra.mrb[28].mxu1 %vm1387_vm5, %v1380_v29  ;;  %5846 = vmatprep.subr.bf16.mxu0 %v6563_v0  ;;  %v6085_v29 = vld [vmem:[#allocation10 + $0x28] sm:$0xff]  }
 0x4c2   :  { %5841 = vmatpush3.bf16.msra.mxu1 %v1531_v32  ;;  %5842 = vmatprep.mubr.msk.bf16.mxu1 %vm6565_vm0, %v6563_v0 }
 0x4c3   :  { %5852 = vmatprep.subr.bf16.mxu1 %v6563_v0 }
 0x4d1   :  { %v1347_v43 = vpop.xlane.xlu0 %1346 }
 0x4d2   :  { %6310 = vrcp.f32 %v1347_v43 }
 0x4d5   :  { %v1353_v51 = vpop.xlane.xlu0 %1352 }
 0x4d6   :  { %6312 = vrcp.f32 %v1353_v51 }
 0x4d9   :  { %v1350_v55 = vpop.xlane.xlu1 %1349  ;;  %v1356_v56 = vpop.xlane.xlu0 %1355 }
 0x4da   :  { %6314 = vrcp.f32 %v1350_v55 }
 0x4db   :  { %6316 = vrcp.f32 %v1356_v56 }
 0x4dc   :  { %v6311_v57 = vpop.eup %6310 }
 0x4dd   :  { %v1373_v58 = vmul.f32 %v6311_v57, %v6946_v35  ;;  %v1359_v59 = vpop.xlane.xlu1 %1358  ;;  %v1362_v8 = vpop.xlane.xlu0 %1361 }
 0x4de   :  { %6318 = vrcp.f32 %v1359_v59 }
 0x4df   :  { %v1381_v63 = vpack.c.bf16 %v1373_v58, %v1373_v58  ;;  %6320 = vrcp.f32 %v1362_v8 }
 0x4e0   :  { %v6313_v1 = vpop.eup %6312 }
 0x4e1   :  { %5837 = vmatmul.mubr.msk.bf16.vlgmr.msra.gmra.mrb[16].mxu0 %vm1387_vm5, %v1381_v63  ;;  %v1375_v35 = vmul.f32 %v6313_v1, %v6950_v36  ;;  %v1623_v36 = vsel %vm1391_vm4, %v900_v14, 0 }
 0x4e2   :  { %5847 = vmatpush3.bf16.msra.mxu0 %v1577_v3  ;;  %5848 = vmatprep.mubr.msk.bf16.mxu0 %vm6565_vm0, %v6563_v0 }
 0x4e3   :  { %5858 = vmatprep.subr.bf16.mxu0 %v6563_v0  ;;  %v1383_v50 = vpack.c.bf16 %v1375_v35, %v1375_v35 }
 0x4e4   :  { %v6315_v9 = vpop.eup %6314 }
 0x4e5   :  { %v1374_v11 = vmul.f32 %v6315_v9, %v6952_v37  ;;  %v6317_v10 = vpop.eup %6316 }
 0x4e6   :  { %v1376_v37 = vmul.f32 %v6317_v10, %v6956_v38 }
 0x4e7   :  { %v1382_v15 = vpack.c.bf16 %v1374_v11, %v1374_v11 }
 0x4e8   :  { %v6319_v16 = vpop.eup %6318  ;;  %v1384_v22 = vpack.c.bf16 %v1376_v37, %v1376_v37 }
 0x4e9   :  { %5849 = vmatmul.mubr.msk.bf16.vlgmr.msra.gmra.mrb[20].mxu0 %vm1387_vm5, %v1383_v50  ;;  %5843 = vmatmul.mubr.msk.bf16.vlgmr.msra.gmra.mrb[32].mxu1 %vm1387_vm5, %v1382_v15  ;;  %v1377_v19 = vmul.f32 %v6319_v16, %v6958_v39  ;;  %v6321_v23 = vpop.eup %6320  ;;  %v1715_v39 = vsel %vm1391_vm4, %v902_v20, 0 }
 0x4ea   :  { %5859 = vmatpush3.bf16.msra.mxu0 %v1669_v17  ;;  %5853 = vmatpush3.bf16.msra.mxu1 %v1623_v36  ;;  %v1378_v38 = vmul.f32 %v6321_v23, %v6964_v42  ;;  %v6084_v42 = vld [vmem:[#allocation10 + $0x20] sm:$0xff]  }
 0x4eb   :  { %5854 = vmatprep.mubr.msk.bf16.mxu1 %vm6565_vm0, %v6563_v0  ;;  %5860 = vmatprep.mubr.msk.bf16.mxu0 %vm6565_vm0, %v6563_v0  ;;  %v1385_v21 = vpack.c.bf16 %v1377_v19, %v1377_v19 }
 0x4ec   :  { %5864 = vmatprep.subr.bf16.mxu1 %v6563_v0  ;;  %5870 = vmatprep.subr.bf16.mxu0 %v6563_v0  ;;  %v1386_v25 = vpack.c.bf16 %v1378_v38, %v1378_v38 }
 0x4f1   :  { %5861 = vmatmul.mubr.msk.bf16.vlgmr.msra.gmra.mrb[24].mxu0 %vm1387_vm5, %v1385_v21  ;;  %5855 = vmatmul.mubr.msk.bf16.vlgmr.msra.gmra.mrb[36].mxu1 %vm1387_vm5, %v1384_v22 }
 0x4f2   :  { %5886 = vmatprep.mubr.msk.bf16.mxu0 %vm6565_vm0, %v6563_v0  ;;  %5865 = vmatpush3.bf16.msra.mxu1 %v1715_v39 }
 0x4f3   :  { %5866 = vmatprep.mubr.msk.bf16.mxu1 %vm6565_vm0, %v6563_v0  ;;  %5871 = vmatpush3.bf16.msra.mxu0 %v6080_v27 }
 0x4f4   :  { %5872 = vmatprep.subr.bf16.mxu0 %v6563_v0 }
 0x4f7   :  { %5873 = vmatpush3.bf16.msra.mxu0 %v6081_v13 }
 0x4f8   :  { %5874 = vmatprep.subr.bf16.mxu0 %v6563_v0 }
 0x4f9   :  { %5867 = vmatmul.mubr.msk.bf16.vlgmr.msra.gmra.mrb[40].mxu1 %vm1387_vm5, %v1386_v25 }
 0x4fa   :  { %2300 = vmatprep.mubr.bf16.mxu1 %v6564_v24 }
 0x4fb   :  { %5875 = vmatpush3.bf16.msra.mxu0 %v6082_v28 }
 0x4fc   :  { %5876 = vmatprep.subr.bf16.mxu0 %v6563_v0 }
 0x4ff   :  { %5877 = vmatpush3.bf16.msra.mxu0 %v6083_v47  ;;  %v6086_v47 = vld [vmem:[#allocation10 + $0x30] sm:$0xff]  }
 0x500   :  { %5878 = vmatprep.subr.bf16.mxu0 %v6563_v0 }
 0x503   :  { %5879 = vmatpush3.bf16.msra.mxu0 %v6084_v42 }
 0x504   :  { %5880 = vmatprep.subr.bf16.mxu0 %v6563_v0 }
 0x507   :  { %5881 = vmatpush3.bf16.msra.mxu0 %v6085_v29 }
 0x508   :  { %5882 = vmatprep.subr.bf16.mxu0 %v6563_v0 }
 0x50b   :  { %5883 = vmatpush3.bf16.msra.mxu0 %v6086_v47  ;;  %v6123_v47 = vld [vmem:[#allocation11 + $0xac] ss:$16 sps:$4 sm:$0xff]  }
 0x50c   :  { %5884 = vmatprep.subr.bf16.mxu0 %v6563_v0 }
 0x592   :  { %v1429_v30 = vpop.f32.mrb[12].mxu0 }
 0x593   :  { %v5826_v32 = vpop.f32.mrb[13].mxu0 }
 0x594   :  { %v1432_v4 = vpop.f32.mrb[14].mxu0  ;;  %v1475_v33 = vpop.f32.mrb[28].mxu1 }
 0x595   :  { %v5827_v34 = vpop.f32.mrb[15].mxu0  ;;  %v5832_v26 = vpop.f32.mrb[29].mxu1 }
 0x596   :  { %v1478_v31 = vpop.f32.mrb[30].mxu1  ;;  %v6087_v34 = vld [vmem:[#allocation10 + $0x38] sm:$0xff]  }
 0x597   :  { %v5833_v40 = vpop.f32.mrb[31].mxu1  ;;  %5885 = vmatpush3.bf16.msra.mxu0 %v6087_v34  ;;  %v6132_v34 = vld [vmem:[#allocation11 + $0xe4] ss:$16 sps:$4 sm:$0xff]  }
 0x5b4   :  { %v1521_v41 = vpop.f32.mrb[16].mxu0 }
 0x5b5   :  { %v1757_v43 = vcombine.low %v1429_v30, %v1521_v41  ;;  %v5838_v48 = vpop.f32.mrb[17].mxu0 }
 0x5b6   :  { %v1524_v49 = vpop.f32.mrb[18].mxu0 }
 0x5b7   :  { %v5839_v51 = vpop.f32.mrb[19].mxu0  ;;  %v1764_v61 = vrot.slane %v1757_v43, %v6796_v6 }
 0x5bc   :  { %v1613_v52 = vpop.f32.mrb[20].mxu0  ;;  %v1567_v55 = vpop.f32.mrb[32].mxu1 }
 0x5bd   :  { %v5850_v54 = vpop.f32.mrb[21].mxu0  ;;  %v1765_v56 = vcombine.low %v1475_v33, %v1567_v55  ;;  %v5844_v57 = vpop.f32.mrb[33].mxu1 }
 0x5be   :  { %v1616_v58 = vpop.f32.mrb[22].mxu0  ;;  %v1570_v59 = vpop.f32.mrb[34].mxu1 }
 0x5bf   :  { %v5851_v60 = vpop.f32.mrb[23].mxu0  ;;  %v1772_v63 = vrot.slane %v1765_v56, %v6796_v6  ;;  %v5845_v1 = vpop.f32.mrb[35].mxu1 }
 0x5c0   :  { %v6090_v1 = vld [vmem:[#allocation11 + $0x4] ss:$16 sps:$4 sm:$0xff]  }
 0x5c1   :  { %v1773_v3 = vcombine.low %v1764_v61, %v1772_v63  ;;  %v1774_v5 = vcombine.high %v1764_v61, %v1772_v63  ;;  %v6088_v63 = vld [vmem:[#allocation11] ss:$16 sps:$4 sm:$0xff]   ;;  %2268 = vmatprep.subr.bf16.mxu1 %v6090_v1 }
 0x5c2   :  { %2269 = vmatpush1.bf16.msra.mxu1 %v6088_v63  ;;  %v5366_v63 = vld [vmem:[%s7435_s8] ss:$0 sm:$0xff] }
 0x5c3   :  { %v1781_v7 = vrot.slane %v1773_v3, %v6799_v12  ;;  %v1788_v35 = vrot.slane %v1774_v5, %v6799_v12  ;;  %v6091_v3 = vld [vmem:[#allocation11 + $0x8] ss:$16 sps:$4 sm:$0xff]   ;;  %v6093_v5 = vld [vmem:[#allocation11 + $0xc] ss:$16 sps:$4 sm:$0xff]  }
 0x5c4   :  { %v1705_v8 = vpop.f32.mrb[24].mxu0  ;;  %v1659_v9 = vpop.f32.mrb[36].mxu1  ;;  %2309 = vmatprep.subr.bf16.mxu0 %v6093_v5  ;;  %v6138_v5 = vld [vmem:[#allocation13] sm:$0xff]  }
 0x5c5   :  { %v1791_v44 = vcombine.low %v1613_v52, %v1705_v8  ;;  %v5862_v11 = vpop.f32.mrb[25].mxu0  ;;  %v1825_v14 = vcombine.low %v1781_v7, %v1788_v35  ;;  %v5354_v50 = vcombine.high %v1781_v7, %v1788_v35  ;;  %v5856_v10 = vpop.f32.mrb[37].mxu1  ;;  %v5356_v7 = vld [vmem:[%s7433_s6] ss:$0 sm:$0xff] }
 0x5c6   :  { %v1708_v15 = vpop.f32.mrb[26].mxu0  ;;  %v1662_v16 = vpop.f32.mrb[38].mxu1  ;;  %v6362_v11 = vld [vmem:[#allocation2] sm:$0xff] }
 0x5c7   :  { %v5863_v17 = vpop.f32.mrb[27].mxu0  ;;  %v5857_v36 = vpop.f32.mrb[39].mxu1  ;;  %v1832_v18 = vrot.slane %v1825_v14, %v6796_v6  ;;  %v1840_v19 = vrot.slane %v5354_v50, %v6796_v6  ;;  %v1798_v38 = vrot.slane %v1791_v44, %v6796_v6  ;;  %v6094_v15 = vld [vmem:[#allocation11 + $0x20] ss:$16 sps:$4 sm:$0xff]   ;;  %v6096_v16 = vld [vmem:[#allocation11 + $0x24] ss:$16 sps:$4 sm:$0xff]  }
 0x5c8   :  { %v6097_v17 = vld [vmem:[#allocation11 + $0x28] ss:$16 sps:$4 sm:$0xff]   ;;  %v6099_v36 = vld [vmem:[#allocation11 + $0x2c] ss:$16 sps:$4 sm:$0xff]   ;;  %2270 = vmatprep.subr.bf16.mxu1 %v6096_v16  ;;  %v6147_v16 = vld [vmem:[#allocation13 + $0x90] sm:$0xff]  }
 0x5c9   :  { %v1858_v37 = vcombine.high %v1832_v18, %v1840_v19  ;;  %v1857_v20 = vcombine.low %v1832_v18, %v1840_v19  ;;  %2271 = vmatpush1.bf16.msra.mxu1 %v6094_v15  ;;  %v6102_v18 = vld [vmem:[#allocation11 + $0x44] ss:$16 sps:$4 sm:$0xff]   ;;  %v6105_v19 = vld [vmem:[#allocation11 + $0x4c] ss:$16 sps:$4 sm:$0xff]  }
 0x5ca   :  { %2272 = vmatprep.subr.bf16.mxu1 %v6102_v18  ;;  %v6146_v15 = vld [vmem:[#allocation13 + $0x10] sm:$0xff]   ;;  %v6150_v18 = vld [vmem:[#allocation13 + $0x18] sm:$0xff]  }
 0x5cb   :  { %v1872_v40 = vrot.slane %v1858_v37, %v6799_v12  ;;  %v1865_v43 = vrot.slane %v1857_v20, %v6799_v12  ;;  %v6100_v37 = vld [vmem:[#allocation11 + $0x40] ss:$16 sps:$4 sm:$0xff]   ;;  %v6103_v20 = vld [vmem:[#allocation11 + $0x48] ss:$16 sps:$4 sm:$0xff]  }
 0x5cc   :  { %v1751_v21 = vpop.f32.mrb[40].mxu1 }
 0x5cd   :  { %v1799_v22 = vcombine.low %v1659_v9, %v1751_v21  ;;  %v5868_v23 = vpop.f32.mrb[41].mxu1  ;;  %v6108_v21 = vld [vmem:[#allocation11 + $0x64] ss:$16 sps:$4 sm:$0xff]   ;;  %2273 = vmatpush1.bf16.msra.mxu1 %v6100_v37 }
 0x5ce   :  { %v1754_v39 = vpop.f32.mrb[42].mxu1  ;;  %v6106_v23 = vld [vmem:[#allocation11 + $0x60] ss:$16 sps:$4 sm:$0xff]   ;;  %2274 = vmatprep.subr.bf16.mxu1 %v6108_v21 }
 0x5cf   :  { %v1806_v25 = vrot.slane %v1799_v22, %v6796_v6  ;;  %v5869_v27 = vpop.f32.mrb[43].mxu1  ;;  %v6111_v22 = vld [vmem:[#allocation11 + $0x6c] ss:$16 sps:$4 sm:$0xff]   ;;  %v6109_v39 = vld [vmem:[#allocation11 + $0x68] ss:$16 sps:$4 sm:$0xff]   ;;  %v6152_v37 = vld [vmem:[#allocation13 + $0x60] sm:$0xff]  }
 0x5d0   :  { %v6112_v27 = vld [vmem:[#allocation11 + $0x80] ss:$16 sps:$4 sm:$0xff]  }
 0x5d1   :  { %v1807_v13 = vcombine.low %v1798_v38, %v1806_v25  ;;  %v1808_v28 = vcombine.high %v1798_v38, %v1806_v25  ;;  %v6114_v38 = vld [vmem:[#allocation11 + $0x84] ss:$16 sps:$4 sm:$0xff]   ;;  %v6117_v25 = vld [vmem:[#allocation11 + $0x8c] ss:$16 sps:$4 sm:$0xff]   ;;  %2275 = vmatpush1.bf16.msra.mxu1 %v6106_v23 }
 0x5d2   :  { %2276 = vmatprep.subr.bf16.mxu1 %v6114_v38  ;;  %v6154_v21 = vld [vmem:[#allocation13 + $0x20] sm:$0xff]   ;;  %v6156_v23 = vld [vmem:[#allocation13 + $0x68] sm:$0xff]  }
 0x5d3   :  { %v1815_v42 = vrot.slane %v1807_v13, %v6799_v12  ;;  %v1822_v29 = vrot.slane %v1808_v28, %v6799_v12  ;;  %v6115_v13 = vld [vmem:[#allocation11 + $0x88] ss:$16 sps:$4 sm:$0xff]   ;;  %v6120_v28 = vld [vmem:[#allocation11 + $0xa4] ss:$16 sps:$4 sm:$0xff]  }
 0x5d4   :  { %v6158_v38 = vld [vmem:[#allocation13 + $0x28] sm:$0xff]  }
 0x5d5   :  { %v1841_v30 = vcombine.low %v1815_v42, %v1822_v29  ;;  %v5355_v32 = vcombine.high %v1815_v42, %v1822_v29  ;;  %2277 = vmatpush1.bf16.msra.mxu1 %v6112_v27  ;;  %v6118_v42 = vld [vmem:[#allocation11 + $0xa0] ss:$16 sps:$4 sm:$0xff]   ;;  %v6121_v29 = vld [vmem:[#allocation11 + $0xa8] ss:$16 sps:$4 sm:$0xff]  }
 0x5d6   :  { %2278 = vmatprep.subr.bf16.mxu1 %v6120_v28  ;;  %v6160_v27 = vld [vmem:[#allocation13 + $0x70] sm:$0xff]  }
 0x5d7   :  { %v1848_v4 = vrot.slane %v1841_v30, %v6796_v6  ;;  %v1856_v33 = vrot.slane %v5355_v32, %v6796_v6  ;;  %v6126_v30 = vld [vmem:[#allocation11 + $0xc4] ss:$16 sps:$4 sm:$0xff]   ;;  %v6129_v32 = vld [vmem:[#allocation11 + $0xcc] ss:$16 sps:$4 sm:$0xff]  }
 0x5d8   :  { %v6162_v28 = vld [vmem:[#allocation13 + $0x30] sm:$0xff]  }
 0x5d9   :  { %v1874_v26 = vcombine.high %v1848_v4, %v1856_v33  ;;  %v1873_v31 = vcombine.low %v1848_v4, %v1856_v33  ;;  %2279 = vmatpush1.bf16.msra.mxu1 %v6118_v42  ;;  %v6124_v4 = vld [vmem:[#allocation11 + $0xc0] ss:$16 sps:$4 sm:$0xff]   ;;  %v6127_v33 = vld [vmem:[#allocation11 + $0xc8] ss:$16 sps:$4 sm:$0xff]  }
 0x5da   :  { %2280 = vmatprep.subr.bf16.mxu1 %v6126_v30  ;;  %v6164_v42 = vld [vmem:[#allocation13 + $0x78] sm:$0xff]  }
 0x5db   :  { %v1888_v41 = vrot.slane %v1874_v26, %v6799_v12  ;;  %v1881_v48 = vrot.slane %v1873_v31, %v6799_v12  ;;  %v6135_v26 = vld [vmem:[#allocation11 + $0xec] ss:$16 sps:$4 sm:$0xff]   ;;  %v6130_v31 = vld [vmem:[#allocation11 + $0xe0] ss:$16 sps:$4 sm:$0xff]  }
 0x5dc   :  { %v6166_v30 = vld [vmem:[#allocation13 + $0x38] sm:$0xff]  }
 0x5dd   :  { %v1891_v49 = vcombine.low %v1872_v40, %v1888_v41  ;;  %v1890_v51 = vcombine.high %v1865_v43, %v1881_v48  ;;  %v1892_v52 = vcombine.high %v1872_v40, %v1888_v41  ;;  %v1889_v55 = vcombine.low %v1865_v43, %v1881_v48  ;;  %2281 = vmatpush1.bf16.msra.mxu1 %v6124_v4  ;;  %v6133_v40 = vld [vmem:[#allocation11 + $0xe8] ss:$16 sps:$4 sm:$0xff]   ;;  %v6136_v41 = vld [vmem:[#allocation13 + $0x40] sm:$0xff]   ;;  %v2086_v4 = vld [vmem:[%s7437_s10] sm:$0xf] }
 0x5de   :  { %2282 = vmatprep.subr.bf16.mxu1 %v6132_v34  ;;  %v6137_v43 = vld [vmem:[#allocation13 + $0xc0] sm:$0xff]   ;;  %v2091_v34 = vrot.slane %v2086_v4, %v6785_v53 }
 0x5df   :  { %1898 = vrot.lane.b32.xlu0 %v1891_v49, %s6560_s2  ;;  %1894 = vrot.lane.b32.xlu1 %v1890_v51, %s6566_s3 }
 0x5e1   :  { %2283 = vmatpush1.bf16.msra.mxu1 %v6130_v31  ;;  %v2095_v31 = vrot.slane %v2086_v4, %v6773_v46 }
 0x5e2   :  { %5616 = vmatprep.subr.bf16.mxu1 %v6136_v41 }
 0x5e3   :  { %1902 = vrot.lane.b32.xlu1 %v1892_v52, %s6567_s19 }
 0x651   :  { %v1895_v54 = vpop.permute.xlu1 %1894  ;;  %v1899_v56 = vpop.permute.xlu0 %1898 }
 0x652   :  { %v1905_v57 = vsel %vm903_vm1, %v1889_v55, %v1895_v54 }
 0x653   :  { %v1907_v59 = vsel %vm1906_vm6, %v1905_v57, %v1899_v56 }
 0x655   :  { %v1903_v58 = vpop.permute.xlu1 %1902 }
 0x656   :  { %v1909_v60 = vsel %vm1908_vm7, %v1907_v59, %v1903_v58 }
 0x657   :  { %v1910_v61 = vpack.c.bf16 %v1909_v60, %v1909_v60  ;;  %v5365_v60 = vld [vmem:[%s7434_s7] ss:$0 sm:$0xff] }
 0x659   :  { %5887 = vmatmul.mubr.bf16.vlgmr.msra.gmra.mrb[28].mxu0 %v1910_v61 }
 0x65a   :  { %2341 = vmatprep.mubr.bf16.mxu0 %v6564_v24  ;;  %2310 = vmatpush1.bf16.msra.mxu0 %v6091_v3 }
 0x65b   :  { %2311 = vmatprep.subr.bf16.mxu0 %v6099_v36  ;;  %v6149_v36 = vld [vmem:[#allocation13 + $0xd8] sm:$0xff]  }
 0x65e   :  { %2312 = vmatpush1.bf16.msra.mxu0 %v6097_v17  ;;  %v6148_v17 = vld [vmem:[#allocation13 + $0x58] sm:$0xff]  }
 0x65f   :  { %2313 = vmatprep.subr.bf16.mxu0 %v6105_v19  ;;  %v6151_v19 = vld [vmem:[#allocation13 + $0x98] sm:$0xff]  }
 0x662   :  { %2314 = vmatpush1.bf16.msra.mxu0 %v6103_v20  ;;  %v6153_v20 = vld [vmem:[#allocation13 + $0xe0] sm:$0xff]  }
 0x663   :  { %2315 = vmatprep.subr.bf16.mxu0 %v6111_v22  ;;  %v6155_v22 = vld [vmem:[#allocation13 + $0xa0] sm:$0xff]  }
 0x666   :  { %2316 = vmatpush1.bf16.msra.mxu0 %v6109_v39  ;;  %v6157_v39 = vld [vmem:[#allocation13 + $0xe8] sm:$0xff]  }
 0x667   :  { %2317 = vmatprep.subr.bf16.mxu0 %v6117_v25  ;;  %v6159_v25 = vld [vmem:[#allocation13 + $0xa8] sm:$0xff]  }
 0x66a   :  { %2318 = vmatpush1.bf16.msra.mxu0 %v6115_v13  ;;  %v6161_v13 = vld [vmem:[#allocation13 + $0xf0] sm:$0xff]  }
 0x66b   :  { %2319 = vmatprep.subr.bf16.mxu0 %v6123_v47  ;;  %v6163_v47 = vld [vmem:[#allocation13 + $0xb0] sm:$0xff]  }
 0x66e   :  { %2320 = vmatpush1.bf16.msra.mxu0 %v6121_v29  ;;  %v6165_v29 = vld [vmem:[#allocation13 + $0xf8] sm:$0xff]  }
 0x66f   :  { %2321 = vmatprep.subr.bf16.mxu0 %v6129_v32  ;;  %v6167_v32 = vld [vmem:[#allocation13 + $0xb8] sm:$0xff]  }
 0x672   :  { %2322 = vmatpush1.bf16.msra.mxu0 %v6127_v33  ;;  %v2102_v33 = vsub.s32 3, %v6770_v45 }
 0x673   :  { %2323 = vmatprep.subr.bf16.mxu0 %v6135_v26  ;;  %v2099_v26 = vrot.slane %v2086_v4, %v6923_v2 }
 0x676   :  { %2324 = vmatpush1.bf16.msra.mxu0 %v6133_v40  ;;  %v2103_v40 = vrot.slane %v2086_v4, %v2102_v33  ;;  %v6187_v4 = vld [vmem:[#allocation8 + $0x128] ss:$12 sps:$4 sm:$0xff]  }
 0x677   :  { %5638 = vmatprep.subr.bf16.mxu0 %v6137_v43 }
 0x72c   :  { %v2016_v35 = vpop.f32.mrb[28].mxu0 }
 0x72d   :  { %v2017_v8 = vadd.f32 %v5356_v7, %v2016_v35  ;;  %v5888_v9 = vpop.f32.mrb[29].mxu0  ;;  %v6139_v7 = vld [vmem:[#allocation13 + $0x80] sm:$0xff]  }
 0x72e   :  { %v2019_v44 = vpop.f32.mrb[30].mxu0  ;;  %v6141_v9 = vld [vmem:[#allocation13 + $0xc8] sm:$0xff]  }
 0x72f   :  { %v7071_v14 = vadd.f32 %v6362_v11, %v2017_v8  ;;  %v5889_v50 = vpop.f32.mrb[31].mxu0  ;;  %v6140_v8 = vld [vmem:[#allocation13 + $0x48] sm:$0xff]  }
 0x730   :  { %v6142_v44 = vld [vmem:[#allocation13 + $0x8] sm:$0xff]   ;;  %v6144_v50 = vld [vmem:[#allocation13 + $0x50] sm:$0xff]  }
 0x731   :  { %2025 = vadd.xlane.f32.xlu1 %v7071_v14  ;;  %v2027_v10 = vmul.f32 %v7071_v14, %v7071_v14  ;;  %v6143_v11 = vld [vmem:[#allocation13 + $0x88] sm:$0xff]  }
 0x733   :  { %2028 = vadd.xlane.f32.xlu0 %v2027_v10  ;;  %v6145_v10 = vld [vmem:[#allocation13 + $0xd0] sm:$0xff]  }
 0x7be   :  { %v2026_v48 = vpop.xlane.xlu1 %2025 }
 0x7bf   :  { %v2030_v49 = vmul.f32 0.0078125, %v2026_v48 }
 0x7c0   :  { %v2029_v51 = vpop.xlane.xlu0 %2028 }
 0x7c1   :  { %v2032_v52 = vmul.f32 %v2030_v49, %v2030_v49  ;;  %v2031_v55 = vmul.f32 0.0078125, %v2029_v51  ;;  %v2035_v58 = vsub.f32 %v7071_v14, %v2030_v49 }
 0x7c3   :  { %v2033_v54 = vsub.f32 %v2031_v55, %v2032_v52 }
 0x7c5   :  { %v2034_v56 = vmax.f32 %v2033_v54, 0.0 }
 0x7c7   :  { %v2036_v57 = vadd.f32 1e-05, %v2034_v56 }
 0x7c9   :  { %6322 = vrsqrt.f32 %v2036_v57 }
 0x7d3   :  { %v6323_v59 = vpop.eup %6322 }
 0x7d4   :  { %v2038_v61 = vmul.f32 %v6323_v59, %v2035_v58 }
 0x7d6   :  { %v2045_v1 = vmul.f32 %v5365_v60, %v2038_v61 }
 0x7d8   :  { %v2052_v3 = vadd.f32 %v5366_v63, %v2045_v1 }
 0x7da   :  { %v2053_v35 = vpack.c.bf16 %v2052_v3, %v2052_v3 }
 0x7dc   :  { %2301 = vmatmul.mubr.bf16.vlgmr.msra.gmra.mrb[44].mxu1 %v2053_v35  ;;  %2342 = vmatmul.mubr.bf16.vlgmr.msra.gmra.mrb[32].mxu0 %v2053_v35 }
 0x7dd   :  { %5617 = vmatpush3.bf16.msra.mxu1 %v6138_v5  ;;  %5639 = vmatpush3.bf16.msra.mxu0 %v6139_v7 }
 0x7de   :  { %5618 = vmatprep.subr.bf16.mxu1 %v6140_v8  ;;  %5640 = vmatprep.subr.bf16.mxu0 %v6141_v9  ;;  %v6168_v8 = vld [vmem:[#allocation8 + $0xc0] ss:$12 sps:$4 sm:$0xff]   ;;  %v6170_v9 = vld [vmem:[#allocation8 + $0xc4] ss:$12 sps:$4 sm:$0xff]  }
 0x7e1   :  { %5619 = vmatpush3.bf16.msra.mxu1 %v6142_v44  ;;  %5641 = vmatpush3.bf16.msra.mxu0 %v6143_v11  ;;  %v6171_v44 = vld [vmem:[#allocation8 + $0xc8] ss:$12 sps:$4 sm:$0xff]  }
 0x7e2   :  { %5620 = vmatprep.subr.bf16.mxu1 %v6144_v50  ;;  %5642 = vmatprep.subr.bf16.mxu0 %v6145_v10  ;;  %v5399_v10 = vld [vmem:[%s7439_s12] ss:$0 sm:$0xff] }
 0x7e5   :  { %5621 = vmatpush3.bf16.msra.mxu1 %v6146_v15  ;;  %5643 = vmatpush3.bf16.msra.mxu0 %v6147_v16 }
 0x7e6   :  { %5622 = vmatprep.subr.bf16.mxu1 %v6148_v17  ;;  %5644 = vmatprep.subr.bf16.mxu0 %v6149_v36 }
 0x7e9   :  { %5623 = vmatpush3.bf16.msra.mxu1 %v6150_v18  ;;  %5645 = vmatpush3.bf16.msra.mxu0 %v6151_v19 }
 0x7ea   :  { %5624 = vmatprep.subr.bf16.mxu1 %v6152_v37  ;;  %5646 = vmatprep.subr.bf16.mxu0 %v6153_v20 }
 0x7ed   :  { %5625 = vmatpush3.bf16.msra.mxu1 %v6154_v21  ;;  %5647 = vmatpush3.bf16.msra.mxu0 %v6155_v22 }
 0x7ee   :  { %5626 = vmatprep.subr.bf16.mxu1 %v6156_v23  ;;  %5648 = vmatprep.subr.bf16.mxu0 %v6157_v39 }
 0x7f1   :  { %5627 = vmatpush3.bf16.msra.mxu1 %v6158_v38  ;;  %5649 = vmatpush3.bf16.msra.mxu0 %v6159_v25  ;;  %v6172_v38 = vld [vmem:[#allocation8 + $0xd8] ss:$12 sps:$4 sm:$0xff]   ;;  %v6174_v25 = vld [vmem:[#allocation8 + $0xdc] ss:$12 sps:$4 sm:$0xff]  }
 0x7f2   :  { %5628 = vmatprep.subr.bf16.mxu1 %v6160_v27  ;;  %5650 = vmatprep.subr.bf16.mxu0 %v6161_v13  ;;  %v6175_v27 = vld [vmem:[#allocation8 + $0xe0] ss:$12 sps:$4 sm:$0xff]  }
 0x7f3   :  { %v6178_v13 = vld [vmem:[#allocation8 + $0xf4] ss:$12 sps:$4 sm:$0xff]  }
 0x7f5   :  { %5629 = vmatpush3.bf16.msra.mxu1 %v6162_v28  ;;  %5651 = vmatpush3.bf16.msra.mxu0 %v6163_v47  ;;  %v6176_v28 = vld [vmem:[#allocation8 + $0xf0] ss:$12 sps:$4 sm:$0xff]   ;;  %v6179_v47 = vld [vmem:[#allocation8 + $0xf8] ss:$12 sps:$4 sm:$0xff]  }
 0x7f6   :  { %5630 = vmatprep.subr.bf16.mxu1 %v6164_v42  ;;  %5652 = vmatprep.subr.bf16.mxu0 %v6165_v29  ;;  %v6180_v42 = vld [vmem:[#allocation8 + $0x108] ss:$12 sps:$4 sm:$0xff]   ;;  %v6183_v29 = vld [vmem:[#allocation8 + $0x110] ss:$12 sps:$4 sm:$0xff]  }
 0x7f9   :  { %5631 = vmatpush3.bf16.msra.mxu1 %v6166_v30  ;;  %5653 = vmatpush3.bf16.msra.mxu0 %v6167_v32  ;;  %v6186_v30 = vld [vmem:[#allocation8 + $0x124] ss:$12 sps:$4 sm:$0xff]   ;;  %v6184_v32 = vld [vmem:[#allocation8 + $0x120] ss:$12 sps:$4 sm:$0xff]  }
 0x7fa   :  { %5890 = vmatprep.subr.bf16.mxu0 %v6563_v0  ;;  %2914 = vmatprep.subr.bf16.mxu1 %v6170_v9  ;;  %v7122_v9 = vld [vmem:[%s7431_s4 + $0x3] sm:$0x7] }
 0x8af   :  { %v2302_v41 = vpop.f32.mrb[44].mxu1  ;;  %v2343_v43 = vpop.f32.mrb[32].mxu0 }
 0x8b0   :  { %v2303_v48 = vadd.f32 %v2302_v41, %v2091_v34  ;;  %v2344_v49 = vadd.f32 %v2343_v43, %v2099_v26  ;;  %v2304_v51 = vpop.f32.mrb[45].mxu1  ;;  %v2345_v52 = vpop.f32.mrb[33].mxu0  ;;  %v6190_v34 = vld [vmem:[#allocation8 + $0x13c] ss:$12 sps:$4 sm:$0xff]   ;;  %v6188_v26 = vld [vmem:[#allocation8 + $0x138] ss:$12 sps:$4 sm:$0xff]  }
 0x8b1   :  { %v2305_v55 = vadd.f32 %v2304_v51, %v2095_v31  ;;  %v2346_v54 = vadd.f32 %v2345_v52, %v2103_v40  ;;  %v2306_v56 = vpop.f32.mrb[46].mxu1  ;;  %v2347_v57 = vpop.f32.mrb[34].mxu0  ;;  %v6191_v31 = vld [vmem:[#allocation8 + $0x140] ss:$12 sps:$4 sm:$0xff]   ;;  %v6192_v41 = vld [vmem:[#allocation8 + $0x150] ss:$12 sps:$4 sm:$0xff]  }
 0x8b2   :  { %v2350_v58 = vmax.f32 %v2303_v48, 0.0  ;;  %v2352_v59 = vmax.f32 %v2344_v49, 0.0  ;;  %v2307_v60 = vpop.f32.mrb[47].mxu1  ;;  %v2348_v61 = vpop.f32.mrb[35].mxu0  ;;  %v6194_v40 = vld [vmem:[#allocation8 + $0x154] ss:$12 sps:$4 sm:$0xff]  }
 0x8b3   :  { %v2351_v63 = vmax.f32 %v2305_v55, 0.0  ;;  %v2353_v1 = vmax.f32 %v2346_v54, 0.0  ;;  %v6195_v43 = vld [vmem:[#allocation8 + $0x158] ss:$12 sps:$4 sm:$0xff]   ;;  %v6196_v49 = vld [vmem:[#allocation8 + $0x168] ss:$12 sps:$4 sm:$0xff]  }
 0x8b4   :  { %v2354_v7 = vpack.c.bf16 %v2350_v58, %v2350_v58  ;;  %v2356_v35 = vpack.c.bf16 %v2352_v59, %v2352_v59  ;;  %v6198_v48 = vld [vmem:[#allocation8 + $0x16c] ss:$12 sps:$4 sm:$0xff]   ;;  %v6199_v51 = vld [vmem:[#allocation8 + $0x170] ss:$12 sps:$4 sm:$0xff]  }
 0x8b5   :  { %v2355_v3 = vpack.c.bf16 %v2351_v63, %v2351_v63  ;;  %v2357_v5 = vpack.c.bf16 %v2353_v1, %v2353_v1  ;;  %v5432_v1 = vld [vmem:[#allocation5 + $0x1] ss:$0 sm:$0xff] }
 0x8b7   :  { %2653 = vmatprep.mubr.bf16.mxu1 %v2355_v3  ;;  %2693 = vmatprep.mubr.bf16.mxu0 %v2357_v5  ;;  %v5433_v5 = vld [vmem:[#allocation7 + $0x1] ss:$0 sm:$0xff] }
 0x8b8   :  { %2654 = vmatmul.mubr.bf16.vlgmr.msra.gmra.mrb[48].mxu1 %v2354_v7  ;;  %2694 = vmatmul.mubr.bf16.vlgmr.msra.gmra.mrb[36].mxu0 %v2356_v35 }
 0x8b9   :  { %2946 = vmatprep.mubr.bf16.mxu1 %v6564_v24  ;;  %5906 = vmatprep.mubr.msk.bf16.mxu0 %vm6565_vm0, %v6563_v0 }
 0x8ba   :  { %5891 = vmatpush3.bf16.msra.mxu0 %v6171_v44  ;;  %2915 = vmatpush1.bf16.msra.mxu1 %v6168_v8  ;;  %v2778_v44 = vrot.slane %v7122_v9, %v6773_v46 }
 0x8bb   :  { %5892 = vmatprep.subr.bf16.mxu0 %v6563_v0  ;;  %2916 = vmatprep.subr.bf16.mxu1 %v6174_v25 }
 0x8be   :  { %2917 = vmatpush1.bf16.msra.mxu1 %v6172_v38  ;;  %5893 = vmatpush3.bf16.msra.mxu0 %v6175_v27 }
 0x8bf   :  { %5894 = vmatprep.subr.bf16.mxu0 %v6563_v0  ;;  %2918 = vmatprep.subr.bf16.mxu1 %v6178_v13 }
 0x8c2   :  { %2919 = vmatpush1.bf16.msra.mxu1 %v6176_v28  ;;  %5895 = vmatpush3.bf16.msra.mxu0 %v6179_v47 }
 0x8c3   :  { %5896 = vmatprep.subr.bf16.mxu0 %v6563_v0 }
 0x8c6   :  { %5897 = vmatpush3.bf16.msra.mxu0 %v6183_v29 }
 0x8c7   :  { %5898 = vmatprep.subr.bf16.mxu0 %v6563_v0 }
 0x8ca   :  { %5899 = vmatpush3.bf16.msra.mxu0 %v6187_v4 }
 0x8cb   :  { %5900 = vmatprep.subr.bf16.mxu0 %v6563_v0 }
 0x8ce   :  { %5901 = vmatpush3.bf16.msra.mxu0 %v6191_v31 }
 0x8cf   :  { %5902 = vmatprep.subr.bf16.mxu0 %v6563_v0 }
 0x8d2   :  { %5903 = vmatpush3.bf16.msra.mxu0 %v6195_v43 }
 0x8d3   :  { %5904 = vmatprep.subr.bf16.mxu0 %v6563_v0 }
 0x8d6   :  { %5905 = vmatpush3.bf16.msra.mxu0 %v6199_v51 }
 0x8d7   :  { %5934 = vmatprep.subr.bf16.mxu0 %v6563_v0 }
 0x98b   :  { %v5632_v11 = vpop.f32.mrb[48].mxu1  ;;  %v5654_v50 = vpop.f32.mrb[36].mxu0 }
 0x98c   :  { %v5633_v15 = vpop.f32.mrb[49].mxu1  ;;  %v5655_v16 = vpop.f32.mrb[37].mxu0 }
 0x98d   :  { %v5634_v17 = vadd.f32 %v5633_v15, %v5632_v11  ;;  %v5656_v36 = vadd.f32 %v5655_v16, %v5654_v50  ;;  %v5635_v18 = vpop.f32.mrb[50].mxu1  ;;  %v5657_v19 = vpop.f32.mrb[38].mxu0  ;;  %v2774_v16 = vrot.slane %v7122_v9, %v6785_v53 }
 0x98e   :  { %v5636_v37 = vpop.f32.mrb[51].mxu1  ;;  %v5658_v20 = vpop.f32.mrb[39].mxu0 }
 0x98f   :  { %v2656_v21 = vadd.f32 %v5634_v17, %v5399_v10 }
 0x991   :  { %v2696_v22 = vadd.f32 %v5656_v36, %v2656_v21 }
 0x993   :  { %v7101_v23 = vadd.f32 %v2696_v22, %v7071_v14  ;;  %v6182_v14 = vld [vmem:[#allocation8 + $0x10c] ss:$12 sps:$4 sm:$0xff]  }
 0x994   :  { %2920 = vmatprep.subr.bf16.mxu1 %v6182_v14 }
 0x995   :  { %2706 = vadd.xlane.f32.xlu0 %v7101_v23  ;;  %v2708_v39 = vmul.f32 %v7101_v23, %v7101_v23  ;;  %2921 = vmatpush1.bf16.msra.mxu1 %v6180_v42 }
 0x996   :  { %2922 = vmatprep.subr.bf16.mxu1 %v6186_v30 }
 0x997   :  { %2709 = vadd.xlane.f32.xlu1 %v2708_v39 }
 0x999   :  { %2923 = vmatpush1.bf16.msra.mxu1 %v6184_v32 }
 0x99a   :  { %2924 = vmatprep.subr.bf16.mxu1 %v6190_v34 }
 0x99d   :  { %2925 = vmatpush1.bf16.msra.mxu1 %v6188_v26 }
 0x99e   :  { %2926 = vmatprep.subr.bf16.mxu1 %v6194_v40 }
 0x9a1   :  { %2927 = vmatpush1.bf16.msra.mxu1 %v6192_v41 }
 0x9a2   :  { %2928 = vmatprep.subr.bf16.mxu1 %v6198_v48 }
 0x9a5   :  { %2929 = vmatpush1.bf16.msra.mxu1 %v6196_v49 }
 0x9a6   :  { %5910 = vmatprep.subr.bf16.mxu1 %v6563_v0 }
 0xa22   :  { %v2707_v52 = vpop.xlane.xlu0 %2706 }
 0xa23   :  { %v2711_v55 = vmul.f32 0.0078125, %v2707_v52 }
 0xa24   :  { %v2710_v54 = vpop.xlane.xlu1 %2709 }
 0xa25   :  { %v2713_v56 = vmul.f32 %v2711_v55, %v2711_v55  ;;  %v2712_v57 = vmul.f32 0.0078125, %v2710_v54  ;;  %v2716_v61 = vsub.f32 %v7101_v23, %v2711_v55 }
 0xa27   :  { %v2714_v58 = vsub.f32 %v2712_v57, %v2713_v56 }
 0xa29   :  { %v2715_v59 = vmax.f32 %v2714_v58, 0.0 }
 0xa2b   :  { %v2717_v60 = vadd.f32 1e-05, %v2715_v59 }
 0xa2d   :  { %6324 = vrsqrt.f32 %v2717_v60 }
 0xa37   :  { %v6325_v63 = vpop.eup %6324 }
 0xa38   :  { %v2719_v3 = vmul.f32 %v6325_v63, %v2716_v61 }
 0xa3a   :  { %v2726_v7 = vmul.f32 %v5432_v1, %v2719_v3 }
 0xa3c   :  { %v2733_v35 = vadd.f32 %v5433_v5, %v2726_v7 }
 0xa3e   :  { %v2734_v8 = vpack.c.bf16 %v2733_v35, %v2733_v35 }
 0xa40   :  { %2947 = vmatmul.mubr.bf16.vlgmr.msra.gmra.mrb[52].mxu1 %v2734_v8  ;;  %5907 = vmatmul.mubr.bf16.vlgmr.msra.gmra.mrb[40].mxu0 %v2734_v8 }
 0xa41   :  { %5912 = vmatprep.mubr.msk.bf16.mxu1 %vm6565_vm0, %v6563_v0  ;;  %5936 = vmatprep.mubr.msk.bf16.mxu0 %vm6565_vm0, %v6563_v0 }
 0xb13   :  { %v2948_v11 = vpop.f32.mrb[52].mxu1  ;;  %v7126_v50 = vpop.f32.mrb[40].mxu0 }
 0xb14   :  { %v2950_v10 = vpop.f32.mrb[53].mxu1  ;;  %v5908_v15 = vpop.f32.mrb[41].mxu0  ;;  %v2949_v20 = vadd.f32 %v2948_v11, %v2774_v16 }
 0xb15   :  { %v2951_v17 = vadd.f32 %v2950_v10, %v2778_v44  ;;  %v2952_v36 = vpop.f32.mrb[54].mxu1  ;;  %v2992_v18 = vpop.f32.mrb[42].mxu0 }
 0xb16   :  { %v2953_v19 = vpop.f32.mrb[55].mxu1  ;;  %v5909_v37 = vpop.f32.mrb[43].mxu0 }
 0xb17   :  { %3153 = vrot.lane.b32.xlu1 %v2951_v17, %s6560_s2  ;;  %3150 = vrot.lane.b32.xlu0 %v2951_v17, %s6567_s19 }
 0xb1b   :  { %3156 = vrot.lane.b32.xlu1 %v2951_v17, %s6566_s3  ;;  %2996 = vrot.lane.b32.xlu0 %v2949_v20, %s6567_s19 }
 0xb1f   :  { %2999 = vrot.lane.b32.xlu1 %v2949_v20, %s6560_s2  ;;  %3002 = vrot.lane.b32.xlu0 %v2949_v20, %s6566_s3 }
 0xb89   :  { %v3154_v21 = vpop.permute.xlu1 %3153  ;;  %v3151_v22 = vpop.permute.xlu0 %3150 }
 0xb8a   :  { %v3159_v39 = vcombine.low %v2951_v17, %v3154_v21  ;;  %v3160_v38 = vcombine.high %v2951_v17, %v3154_v21 }
 0xb8c   :  { %v3167_v47 = vrot.slane %v3159_v39, %v6796_v6  ;;  %v3174_v14 = vrot.slane %v3160_v38, %v6796_v6 }
 0xb8d   :  { %v3157_v25 = vpop.permute.xlu1 %3156  ;;  %v2997_v27 = vpop.permute.xlu0 %2996 }
 0xb8e   :  { %v3175_v13 = vcombine.low %v3151_v22, %v3157_v25  ;;  %v3176_v28 = vcombine.high %v3151_v22, %v3157_v25 }
 0xb90   :  { %v3183_v42 = vrot.slane %v3175_v13, %v6796_v6  ;;  %v3190_v29 = vrot.slane %v3176_v28, %v6796_v6 }
 0xb91   :  { %v3000_v30 = vpop.permute.xlu1 %2999  ;;  %v3003_v32 = vpop.permute.xlu0 %3002 }
 0xb92   :  { %v3191_v4 = vcombine.low %v3167_v47, %v3183_v42  ;;  %v3192_v34 = vcombine.high %v3167_v47, %v3183_v42  ;;  %v3207_v26 = vcombine.low %v3174_v14, %v3190_v29  ;;  %v3208_v31 = vcombine.high %v3174_v14, %v3190_v29 }
 0xb93   :  { %v3005_v40 = vcombine.low %v2949_v20, %v3000_v30  ;;  %v3006_v41 = vcombine.high %v2949_v20, %v3000_v30  ;;  %v3021_v43 = vcombine.low %v2997_v27, %v3003_v32  ;;  %v3022_v48 = vcombine.high %v2997_v27, %v3003_v32 }
 0xb94   :  { %v3199_v49 = vrot.slane %v3191_v4, %v6799_v12  ;;  %v3206_v51 = vrot.slane %v3192_v34, %v6799_v12  ;;  %v3215_v52 = vrot.slane %v3207_v26, %v6799_v12  ;;  %v3222_v55 = vrot.slane %v3208_v31, %v6799_v12 }
 0xb95   :  { %v3013_v54 = vrot.slane %v3005_v40, %v6796_v6  ;;  %v3020_v56 = vrot.slane %v3006_v41, %v6796_v6  ;;  %v3029_v57 = vrot.slane %v3021_v43, %v6796_v6  ;;  %v3036_v58 = vrot.slane %v3022_v48, %v6796_v6 }
 0xb96   :  { %v3227_v59 = vcombine.low %v3199_v49, %v3206_v51  ;;  %v5461_v60 = vcombine.high %v3199_v49, %v3206_v51  ;;  %v3261_v61 = vcombine.low %v3215_v52, %v3222_v55  ;;  %v5462_v63 = vcombine.high %v3215_v52, %v3222_v55 }
 0xb97   :  { %v3037_v1 = vcombine.low %v3013_v54, %v3029_v57  ;;  %v3038_v3 = vcombine.high %v3013_v54, %v3029_v57  ;;  %v3053_v5 = vcombine.low %v3020_v56, %v3036_v58  ;;  %v3054_v7 = vcombine.high %v3020_v56, %v3036_v58 }
 0xb98   :  { %v3234_v35 = vrot.slane %v3227_v59, %v6796_v6  ;;  %v3242_v8 = vrot.slane %v5461_v60, %v6796_v6  ;;  %v3268_v44 = vrot.slane %v3261_v61, %v6796_v6  ;;  %v3276_v11 = vrot.slane %v5462_v63, %v6796_v6 }
 0xb99   :  { %v3045_v10 = vrot.slane %v3037_v1, %v6799_v12  ;;  %v3052_v15 = vrot.slane %v3038_v3, %v6799_v12  ;;  %v3061_v16 = vrot.slane %v3053_v5, %v6799_v12  ;;  %v3068_v17 = vrot.slane %v3054_v7, %v6799_v12 }
 0xb9a   :  { %v3243_v36 = vcombine.low %v3234_v35, %v3242_v8  ;;  %v3277_v18 = vcombine.low %v3268_v44, %v3276_v11  ;;  %v3278_v38 = vcombine.high %v3268_v44, %v3276_v11  ;;  %v3244_v43 = vcombine.high %v3234_v35, %v3242_v8 }
 0xb9b   :  { %v3073_v19 = vcombine.low %v3045_v10, %v3052_v15  ;;  %v5459_v37 = vcombine.high %v3045_v10, %v3052_v15  ;;  %v3107_v20 = vcombine.low %v3061_v16, %v3068_v17  ;;  %v5460_v21 = vcombine.high %v3061_v16, %v3068_v17 }
 0xb9c   :  { %v3251_v22 = vrot.slane %v3243_v36, %v6799_v12  ;;  %v3285_v39 = vrot.slane %v3277_v18, %v6799_v12  ;;  %v3292_v34 = vrot.slane %v3278_v38, %v6799_v12  ;;  %v3258_v54 = vrot.slane %v3244_v43, %v6799_v12 }
 0xb9d   :  { %v3080_v25 = vrot.slane %v3073_v19, %v6796_v6  ;;  %v3088_v27 = vrot.slane %v5459_v37, %v6796_v6  ;;  %v3114_v13 = vrot.slane %v3107_v20, %v6796_v6  ;;  %v3122_v28 = vrot.slane %v5460_v21, %v6796_v6 }
 0xb9e   :  { %v3295_v47 = vpack.c.bf16 %v3251_v22, %v3251_v22  ;;  %v3299_v14 = vpack.c.bf16 %v3285_v39, %v3285_v39  ;;  %v3259_v4 = vcombine.high %v3251_v22, %v6563_v0  ;;  %v3301_v41 = vpack.c.bf16 %v3292_v34, %v3292_v34 }
 0xb9f   :  { %v3089_v42 = vcombine.low %v3080_v25, %v3088_v27  ;;  %v3123_v29 = vcombine.low %v3114_v13, %v3122_v28  ;;  %v3124_v48 = vcombine.high %v3114_v13, %v3122_v28  ;;  %v3297_v58 = vpack.c.bf16 %v3258_v54, %v3258_v54 }
 0xba0   :  { %v3461_v30 = vsel %vm903_vm1, %v3295_v47, 0  ;;  %v3645_v32 = vsel %vm903_vm1, %v3299_v14, 0  ;;  %v3296_v40 = vpack.c.bf16 %v3259_v4, %v3259_v4  ;;  %v3737_v55 = vsel %vm903_vm1, %v3301_v41, 0 }
 0xba1   :  { %5911 = vmatpush3.bf16.xpose.msra.mxu1 %v3461_v30  ;;  %5935 = vmatpush3.bf16.xpose.msra.mxu0 %v3645_v32  ;;  %v3097_v26 = vrot.slane %v3089_v42, %v6799_v12  ;;  %v3131_v31 = vrot.slane %v3123_v29, %v6799_v12  ;;  %v3138_v57 = vrot.slane %v3124_v48, %v6799_v12  ;;  %v3553_v63 = vsel %vm903_vm1, %v3297_v58, 0 }
 0xba2   :  { %5916 = vmatprep.subr.bf16.mxu1 %v6563_v0  ;;  %5946 = vmatprep.subr.bf16.mxu0 %v6563_v0  ;;  %v3507_v52 = vsel %vm903_vm1, %v3296_v40, 0  ;;  %v3090_v59 = vcombine.high %v3080_v25, %v3088_v27  ;;  %v3260_v1 = vcombine.high %v3258_v54, %v6563_v0  ;;  %v3293_v8 = vcombine.high %v3285_v39, %v6563_v0 }
 0xba3   :  { %v3141_v49 = vpack.c.bf16 %v3097_v26, %v3097_v26  ;;  %v3145_v51 = vpack.c.bf16 %v3131_v31, %v3131_v31  ;;  %v3105_v56 = vcombine.high %v3097_v26, %v6563_v0  ;;  %v3147_v61 = vpack.c.bf16 %v3138_v57, %v3138_v57 }
 0xba4   :  { %v3104_v3 = vrot.slane %v3090_v59, %v6799_v12  ;;  %v3298_v5 = vpack.c.bf16 %v3260_v1, %v3260_v1  ;;  %v3300_v11 = vpack.c.bf16 %v3293_v8, %v3293_v8  ;;  %v3294_v16 = vcombine.high %v3292_v34, %v6563_v0 }
 0xba5   :  { %v3142_v60 = vpack.c.bf16 %v3105_v56, %v3105_v56  ;;  %v3139_v17 = vcombine.high %v3131_v31, %v6563_v0  ;;  %v3140_v37 = vcombine.high %v3138_v57, %v6563_v0 }
 0xba6   :  { %v3143_v7 = vpack.c.bf16 %v3104_v3, %v3104_v3  ;;  %v3599_v35 = vsel %vm903_vm1, %v3298_v5, 0  ;;  %v3106_v44 = vcombine.high %v3104_v3, %v6563_v0  ;;  %v3691_v15 = vsel %vm903_vm1, %v3300_v11, 0 }
 0xba7   :  { %v3302_v36 = vpack.c.bf16 %v3294_v16, %v3294_v16  ;;  %v3146_v18 = vpack.c.bf16 %v3139_v17, %v3139_v17  ;;  %v3148_v20 = vpack.c.bf16 %v3140_v37, %v3140_v37 }
 0xba8   :  { %5913 = vmatmul.mubr.msk.bf16.vlgmr.msra.gmra.mrb[56].mxu1 %vm903_vm1, %v3141_v49  ;;  %5937 = vmatmul.mubr.msk.bf16.vlgmr.msra.gmra.mrb[44].mxu0 %vm903_vm1, %v3145_v51  ;;  %v3144_v10 = vpack.c.bf16 %v3106_v44, %v3106_v44 }
 0xba9   :  { %5917 = vmatpush3.bf16.xpose.msra.mxu1 %v3507_v52  ;;  %5947 = vmatpush3.bf16.xpose.msra.mxu0 %v3737_v55  ;;  %v3783_v19 = vsel %vm903_vm1, %v3302_v36, 0 }
 0xbaa   :  { %5918 = vmatprep.mubr.msk.bf16.mxu1 %vm6565_vm0, %v6563_v0  ;;  %5948 = vmatprep.mubr.msk.bf16.mxu0 %vm6565_vm0, %v6563_v0 }
 0xbab   :  { %5922 = vmatprep.subr.bf16.mxu1 %v6563_v0  ;;  %5958 = vmatprep.subr.bf16.mxu0 %v6563_v0 }
 0xbb0   :  { %5919 = vmatmul.mubr.msk.bf16.vlgmr.msra.gmra.mrb[60].mxu1 %vm903_vm1, %v3142_v60  ;;  %5949 = vmatmul.mubr.msk.bf16.vlgmr.msra.gmra.mrb[48].mxu0 %vm903_vm1, %v3147_v61 }
 0xbb1   :  { %5923 = vmatpush3.bf16.xpose.msra.mxu1 %v3553_v63  ;;  %5924 = vmatprep.mubr.msk.bf16.mxu1 %vm6565_vm0, %v6563_v0 }
 0xbb2   :  { %5928 = vmatprep.subr.bf16.mxu1 %v6563_v0  ;;  %5960 = vmatprep.mubr.msk.bf16.mxu0 %vm6565_vm0, %v6563_v0 }
 0xbb8   :  { %5925 = vmatmul.mubr.msk.bf16.vlgmr.msra.gmra.mrb[64].mxu1 %vm903_vm1, %v3143_v7 }
 0xbb9   :  { %5929 = vmatpush3.bf16.xpose.msra.mxu1 %v3599_v35  ;;  %5930 = vmatprep.mubr.msk.bf16.mxu1 %vm6565_vm0, %v6563_v0 }
 0xbba   :  { %5940 = vmatprep.subr.bf16.mxu1 %v6563_v0 }
 0xbc0   :  { %5931 = vmatmul.mubr.msk.bf16.vlgmr.msra.gmra.mrb[68].mxu1 %vm903_vm1, %v3144_v10 }
 0xbc1   :  { %5941 = vmatpush3.bf16.xpose.msra.mxu1 %v3691_v15  ;;  %5942 = vmatprep.mubr.msk.bf16.mxu1 %vm6565_vm0, %v6563_v0 }
 0xbc2   :  { %5952 = vmatprep.subr.bf16.mxu1 %v6563_v0 }
 0xbc8   :  { %5943 = vmatmul.mubr.msk.bf16.vlgmr.msra.gmra.mrb[72].mxu1 %vm903_vm1, %v3146_v18 }
 0xbc9   :  { %5953 = vmatpush3.bf16.xpose.msra.mxu1 %v3783_v19  ;;  %5954 = vmatprep.mubr.msk.bf16.mxu1 %vm6565_vm0, %v6563_v0 }
 0xbca   :  { %5964 = vmatprep.subr.bf16.mxu1 %v6563_v0 }
 0xbd0   :  { %5955 = vmatmul.mubr.msk.bf16.vlgmr.msra.gmra.mrb[76].mxu1 %vm903_vm1, %v3148_v20 }
 0xbd1   :  { %5966 = vmatprep.mubr.msk.bf16.mxu1 %vm6565_vm0, %v6563_v0 }
 0xc7b   :  { %v3497_v21 = vpop.f32.mrb[56].mxu1  ;;  %v3681_v22 = vpop.f32.mrb[44].mxu0 }
 0xc7c   :  { %v3825_v39 = vmul.f32 0.17677669, %v3497_v21  ;;  %v5914_v38 = vpop.f32.mrb[57].mxu1  ;;  %v5938_v25 = vpop.f32.mrb[45].mxu0  ;;  %v3829_v51 = vmul.f32 0.17677669, %v3681_v22 }
 0xc7d   :  { %v3500_v27 = vpop.f32.mrb[58].mxu1  ;;  %v3684_v13 = vpop.f32.mrb[46].mxu0 }
 0xc7e   :  { %v5915_v28 = vpop.f32.mrb[59].mxu1  ;;  %v5939_v47 = vpop.f32.mrb[47].mxu0  ;;  %v3833_v14 = vsel %vm6888_vm2, %v3825_v39, -1e+30  ;;  %v3837_v60 = vsel %vm6888_vm2, %v3829_v51, -1e+30  ;;  %v2782_v27 = vrot.slane %v7122_v9, %v6923_v2 }
 0xc7f   :  { %v3841_v42 = vsel %vm1290_vm3, %v3833_v14, -inf  ;;  %v3853_v63 = vsel %vm1290_vm3, %v3837_v60, -inf }
 0xc80   :  { %3842 = vmax.xlane.f32.xlu1 %v3841_v42  ;;  %v7243_v13 = vadd.f32 %v7126_v50, %v2782_v27 }
 0xc83   :  { %v3543_v29 = vpop.f32.mrb[60].mxu1  ;;  %v3773_v30 = vpop.f32.mrb[48].mxu0 }
 0xc84   :  { %v3826_v32 = vmul.f32 0.17677669, %v3543_v29  ;;  %v5920_v4 = vpop.f32.mrb[61].mxu1  ;;  %v5950_v34 = vpop.f32.mrb[49].mxu0  ;;  %v3831_v59 = vmul.f32 0.17677669, %v3773_v30 }
 0xc85   :  { %v3546_v26 = vpop.f32.mrb[62].mxu1  ;;  %v3776_v31 = vpop.f32.mrb[50].mxu0 }
 0xc86   :  { %v5921_v40 = vpop.f32.mrb[63].mxu1  ;;  %v5951_v41 = vpop.f32.mrb[51].mxu0  ;;  %v3834_v43 = vsel %vm6888_vm2, %v3826_v32, -1e+30  ;;  %v3839_v5 = vsel %vm6888_vm2, %v3831_v59, -1e+30 }
 0xc87   :  { %v3844_v48 = vsel %vm1290_vm3, %v3834_v43, -inf  ;;  %v3859_v44 = vsel %vm1290_vm3, %v3839_v5, -inf }
 0xc88   :  { %3845 = vmax.xlane.f32.xlu0 %v3844_v48 }
 0xc8b   :  { %v3589_v49 = vpop.f32.mrb[64].mxu1 }
 0xc8c   :  { %v3827_v52 = vmul.f32 0.17677669, %v3589_v49  ;;  %v5926_v55 = vpop.f32.mrb[65].mxu1 }
 0xc8d   :  { %v3592_v54 = vpop.f32.mrb[66].mxu1 }
 0xc8e   :  { %v5927_v56 = vpop.f32.mrb[67].mxu1  ;;  %v3835_v57 = vsel %vm6888_vm2, %v3827_v52, -1e+30 }
 0xc8f   :  { %v3847_v58 = vsel %vm1290_vm3, %v3835_v57, -inf }
 0xc90   :  { %3848 = vmax.xlane.f32.xlu0 %v3847_v58 }
 0xc93   :  { %v3635_v61 = vpop.f32.mrb[68].mxu1 }
 0xc94   :  { %v3828_v1 = vmul.f32 0.17677669, %v3635_v61  ;;  %3854 = vmax.xlane.f32.xlu0 %v3853_v63  ;;  %v5932_v3 = vpop.f32.mrb[69].mxu1 }
 0xc95   :  { %v3638_v7 = vpop.f32.mrb[70].mxu1 }
 0xc96   :  { %v5933_v35 = vpop.f32.mrb[71].mxu1  ;;  %v3836_v8 = vsel %vm6888_vm2, %v3828_v1, -1e+30 }
 0xc97   :  { %v3850_v11 = vsel %vm1290_vm3, %v3836_v8, -inf }
 0xc98   :  { %3860 = vmax.xlane.f32.xlu0 %v3859_v44  ;;  %3851 = vmax.xlane.f32.xlu1 %v3850_v11 }
 0xc9b   :  { %v3727_v10 = vpop.f32.mrb[72].mxu1 }
 0xc9c   :  { %v3830_v15 = vmul.f32 0.17677669, %v3727_v10  ;;  %v5944_v16 = vpop.f32.mrb[73].mxu1 }
 0xc9d   :  { %v3730_v17 = vpop.f32.mrb[74].mxu1 }
 0xc9e   :  { %v5945_v36 = vpop.f32.mrb[75].mxu1  ;;  %v3838_v18 = vsel %vm6888_vm2, %v3830_v15, -1e+30 }
 0xc9f   :  { %v3856_v19 = vsel %vm1290_vm3, %v3838_v18, -inf }
 0xca0   :  { %3857 = vmax.xlane.f32.xlu1 %v3856_v19 }
 0xca3   :  { %v3819_v37 = vpop.f32.mrb[76].mxu1 }
 0xca4   :  { %v3832_v20 = vmul.f32 0.17677669, %v3819_v37  ;;  %v5956_v21 = vpop.f32.mrb[77].mxu1 }
 0xca5   :  { %v3822_v22 = vpop.f32.mrb[78].mxu1 }
 0xca6   :  { %v5957_v39 = vpop.f32.mrb[79].mxu1  ;;  %v3840_v38 = vsel %vm6888_vm2, %v3832_v20, -1e+30 }
 0xca7   :  { %v3862_v25 = vsel %vm1290_vm3, %v3840_v38, -inf }
 0xca8   :  { %3863 = vmax.xlane.f32.xlu1 %v3862_v25 }
 0xcb9   :  { %3307 = vrot.lane.b32.xlu1 %v7243_v13, %s6560_s2 }
 0xd0d   :  { %v3843_v28 = vpop.xlane.xlu1 %3842 }
 0xd0e   :  { %v3865_v47 = vsub.f32 %v3833_v14, %v3843_v28 }
 0xd10   :  { %v3873_v42 = vmul.f32 1.442695, %v3865_v47 }
 0xd12   :  { %6326 = vpow2.f32 %v3873_v42 }
 0xd15   :  { %v3846_v29 = vpop.xlane.xlu0 %3845 }
 0xd16   :  { %v3866_v30 = vsub.f32 %v3834_v43, %v3846_v29 }
 0xd18   :  { %v3875_v62 = vmul.f32 1.442695, %v3866_v30 }
 0xd1a   :  { %6328 = vpow2.f32 %v3875_v62 }
 0xd1c   :  { %v7247_v32 = vpop.eup %6326 }
 0xd1d   :  { %v3889_v4 = vsel %vm1290_vm3, %v7247_v32, 0.0  ;;  %v3849_v14 = vpop.xlane.xlu0 %3848 }
 0xd1e   :  { %3890 = vadd.xlane.f32.xlu0 %v3889_v4  ;;  %v3867_v34 = vsub.f32 %v3835_v57, %v3849_v14 }
 0xd20   :  { %v3877_v40 = vmul.f32 1.442695, %v3867_v34 }
 0xd21   :  { %v3855_v26 = vpop.xlane.xlu0 %3854 }
 0xd22   :  { %v3869_v41 = vsub.f32 %v3837_v60, %v3855_v26  ;;  %6330 = vpow2.f32 %v3877_v40 }
 0xd24   :  { %v7251_v9 = vpop.eup %6328  ;;  %v3881_v49 = vmul.f32 1.442695, %v3869_v41 }
 0xd25   :  { %v3892_v50 = vsel %vm1290_vm3, %v7251_v9, 0.0  ;;  %v3852_v31 = vpop.xlane.xlu1 %3851  ;;  %v3861_v51 = vpop.xlane.xlu0 %3860 }
 0xd26   :  { %3893 = vadd.xlane.f32.xlu1 %v3892_v50  ;;  %v3868_v48 = vsub.f32 %v3836_v8, %v3852_v31  ;;  %v3871_v54 = vsub.f32 %v3839_v5, %v3861_v51  ;;  %6332 = vpow2.f32 %v3881_v49 }
 0xd28   :  { %v3879_v56 = vmul.f32 1.442695, %v3868_v48  ;;  %v3885_v61 = vmul.f32 1.442695, %v3871_v54 }
 0xd2a   :  { %6334 = vpow2.f32 %v3879_v56 }
 0xd2c   :  { %v7259_v63 = vpop.eup %6330 }
 0xd2d   :  { %v3858_v43 = vpop.xlane.xlu1 %3857  ;;  %v3895_v60 = vsel %vm1290_vm3, %v7259_v63, 0.0 }
 0xd2e   :  { %v3870_v52 = vsub.f32 %v3838_v18, %v3858_v43 }
 0xd30   :  { %v3883_v58 = vmul.f32 1.442695, %v3870_v52  ;;  %v7263_v1 = vpop.eup %6332 }
 0xd31   :  { %v3901_v5 = vsel %vm1290_vm3, %v7263_v1, 0.0 }
 0xd32   :  { %6336 = vpow2.f32 %v3883_v58 }
 0xd33   :  { %6338 = vpow2.f32 %v3885_v61 }
 0xd34   :  { %3304 = vrot.lane.b32.xlu0 %v7243_v13, %s6567_s19  ;;  %v7265_v3 = vpop.eup %6334 }
 0xd35   :  { %v3864_v55 = vpop.xlane.xlu1 %3863  ;;  %v3898_v44 = vsel %vm1290_vm3, %v7265_v3, 0.0 }
 0xd36   :  { %v3872_v59 = vsub.f32 %v3840_v38, %v3864_v55 }
 0xd37   :  { %3310 = vrot.lane.b32.xlu1 %v7243_v13, %s6566_s3 }
 0xd38   :  { %v3887_v57 = vmul.f32 1.442695, %v3872_v59 }
 0xd39   :  { %v3308_v16 = vpop.permute.xlu1 %3307 }
 0xd3a   :  { %6340 = vpow2.f32 %v3887_v57  ;;  %v3313_v18 = vcombine.low %v7243_v13, %v3308_v16 }
 0xd3c   :  { %v7269_v7 = vpop.eup %6336  ;;  %v3321_v21 = vrot.slane %v3313_v18, %v6796_v6 }
 0xd3d   :  { %v7271_v35 = vpop.eup %6338  ;;  %v3904_v8 = vsel %vm1290_vm3, %v7269_v7, 0.0 }
 0xd3e   :  { %v3907_v10 = vsel %vm1290_vm3, %v7271_v35, 0.0 }
 0xd44   :  { %v7277_v11 = vpop.eup %6340 }
 0xd45   :  { %v3910_v15 = vsel %vm1290_vm3, %v7277_v11, 0.0 }
 0xd53   :  { %3896 = vadd.xlane.f32.xlu0 %v3895_v60 }
 0xd57   :  { %3902 = vadd.xlane.f32.xlu0 %v3901_v5 }
 0xd5b   :  { %3905 = vadd.xlane.f32.xlu0 %v3904_v8  ;;  %3899 = vadd.xlane.f32.xlu1 %v3898_v44 }
 0xd5f   :  { %3908 = vadd.xlane.f32.xlu1 %v3907_v10  ;;  %3911 = vadd.xlane.f32.xlu0 %v3910_v15 }
 0xdab   :  { %v3891_v17 = vpop.xlane.xlu0 %3890 }
 0xdac   :  { %6342 = vrcp.f32 %v3891_v17 }
 0xdaf   :  { %v3305_v19 = vpop.permute.xlu0 %3304 }
 0xdb3   :  { %v3894_v36 = vpop.xlane.xlu1 %3893 }
 0xdb4   :  { %6344 = vrcp.f32 %v3894_v36 }
 0xdb6   :  { %v6343_v4 = vpop.eup %6342 }
 0xdb7   :  { %v3311_v37 = vpop.permute.xlu1 %3310  ;;  %v3921_v26 = vmul.f32 %v6343_v4, %v7247_v32  ;;  %v3314_v32 = vcombine.high %v7243_v13, %v3308_v16 }
 0xdb8   :  { %v3329_v20 = vcombine.low %v3305_v19, %v3311_v37  ;;  %v3330_v52 = vcombine.high %v3305_v19, %v3311_v37 }
 0xdb9   :  { %v3929_v54 = vpack.c.bf16 %v3921_v26, %v3921_v26  ;;  %v3328_v13 = vrot.slane %v3314_v32, %v6796_v6  ;;  %v6201_v32 = vld [vmem:[#allocation10 + $0x48] sm:$0xff]  }
 0xdba   :  { %v3337_v22 = vrot.slane %v3329_v20, %v6796_v6  ;;  %v3344_v59 = vrot.slane %v3330_v52, %v6796_v6 }
 0xdbc   :  { %v3345_v39 = vcombine.low %v3321_v21, %v3337_v22  ;;  %v3346_v38 = vcombine.high %v3321_v21, %v3337_v22  ;;  %v3361_v57 = vcombine.low %v3328_v13, %v3344_v59  ;;  %v3362_v60 = vcombine.high %v3328_v13, %v3344_v59  ;;  %v6205_v59 = vld [vmem:[#allocation10 + $0x68] sm:$0xff]  }
 0xdbe   :  { %v3353_v25 = vrot.slane %v3345_v39, %v6799_v12  ;;  %v3360_v27 = vrot.slane %v3346_v38, %v6799_v12  ;;  %v6345_v34 = vpop.eup %6344  ;;  %v3369_v5 = vrot.slane %v3361_v57, %v6799_v12  ;;  %v3376_v8 = vrot.slane %v3362_v60, %v6799_v12 }
 0xdbf   :  { %v3922_v43 = vmul.f32 %v6345_v34, %v7251_v9 }
 0xdc0   :  { %v3381_v28 = vcombine.low %v3353_v25, %v3360_v27  ;;  %v5463_v47 = vcombine.high %v3353_v25, %v3360_v27  ;;  %v3415_v44 = vcombine.low %v3369_v5, %v3376_v8  ;;  %v5464_v10 = vcombine.high %v3369_v5, %v3376_v8 }
 0xdc1   :  { %v3930_v9 = vpack.c.bf16 %v3922_v43, %v3922_v43 }
 0xdc2   :  { %v3388_v42 = vrot.slane %v3381_v28, %v6796_v6  ;;  %v3396_v29 = vrot.slane %v5463_v47, %v6796_v6  ;;  %v3422_v16 = vrot.slane %v3415_v44, %v6796_v6  ;;  %v3430_v17 = vrot.slane %v5464_v10, %v6796_v6 }
 0xdc4   :  { %v3397_v30 = vcombine.low %v3388_v42, %v3396_v29  ;;  %v3398_v62 = vcombine.high %v3388_v42, %v3396_v29  ;;  %v3431_v18 = vcombine.low %v3422_v16, %v3430_v17  ;;  %v3432_v25 = vcombine.high %v3422_v16, %v3430_v17 }
 0xdc6   :  { %v3405_v50 = vrot.slane %v3397_v30, %v6799_v12  ;;  %v3412_v14 = vrot.slane %v3398_v62, %v6799_v12  ;;  %v3439_v37 = vrot.slane %v3431_v18, %v6799_v12  ;;  %v3446_v42 = vrot.slane %v3432_v25, %v6799_v12 }
 0xdc8   :  { %v3449_v31 = vpack.c.bf16 %v3405_v50, %v3405_v50  ;;  %v3413_v40 = vcombine.high %v3405_v50, %v6563_v0  ;;  %v3414_v41 = vcombine.high %v3412_v14, %v6563_v0  ;;  %v3451_v51 = vpack.c.bf16 %v3412_v14, %v3412_v14 }
 0xdc9   :  { %v3453_v38 = vpack.c.bf16 %v3439_v37, %v3439_v37  ;;  %v3447_v29 = vcombine.high %v3439_v37, %v6563_v0  ;;  %v3455_v4 = vpack.c.bf16 %v3446_v42, %v3446_v42  ;;  %v3448_v43 = vcombine.high %v3446_v42, %v6563_v0 }
 0xdca   :  { %v3941_v48 = vsel %vm1391_vm4, %v3449_v31, 0  ;;  %v3450_v49 = vpack.c.bf16 %v3413_v40, %v3413_v40  ;;  %v3452_v56 = vpack.c.bf16 %v3414_v41, %v3414_v41  ;;  %v4033_v58 = vsel %vm1391_vm4, %v3451_v51, 0 }
 0xdcb   :  { %5959 = vmatpush3.bf16.msra.mxu0 %v3941_v48  ;;  %v4125_v47 = vsel %vm1391_vm4, %v3453_v38, 0  ;;  %v3454_v14 = vpack.c.bf16 %v3447_v29, %v3447_v29  ;;  %v4217_v41 = vsel %vm1391_vm4, %v3455_v4, 0 }
 0xdcc   :  { %v3987_v55 = vsel %vm1391_vm4, %v3450_v49, 0  ;;  %5970 = vmatprep.subr.bf16.mxu0 %v6563_v0  ;;  %v4079_v61 = vsel %vm1391_vm4, %v3452_v56, 0  ;;  %v3456_v49 = vpack.c.bf16 %v3448_v43, %v3448_v43  ;;  %v6200_v56 = vld [vmem:[#allocation10 + $0x40] sm:$0xff]  }
 0xdcd   :  { %5965 = vmatpush3.bf16.msra.mxu1 %v3987_v55 }
 0xdce   :  { %5961 = vmatmul.mubr.msk.bf16.vlgmr.msra.gmra.mrb[52].mxu0 %vm1387_vm5, %v3929_v54  ;;  %5976 = vmatprep.subr.bf16.mxu1 %v6563_v0 }
 0xdcf   :  { %5971 = vmatpush3.bf16.msra.mxu0 %v4033_v58  ;;  %5972 = vmatprep.mubr.msk.bf16.mxu0 %vm6565_vm0, %v6563_v0  ;;  %v6202_v58 = vld [vmem:[#allocation10 + $0x50] sm:$0xff]  }
 0xdd0   :  { %5967 = vmatmul.mubr.msk.bf16.vlgmr.msra.gmra.mrb[80].mxu1 %vm1387_vm5, %v3930_v9  ;;  %5982 = vmatprep.subr.bf16.mxu0 %v6563_v0  ;;  %v6203_v9 = vld [vmem:[#allocation10 + $0x58] sm:$0xff]  }
 0xdd1   :  { %5977 = vmatpush3.bf16.msra.mxu1 %v4079_v61  ;;  %5978 = vmatprep.mubr.msk.bf16.mxu1 %vm6565_vm0, %v6563_v0 }
 0xdd2   :  { %5988 = vmatprep.subr.bf16.mxu1 %v6563_v0 }
 0xde0   :  { %v3897_v15 = vpop.xlane.xlu0 %3896 }
 0xde1   :  { %6346 = vrcp.f32 %v3897_v15 }
 0xde4   :  { %v3903_v36 = vpop.xlane.xlu0 %3902 }
 0xde5   :  { %6348 = vrcp.f32 %v3903_v36 }
 0xde8   :  { %v3900_v19 = vpop.xlane.xlu1 %3899  ;;  %v3906_v20 = vpop.xlane.xlu0 %3905 }
 0xde9   :  { %6350 = vrcp.f32 %v3900_v19 }
 0xdea   :  { %6352 = vrcp.f32 %v3906_v20 }
 0xdeb   :  { %v6347_v21 = vpop.eup %6346 }
 0xdec   :  { %v3923_v22 = vmul.f32 %v6347_v21, %v7259_v63  ;;  %v3909_v39 = vpop.xlane.xlu1 %3908  ;;  %v3912_v30 = vpop.xlane.xlu0 %3911 }
 0xded   :  { %6354 = vrcp.f32 %v3909_v39 }
 0xdee   :  { %v3931_v27 = vpack.c.bf16 %v3923_v22, %v3923_v22  ;;  %6356 = vrcp.f32 %v3912_v30 }
 0xdef   :  { %v6349_v28 = vpop.eup %6348 }
 0xdf0   :  { %5973 = vmatmul.mubr.msk.bf16.vlgmr.msra.gmra.mrb[56].mxu0 %vm1387_vm5, %v3931_v27  ;;  %v3925_v63 = vmul.f32 %v6349_v28, %v7263_v1  ;;  %v4171_v1 = vsel %vm1391_vm4, %v3454_v14, 0 }
 0xdf1   :  { %5983 = vmatpush3.bf16.msra.mxu0 %v4125_v47  ;;  %5984 = vmatprep.mubr.msk.bf16.mxu0 %vm6565_vm0, %v6563_v0 }
 0xdf2   :  { %5994 = vmatprep.subr.bf16.mxu0 %v6563_v0  ;;  %v3933_v34 = vpack.c.bf16 %v3925_v63, %v3925_v63 }
 0xdf3   :  { %v6351_v62 = vpop.eup %6350 }
 0xdf4   :  { %v3924_v50 = vmul.f32 %v6351_v62, %v7265_v3  ;;  %v6353_v26 = vpop.eup %6352 }
 0xdf5   :  { %v3926_v3 = vmul.f32 %v6353_v26, %v7269_v7 }
 0xdf6   :  { %v3932_v31 = vpack.c.bf16 %v3924_v50, %v3924_v50 }
 0xdf7   :  { %v6355_v40 = vpop.eup %6354  ;;  %v3934_v52 = vpack.c.bf16 %v3926_v3, %v3926_v3 }
 0xdf8   :  { %5985 = vmatmul.mubr.msk.bf16.vlgmr.msra.gmra.mrb[60].mxu0 %vm1387_vm5, %v3933_v34  ;;  %5979 = vmatmul.mubr.msk.bf16.vlgmr.msra.gmra.mrb[84].mxu1 %vm1387_vm5, %v3932_v31  ;;  %v3927_v48 = vmul.f32 %v6355_v40, %v7271_v35  ;;  %v6357_v55 = vpop.eup %6356  ;;  %v4263_v35 = vsel %vm1391_vm4, %v3456_v49, 0 }
 0xdf9   :  { %5995 = vmatpush3.bf16.msra.mxu0 %v4217_v41  ;;  %5989 = vmatpush3.bf16.msra.mxu1 %v4171_v1  ;;  %v3928_v7 = vmul.f32 %v6357_v55, %v7277_v11  ;;  %v6204_v11 = vld [vmem:[#allocation10 + $0x60] sm:$0xff]  }
 0xdfa   :  { %5990 = vmatprep.mubr.msk.bf16.mxu1 %vm6565_vm0, %v6563_v0  ;;  %5996 = vmatprep.mubr.msk.bf16.mxu0 %vm6565_vm0, %v6563_v0  ;;  %v3935_v51 = vpack.c.bf16 %v3927_v48, %v3927_v48 }
 0xdfb   :  { %6000 = vmatprep.subr.bf16.mxu1 %v6563_v0  ;;  %6006 = vmatprep.subr.bf16.mxu0 %v6563_v0  ;;  %v3936_v54 = vpack.c.bf16 %v3928_v7, %v3928_v7 }
 0xe00   :  { %5997 = vmatmul.mubr.msk.bf16.vlgmr.msra.gmra.mrb[64].mxu0 %vm1387_vm5, %v3935_v51  ;;  %5991 = vmatmul.mubr.msk.bf16.vlgmr.msra.gmra.mrb[88].mxu1 %vm1387_vm5, %v3934_v52 }
 0xe01   :  { %6022 = vmatprep.mubr.msk.bf16.mxu0 %vm6565_vm0, %v6563_v0  ;;  %6001 = vmatpush3.bf16.msra.mxu1 %v4263_v35 }
 0xe02   :  { %6002 = vmatprep.mubr.msk.bf16.mxu1 %vm6565_vm0, %v6563_v0  ;;  %6007 = vmatpush3.bf16.msra.mxu0 %v6200_v56 }
 0xe03   :  { %6008 = vmatprep.subr.bf16.mxu0 %v6563_v0 }
 0xe06   :  { %6009 = vmatpush3.bf16.msra.mxu0 %v6201_v32 }
 0xe07   :  { %6010 = vmatprep.subr.bf16.mxu0 %v6563_v0 }
 0xe08   :  { %6003 = vmatmul.mubr.msk.bf16.vlgmr.msra.gmra.mrb[92].mxu1 %vm1387_vm5, %v3936_v54 }
 0xe09   :  { %4852 = vmatprep.mubr.bf16.mxu1 %v6564_v24 }
 0xe0a   :  { %6011 = vmatpush3.bf16.msra.mxu0 %v6202_v58 }
 0xe0b   :  { %6012 = vmatprep.subr.bf16.mxu0 %v6563_v0 }
 0xe0e   :  { %6013 = vmatpush3.bf16.msra.mxu0 %v6203_v9 }
 0xe0f   :  { %6014 = vmatprep.subr.bf16.mxu0 %v6563_v0 }
 0xe12   :  { %6015 = vmatpush3.bf16.msra.mxu0 %v6204_v11  ;;  %v6206_v11 = vld [vmem:[#allocation10 + $0x70] sm:$0xff]  }
 0xe13   :  { %6016 = vmatprep.subr.bf16.mxu0 %v6563_v0 }
 0xe16   :  { %6017 = vmatpush3.bf16.msra.mxu0 %v6205_v59 }
 0xe17   :  { %6018 = vmatprep.subr.bf16.mxu0 %v6563_v0 }
 0xe1a   :  { %6019 = vmatpush3.bf16.msra.mxu0 %v6206_v11  ;;  %v6244_v11 = vld [vmem:[#allocation11 + $0x1c0] ss:$16 sps:$4 sm:$0xff]  }
 0xe1b   :  { %6020 = vmatprep.subr.bf16.mxu0 %v6563_v0 }
 0xea1   :  { %v3977_v61 = vpop.f32.mrb[52].mxu0 }
 0xea2   :  { %v5962_v13 = vpop.f32.mrb[53].mxu0 }
 0xea3   :  { %v3980_v57 = vpop.f32.mrb[54].mxu0  ;;  %v4023_v60 = vpop.f32.mrb[80].mxu1 }
 0xea4   :  { %v5963_v5 = vpop.f32.mrb[55].mxu0  ;;  %v5968_v8 = vpop.f32.mrb[81].mxu1 }
 0xea5   :  { %v4026_v44 = vpop.f32.mrb[82].mxu1  ;;  %v6207_v8 = vld [vmem:[#allocation10 + $0x78] sm:$0xff]  }
 0xea6   :  { %v5969_v10 = vpop.f32.mrb[83].mxu1  ;;  %6021 = vmatpush3.bf16.msra.mxu0 %v6207_v8  ;;  %v6257_v8 = vld [vmem:[#allocation13 + $0x1c0] sm:$0xff]  }
 0xec3   :  { %v4069_v15 = vpop.f32.mrb[56].mxu0 }
 0xec4   :  { %v4305_v16 = vcombine.low %v3977_v61, %v4069_v15  ;;  %v5974_v17 = vpop.f32.mrb[57].mxu0 }
 0xec5   :  { %v4072_v36 = vpop.f32.mrb[58].mxu0 }
 0xec6   :  { %v5975_v18 = vpop.f32.mrb[59].mxu0  ;;  %v4312_v27 = vrot.slane %v4305_v16, %v6796_v6 }
 0xecb   :  { %v4161_v19 = vpop.f32.mrb[60].mxu0  ;;  %v4115_v37 = vpop.f32.mrb[84].mxu1 }
 0xecc   :  { %v5986_v20 = vpop.f32.mrb[61].mxu0  ;;  %v4313_v21 = vcombine.low %v4023_v60, %v4115_v37  ;;  %v5980_v22 = vpop.f32.mrb[85].mxu1 }
 0xecd   :  { %v4164_v39 = vpop.f32.mrb[62].mxu0  ;;  %v4118_v38 = vpop.f32.mrb[86].mxu1 }
 0xece   :  { %v5987_v25 = vpop.f32.mrb[63].mxu0  ;;  %v4320_v28 = vrot.slane %v4313_v21, %v6796_v6  ;;  %v5981_v47 = vpop.f32.mrb[87].mxu1 }
 0xecf   :  { %v6208_v25 = vld [vmem:[#allocation11 + $0x100] ss:$16 sps:$4 sm:$0xff]   ;;  %v6213_v47 = vld [vmem:[#allocation11 + $0x10c] ss:$16 sps:$4 sm:$0xff]  }
 0xed0   :  { %v4321_v42 = vcombine.low %v4312_v27, %v4320_v28  ;;  %v4322_v29 = vcombine.high %v4312_v27, %v4320_v28  ;;  %v6210_v27 = vld [vmem:[#allocation11 + $0x104] ss:$16 sps:$4 sm:$0xff]   ;;  %v6211_v28 = vld [vmem:[#allocation11 + $0x108] ss:$16 sps:$4 sm:$0xff]   ;;  %4861 = vmatprep.subr.bf16.mxu0 %v6213_v47 }
 0xed1   :  { %4820 = vmatprep.subr.bf16.mxu1 %v6210_v27  ;;  %v6260_v27 = vld [vmem:[#allocation13 + $0x148] sm:$0xff]  }
 0xed2   :  { %v4329_v63 = vrot.slane %v4321_v42, %v6799_v12  ;;  %v4336_v30 = vrot.slane %v4322_v29, %v6799_v12  ;;  %4821 = vmatpush1.bf16.msra.mxu1 %v6208_v25  ;;  %v5484_v42 = vld [vmem:[%s7433_s6 + $0x1] ss:$0 sm:$0xff]  ;;  %v6262_v47 = vld [vmem:[#allocation13 + $0x108] sm:$0xff]  }
 0xed3   :  { %v4253_v62 = vpop.f32.mrb[64].mxu0  ;;  %v4207_v4 = vpop.f32.mrb[88].mxu1 }
 0xed4   :  { %v4339_v50 = vcombine.low %v4161_v19, %v4253_v62  ;;  %v5998_v14 = vpop.f32.mrb[65].mxu0  ;;  %v4373_v34 = vcombine.low %v4329_v63, %v4336_v30  ;;  %v5481_v26 = vcombine.high %v4329_v63, %v4336_v30  ;;  %v5992_v31 = vpop.f32.mrb[89].mxu1 }
 0xed5   :  { %v4256_v40 = vpop.f32.mrb[66].mxu0  ;;  %v4210_v41 = vpop.f32.mrb[90].mxu1  ;;  %v6214_v14 = vld [vmem:[#allocation11 + $0x120] ss:$16 sps:$4 sm:$0xff]   ;;  %v6219_v31 = vld [vmem:[#allocation11 + $0x12c] ss:$16 sps:$4 sm:$0xff]  }
 0xed6   :  { %v5999_v1 = vpop.f32.mrb[67].mxu0  ;;  %v5993_v43 = vpop.f32.mrb[91].mxu1  ;;  %v4380_v48 = vrot.slane %v4373_v34, %v6796_v6  ;;  %v4388_v3 = vrot.slane %v5481_v26, %v6796_v6  ;;  %v4346_v54 = vrot.slane %v4339_v50, %v6796_v6  ;;  %v6216_v34 = vld [vmem:[#allocation11 + $0x124] ss:$16 sps:$4 sm:$0xff]   ;;  %v6217_v26 = vld [vmem:[#allocation11 + $0x128] ss:$16 sps:$4 sm:$0xff]  }
 0xed7   :  { %4822 = vmatprep.subr.bf16.mxu1 %v6216_v34  ;;  %v6222_v40 = vld [vmem:[#allocation11 + $0x144] ss:$16 sps:$4 sm:$0xff]   ;;  %v6225_v41 = vld [vmem:[#allocation11 + $0x14c] ss:$16 sps:$4 sm:$0xff]   ;;  %v6220_v1 = vld [vmem:[#allocation11 + $0x140] ss:$16 sps:$4 sm:$0xff]  }
 0xed8   :  { %v4406_v49 = vcombine.high %v4380_v48, %v4388_v3  ;;  %v4405_v51 = vcombine.low %v4380_v48, %v4388_v3  ;;  %4823 = vmatpush1.bf16.msra.mxu1 %v6214_v14  ;;  %v6228_v43 = vld [vmem:[#allocation11 + $0x164] ss:$16 sps:$4 sm:$0xff]   ;;  %v6231_v48 = vld [vmem:[#allocation11 + $0x16c] ss:$16 sps:$4 sm:$0xff]   ;;  %v6226_v3 = vld [vmem:[#allocation11 + $0x160] ss:$16 sps:$4 sm:$0xff]  }
 0xed9   :  { %4824 = vmatprep.subr.bf16.mxu1 %v6222_v40  ;;  %v6270_v14 = vld [vmem:[#allocation13 + $0x118] sm:$0xff]   ;;  %v6274_v40 = vld [vmem:[#allocation13 + $0x120] sm:$0xff]  }
 0xeda   :  { %v4420_v15 = vrot.slane %v4406_v49, %v6799_v12  ;;  %v4413_v17 = vrot.slane %v4405_v51, %v6799_v12  ;;  %v6229_v49 = vld [vmem:[#allocation11 + $0x168] ss:$16 sps:$4 sm:$0xff]   ;;  %v6234_v51 = vld [vmem:[#allocation11 + $0x184] ss:$16 sps:$4 sm:$0xff]  }
 0xedb   :  { %v4299_v52 = vpop.f32.mrb[92].mxu1  ;;  %v6271_v34 = vld [vmem:[#allocation13 + $0x198] sm:$0xff]  }
 0xedc   :  { %v4347_v55 = vcombine.low %v4207_v4, %v4299_v52  ;;  %v6004_v35 = vpop.f32.mrb[93].mxu1  ;;  %4825 = vmatpush1.bf16.msra.mxu1 %v6220_v1  ;;  %v6237_v52 = vld [vmem:[#allocation11 + $0x18c] ss:$16 sps:$4 sm:$0xff]  }
 0xedd   :  { %v4302_v7 = vpop.f32.mrb[94].mxu1  ;;  %4826 = vmatprep.subr.bf16.mxu1 %v6228_v43  ;;  %v6235_v35 = vld [vmem:[#allocation11 + $0x188] ss:$16 sps:$4 sm:$0xff]  }
 0xede   :  { %v4354_v56 = vrot.slane %v4347_v55, %v6796_v6  ;;  %v6005_v32 = vpop.f32.mrb[95].mxu1  ;;  %v6232_v55 = vld [vmem:[#allocation11 + $0x180] ss:$16 sps:$4 sm:$0xff]   ;;  %v6240_v7 = vld [vmem:[#allocation11 + $0x1a4] ss:$16 sps:$4 sm:$0xff]   ;;  %v6276_v1 = vld [vmem:[#allocation13 + $0x168] sm:$0xff]  }
 0xedf   :  { %v6241_v32 = vld [vmem:[#allocation11 + $0x1a8] ss:$16 sps:$4 sm:$0xff]  }
 0xee0   :  { %v4355_v58 = vcombine.low %v4346_v54, %v4354_v56  ;;  %v4356_v9 = vcombine.high %v4346_v54, %v4354_v56  ;;  %4827 = vmatpush1.bf16.msra.mxu1 %v6226_v3  ;;  %v6243_v54 = vld [vmem:[#allocation11 + $0x1ac] ss:$16 sps:$4 sm:$0xff]   ;;  %v6238_v56 = vld [vmem:[#allocation11 + $0x1a0] ss:$16 sps:$4 sm:$0xff]  }
 0xee1   :  { %4828 = vmatprep.subr.bf16.mxu1 %v6234_v51  ;;  %v6278_v43 = vld [vmem:[#allocation13 + $0x128] sm:$0xff]   ;;  %v6280_v3 = vld [vmem:[#allocation13 + $0x170] sm:$0xff]  }
 0xee2   :  { %v4363_v59 = vrot.slane %v4355_v58, %v6799_v12  ;;  %v4370_v61 = vrot.slane %v4356_v9, %v6799_v12  ;;  %v6246_v58 = vld [vmem:[#allocation11 + $0x1c4] ss:$16 sps:$4 sm:$0xff]   ;;  %v6249_v9 = vld [vmem:[#allocation11 + $0x1cc] ss:$16 sps:$4 sm:$0xff]  }
 0xee3   :  { %v6282_v51 = vld [vmem:[#allocation13 + $0x130] sm:$0xff]  }
 0xee4   :  { %v4389_v13 = vcombine.low %v4363_v59, %v4370_v61  ;;  %v5482_v57 = vcombine.high %v4363_v59, %v4370_v61  ;;  %4829 = vmatpush1.bf16.msra.mxu1 %v6232_v55  ;;  %v6247_v59 = vld [vmem:[#allocation11 + $0x1c8] ss:$16 sps:$4 sm:$0xff]   ;;  %v6252_v61 = vld [vmem:[#allocation11 + $0x1e4] ss:$16 sps:$4 sm:$0xff]  }
 0xee5   :  { %4830 = vmatprep.subr.bf16.mxu1 %v6240_v7  ;;  %v6284_v55 = vld [vmem:[#allocation13 + $0x178] sm:$0xff]  }
 0xee6   :  { %v4396_v60 = vrot.slane %v4389_v13, %v6796_v6  ;;  %v4404_v5 = vrot.slane %v5482_v57, %v6796_v6  ;;  %v6255_v13 = vld [vmem:[#allocation11 + $0x1ec] ss:$16 sps:$4 sm:$0xff]   ;;  %v6250_v57 = vld [vmem:[#allocation11 + $0x1e0] ss:$16 sps:$4 sm:$0xff]  }
 0xee7   :  { %v6286_v7 = vld [vmem:[#allocation13 + $0x138] sm:$0xff]  }
 0xee8   :  { %v4422_v44 = vcombine.high %v4396_v60, %v4404_v5  ;;  %v4421_v10 = vcombine.low %v4396_v60, %v4404_v5  ;;  %4831 = vmatpush1.bf16.msra.mxu1 %v6238_v56  ;;  %v6253_v60 = vld [vmem:[#allocation11 + $0x1e8] ss:$16 sps:$4 sm:$0xff]   ;;  %v6256_v5 = vld [vmem:[#allocation13 + $0x140] sm:$0xff]  }
 0xee9   :  { %4832 = vmatprep.subr.bf16.mxu1 %v6246_v58  ;;  %v5497_v56 = vld [vmem:[%s7437_s10 + $0x4] sm:$0xf] }
 0xeea   :  { %v4436_v16 = vrot.slane %v4422_v44, %v6799_v12  ;;  %v4429_v36 = vrot.slane %v4421_v10, %v6799_v12  ;;  %v4651_v58 = vrot.slane %v5497_v56, %v6923_v2 }
 0xeec   :  { %v4439_v18 = vcombine.low %v4420_v15, %v4436_v16  ;;  %v4438_v19 = vcombine.high %v4413_v17, %v4429_v36  ;;  %v4440_v37 = vcombine.high %v4420_v15, %v4436_v16  ;;  %v4437_v0 = vcombine.low %v4413_v17, %v4429_v36  ;;  %4833 = vmatpush1.bf16.msra.mxu1 %v6244_v11 }
 0xeed   :  { %4834 = vmatprep.subr.bf16.mxu1 %v6252_v61  ;;  %v4655_v11 = vrot.slane %v5497_v56, %v2102_v33 }
 0xeee   :  { %4446 = vrot.lane.b32.xlu0 %v4439_v18, %s6560_s2  ;;  %4442 = vrot.lane.b32.xlu1 %v4438_v19, %s6566_s3  ;;  %s6570_s3 = smov [#allocation14]  }
 0xef0   :  { %4835 = vmatpush1.bf16.msra.mxu1 %v6250_v57 }
 0xef1   :  { %5710 = vmatprep.subr.bf16.mxu1 %v6256_v5 }
 0xef2   :  { %4450 = vrot.lane.b32.xlu1 %v4440_v37, %s6567_s19  ;;  %s5294_s19 = sshll.u32 %s6570_s3, 4  ;;  %s5295_s19 = int_to_ptr.vmem [resolvable:$true] %s5294_s19 }
 0xef3   :  { %s6517_s30 = scalar_lea.vmem %s5295_s19, 64  ;;  %p6522_p1 = scmp.lt.s32.totalorder %s5295_s19, %s5295_s19 }
 0xef4   :  { %p6518_p0 = scmp.ne.s32.totalorder %s5295_s19, %s6517_s30  ;;  %p6523_p2 = scmp.lt.s32.totalorder %s6517_s30, %s6517_s30 }
 0xef6   :  { %p6524_p3 = por %p6523_p2, %p6522_p1 }
 0xef8   :  { %p6525_p4 = pnand %p6524_p3, %p6518_p0 }
 0xf60   :  { %v4443_v6 = vpop.permute.xlu1 %4442  ;;  %v4447_v20 = vpop.permute.xlu0 %4446 }
 0xf61   :  { %v4453_v21 = vsel %vm903_vm1, %v4437_v0, %v4443_v6  ;;  %v5495_v6 = vld [vmem:[%s7434_s7 + $0x1] ss:$0 sm:$0xff] }
 0xf62   :  { %v4454_v39 = vsel %vm1906_vm6, %v4453_v21, %v4447_v20  ;;  %v5496_v21 = vld [vmem:[%s7435_s8 + $0x1] ss:$0 sm:$0xff] }
 0xf64   :  { %v4451_v22 = vpop.permute.xlu1 %4450 }
 0xf65   :  { %v4455_v38 = vsel %vm1908_vm7, %v4454_v39, %v4451_v22 }
 0xf66   :  { %v4456_v12 = vpack.c.bf16 %v4455_v38, %v4455_v38  ;;  %v6258_v38 = vld [vmem:[#allocation13 + $0x100] sm:$0xff]  }
 0xf68   :  { %6023 = vmatmul.mubr.bf16.vlgmr.msra.gmra.mrb[68].mxu0 %v4456_v12  ;;  %v6259_v12 = vld [vmem:[#allocation13 + $0x180] sm:$0xff]  }
 0xf69   :  { %4893 = vmatprep.mubr.bf16.mxu0 %v6564_v24  ;;  %4862 = vmatpush1.bf16.msra.mxu0 %v6211_v28  ;;  %v6261_v28 = vld [vmem:[#allocation13 + $0x1c8] sm:$0xff]  }
 0xf6a   :  { %4863 = vmatprep.subr.bf16.mxu0 %v6219_v31  ;;  %v6273_v31 = vld [vmem:[#allocation13 + $0x1e0] sm:$0xff]  }
 0xf6d   :  { %4864 = vmatpush1.bf16.msra.mxu0 %v6217_v26  ;;  %v6272_v26 = vld [vmem:[#allocation13 + $0x160] sm:$0xff]  }
 0xf6e   :  { %4865 = vmatprep.subr.bf16.mxu0 %v6225_v41  ;;  %v6275_v41 = vld [vmem:[#allocation13 + $0x1a0] sm:$0xff]  }
0x103b   :  { %v4564_v29 = vpop.f32.mrb[68].mxu0 }
0x103c   :  { %v4565_v63 = vadd.f32 %v5484_v42, %v4564_v29  ;;  %v6024_v30 = vpop.f32.mrb[69].mxu0  ;;  %v6263_v42 = vld [vmem:[#allocation13 + $0x188] sm:$0xff]   ;;  %v6264_v29 = vld [vmem:[#allocation13 + $0x150] sm:$0xff]  }
0x103d   :  { %v4567_v62 = vpop.f32.mrb[70].mxu0  ;;  %v6266_v30 = vld [vmem:[#allocation13 + $0x110] sm:$0xff]  }
0x103e   :  { %v7385_v4 = vadd.f32 %v4565_v63, %v7101_v23  ;;  %v6025_v24 = vpop.f32.mrb[71].mxu0  ;;  %v6223_v23 = vld [vmem:[#allocation11 + $0x148] ss:$16 sps:$4 sm:$0xff]   ;;  %v6265_v63 = vld [vmem:[#allocation13 + $0x1d0] sm:$0xff]  }
0x103f   :  { %4866 = vmatpush1.bf16.msra.mxu0 %v6223_v23  ;;  %v6267_v62 = vld [vmem:[#allocation13 + $0x190] sm:$0xff]   ;;  %v6268_v24 = vld [vmem:[#allocation13 + $0x158] sm:$0xff]   ;;  %v6277_v23 = vld [vmem:[#allocation13 + $0x1e8] sm:$0xff]  }
0x1040   :  { %4575 = vadd.xlane.f32.xlu1 %v7385_v4  ;;  %v4577_v50 = vmul.f32 %v7385_v4, %v7385_v4  ;;  %4867 = vmatprep.subr.bf16.mxu0 %v6231_v48  ;;  %v6279_v48 = vld [vmem:[#allocation13 + $0x1a8] sm:$0xff]  }
0x1042   :  { %4578 = vadd.xlane.f32.xlu0 %v4577_v50  ;;  %v6269_v50 = vld [vmem:[#allocation13 + $0x1d8] sm:$0xff]  }
0x1043   :  { %4868 = vmatpush1.bf16.msra.mxu0 %v6229_v49  ;;  %v6281_v49 = vld [vmem:[#allocation13 + $0x1f0] sm:$0xff]  }
0x1044   :  { %4869 = vmatprep.subr.bf16.mxu0 %v6237_v52  ;;  %v6283_v52 = vld [vmem:[#allocation13 + $0x1b0] sm:$0xff]  }
0x1047   :  { %4870 = vmatpush1.bf16.msra.mxu0 %v6235_v35  ;;  %v6285_v35 = vld [vmem:[#allocation13 + $0x1f8] sm:$0xff]  }
0x1048   :  { %4871 = vmatprep.subr.bf16.mxu0 %v6243_v54  ;;  %v6287_v54 = vld [vmem:[#allocation13 + $0x1b8] sm:$0xff]  }
0x104b   :  { %4872 = vmatpush1.bf16.msra.mxu0 %v6241_v32  ;;  %v4643_v32 = vrot.slane %v5497_v56, %v6785_v53 }
0x104c   :  { %4873 = vmatprep.subr.bf16.mxu0 %v6249_v9  ;;  %v4647_v9 = vrot.slane %v5497_v56, %v6773_v46 }
0x104f   :  { %4874 = vmatpush1.bf16.msra.mxu0 %v6247_v59 }
0x1050   :  { %4875 = vmatprep.subr.bf16.mxu0 %v6255_v13 }
0x1053   :  { %4876 = vmatpush1.bf16.msra.mxu0 %v6253_v60 }
0x1054   :  { %5732 = vmatprep.subr.bf16.mxu0 %v6257_v8 }
0x10cd   :  { %v4576_v44 = vpop.xlane.xlu1 %4575 }
0x10ce   :  { %v4580_v10 = vmul.f32 0.0078125, %v4576_v44 }
0x10cf   :  { %v4579_v15 = vpop.xlane.xlu0 %4578 }
0x10d0   :  { %v4582_v16 = vmul.f32 %v4580_v10, %v4580_v10  ;;  %v4581_v17 = vmul.f32 0.0078125, %v4579_v15  ;;  %v4585_v37 = vsub.f32 %v7385_v4, %v4580_v10 }
0x10d2   :  { %v4583_v36 = vsub.f32 %v4581_v17, %v4582_v16 }
0x10d4   :  { %v4584_v18 = vmax.f32 %v4583_v36, 0.0 }
0x10d6   :  { %v4586_v19 = vadd.f32 1e-05, %v4584_v18 }
0x10d8   :  { %6358 = vrsqrt.f32 %v4586_v19 }
0x10e2   :  { %v6359_v0 = vpop.eup %6358 }
0x10e3   :  { %v4588_v20 = vmul.f32 %v6359_v0, %v4585_v37 }
0x10e5   :  { %v4595_v22 = vmul.f32 %v5495_v6, %v4588_v20  ;;  %v5531_v6 = vld [vmem:[%s7439_s12 + $0x1] ss:$0 sm:$0xff] }
0x10e7   :  { %v4602_v39 = vadd.f32 %v5496_v21, %v4595_v22 }
0x10e9   :  { %v4603_v25 = vpack.c.bf16 %v4602_v39, %v4602_v39 }
0x10eb   :  { %4853 = vmatmul.mubr.bf16.vlgmr.msra.gmra.mrb[96].mxu1 %v4603_v25  ;;  %4894 = vmatmul.mubr.bf16.vlgmr.msra.gmra.mrb[72].mxu0 %v4603_v25 }
0x10ec   :  { %5711 = vmatpush3.bf16.msra.mxu1 %v6258_v38  ;;  %5733 = vmatpush3.bf16.msra.mxu0 %v6259_v12 }
0x10ed   :  { %5712 = vmatprep.subr.bf16.mxu1 %v6260_v27  ;;  %5734 = vmatprep.subr.bf16.mxu0 %v6261_v28 }
0x10f0   :  { %5713 = vmatpush3.bf16.msra.mxu1 %v6262_v47  ;;  %5735 = vmatpush3.bf16.msra.mxu0 %v6263_v42 }
0x10f1   :  { %5714 = vmatprep.subr.bf16.mxu1 %v6264_v29  ;;  %5736 = vmatprep.subr.bf16.mxu0 %v6265_v63 }
0x10f4   :  { %5715 = vmatpush3.bf16.msra.mxu1 %v6266_v30  ;;  %5737 = vmatpush3.bf16.msra.mxu0 %v6267_v62 }
0x10f5   :  { %5716 = vmatprep.subr.bf16.mxu1 %v6268_v24  ;;  %5738 = vmatprep.subr.bf16.mxu0 %v6269_v50 }
0x10f8   :  { %5717 = vmatpush3.bf16.msra.mxu1 %v6270_v14  ;;  %5739 = vmatpush3.bf16.msra.mxu0 %v6271_v34 }
0x10f9   :  { %5718 = vmatprep.subr.bf16.mxu1 %v6272_v26  ;;  %5740 = vmatprep.subr.bf16.mxu0 %v6273_v31 }
0x10fc   :  { %5719 = vmatpush3.bf16.msra.mxu1 %v6274_v40  ;;  %5741 = vmatpush3.bf16.msra.mxu0 %v6275_v41  ;;  %v5564_v41 = vld [vmem:[%s7440_s13] ss:$0 sm:$0xff] }
0x10fd   :  { %5720 = vmatprep.subr.bf16.mxu1 %v6276_v1  ;;  %5742 = vmatprep.subr.bf16.mxu0 %v6277_v23 }
0x1100   :  { %5721 = vmatpush3.bf16.msra.mxu1 %v6278_v43  ;;  %5743 = vmatpush3.bf16.msra.mxu0 %v6279_v48 }
0x1101   :  { %5722 = vmatprep.subr.bf16.mxu1 %v6280_v3  ;;  %5744 = vmatprep.subr.bf16.mxu0 %v6281_v49 }
0x1104   :  { %5723 = vmatpush3.bf16.msra.mxu1 %v6282_v51  ;;  %5745 = vmatpush3.bf16.msra.mxu0 %v6283_v52 }
0x1105   :  { %5724 = vmatprep.subr.bf16.mxu1 %v6284_v55  ;;  %5746 = vmatprep.subr.bf16.mxu0 %v6285_v35 }
0x1108   :  { %5725 = vmatpush3.bf16.msra.mxu1 %v6286_v7  ;;  %5747 = vmatpush3.bf16.msra.mxu0 %v6287_v54 }
0x11be   :  { %v4854_v59 = vpop.f32.mrb[96].mxu1  ;;  %v4895_v61 = vpop.f32.mrb[72].mxu0 }
0x11bf   :  { %v4855_v13 = vadd.f32 %v4854_v59, %v4643_v32  ;;  %v4896_v57 = vadd.f32 %v4895_v61, %v4651_v58  ;;  %v4856_v60 = vpop.f32.mrb[97].mxu1  ;;  %v4897_v5 = vpop.f32.mrb[73].mxu0 }
0x11c0   :  { %v4857_v8 = vadd.f32 %v4856_v60, %v4647_v9  ;;  %v4898_v44 = vadd.f32 %v4897_v5, %v4655_v11  ;;  %v4858_v10 = vpop.f32.mrb[98].mxu1  ;;  %v4899_v15 = vpop.f32.mrb[74].mxu0 }
0x11c1   :  { %v4902_v16 = vmax.f32 %v4855_v13, 0.0  ;;  %v4904_v17 = vmax.f32 %v4896_v57, 0.0  ;;  %v4859_v53 = vpop.f32.mrb[99].mxu1  ;;  %v4900_v36 = vpop.f32.mrb[75].mxu0 }
0x11c2   :  { %v4903_v2 = vmax.f32 %v4857_v8, 0.0  ;;  %v4905_v18 = vmax.f32 %v4898_v44, 0.0 }
0x11c3   :  { %v4906_v45 = vpack.c.bf16 %v4902_v16, %v4902_v16  ;;  %v4908_v33 = vpack.c.bf16 %v4904_v17, %v4904_v17 }
0x11c4   :  { %v4907_v46 = vpack.c.bf16 %v4903_v2, %v4903_v2  ;;  %v4909_v19 = vpack.c.bf16 %v4905_v18, %v4905_v18 }
0x11c6   :  { %5207 = vmatprep.mubr.bf16.mxu1 %v4907_v46  ;;  %5247 = vmatprep.mubr.bf16.mxu0 %v4909_v19 }
0x11c7   :  { %5208 = vmatmul.mubr.bf16.vlgmr.msra.gmra.mrb[100].mxu1 %v4906_v45  ;;  %5248 = vmatmul.mubr.bf16.vlgmr.msra.gmra.mrb[76].mxu0 %v4908_v33 }
0x129a   :  { %v5726_v37 = vpop.f32.mrb[100].mxu1  ;;  %v5748_v0 = vpop.f32.mrb[76].mxu0 }
0x129b   :  { %v5727_v20 = vpop.f32.mrb[101].mxu1  ;;  %v5749_v21 = vpop.f32.mrb[77].mxu0 }
0x129c   :  { %v5728_v22 = vadd.f32 %v5727_v20, %v5726_v37  ;;  %v5750_v39 = vadd.f32 %v5749_v21, %v5748_v0  ;;  %v5729_v38 = vpop.f32.mrb[102].mxu1  ;;  %v5751_v12 = vpop.f32.mrb[78].mxu0 }
0x129d   :  { %v5730_v25 = vpop.f32.mrb[103].mxu1  ;;  %v5752_v27 = vpop.f32.mrb[79].mxu0 }
0x129e   :  { %v5210_v28 = vadd.f32 %v5728_v22, %v5531_v6 }
0x12a0   :  { %v5250_v47 = vadd.f32 %v5750_v39, %v5210_v28 }
0x12a2   :  { %v5255_v42 = vadd.f32 %v5250_v47, %v7385_v4  ;;  %v5565_v4 = vld [vmem:[%s7441_s14] ss:$0 sm:$0xff] }
0x12a4   :  { %5258 = vadd.xlane.f32.xlu0 %v5255_v42  ;;  %v5260_v29 = vmul.f32 %v5255_v42, %v5255_v42 }
0x12a6   :  { %5261 = vadd.xlane.f32.xlu1 %v5260_v29 }
0x1331   :  { %v5259_v63 = vpop.xlane.xlu0 %5258 }
0x1332   :  { %v5263_v30 = vmul.f32 0.0078125, %v5259_v63 }
0x1333   :  { %v5262_v62 = vpop.xlane.xlu1 %5261 }
0x1334   :  { %v5265_v24 = vmul.f32 %v5263_v30, %v5263_v30  ;;  %v5264_v50 = vmul.f32 0.0078125, %v5262_v62  ;;  %v5268_v31 = vsub.f32 %v5255_v42, %v5263_v30 }
0x1336   :  { %v5266_v14 = vsub.f32 %v5264_v50, %v5265_v24 }
0x1338   :  { %v5267_v34 = vmax.f32 %v5266_v14, 0.0 }
0x133a   :  { %v5269_v26 = vadd.f32 1e-05, %v5267_v34 }
0x133c   :  { %6360 = vrsqrt.f32 %v5269_v26 }
0x1346   :  { %v6361_v40 = vpop.eup %6360 }
0x1347   :  { %v5271_v1 = vmul.f32 %v6361_v40, %v5268_v31 }
0x1349   :  { %v5278_v23 = vmul.f32 %v5564_v41, %v5271_v1 }
0x134b   :  { %v5285_v43 = vadd.f32 %v5565_v4, %v5278_v23 }
0x134d   :  { %v5286_v48 = vpack.c.bf16 %v5285_v43, %v5285_v43 }
0x134f   :  { %5287 = vst [vmem:[#allocation14] sm:$0xf] %v5286_v48 }
0x1350   :  { %6528 = shalt.err (!%p6525_p4)
}
0x1351   :  { %s6529_s1 = scalar_lea.hbm %s7442_s15, 64 }
0x1352   :  { %p6530_p5 = scmp.ne.s32.totalorder %s7442_s15, %s6529_s1  ;;  %p6533_p6 = scmp.lt.u32.totalorder %s6529_s1, %s7442_s15 }
0x1354   :  { %p6535_p7 = pnand %p6533_p6, %p6530_p5 }
0x1356   :  { %6538 = shalt.err (!%p6535_p7)
}
0x1357   :  { %5297 = dma.vmem_to_hbm [thread:$0]  %s5295_s19, 64, %s7442_s15, [#allocation4]  }
0x1358   :  { %6547 = dma.done.wait [#allocation4], 64  }
0x1359   :  { %6548 = vsyncadd [#allocation4], 4294967232 }
0x135a   :  { %5301 = vsyncpa [#allocation3], 1 }
0x135b   :  { %5302 = vsyncpa [#allocation6], 1 }
0x135c   :  { %5303 = vsyncpa [#allocation9], 1 }
0x135d   :  { %5304 = vsyncpa [#allocation12], 1 }
0x135e   :  { %5305 = vsyncpa [#allocation4], 1 }

</bundles_post_ra>
